<compile_context>
chip_gen: v7x
topology: tpu7x:2x2x1
jax: 0.10.0
libtpu: 0.0.40
codegen_flags: <defaults>
</compile_context>

<pallas_src>
import functools
import math

import numpy as np
import jax
import jax.numpy as jnp
from jax.experimental import pallas as pl
from jax.experimental.pallas import tpu as pltpu

CFG = dict(
    input_size=16,
    subsampled_input_size=32,
    num_conformer_blocks=2,
    ff_hidden_size=64,
    conv_hidden_size=32,
    conv_kernel_size=3,
    mha_num_heads=4,
    dropout=0.0,                      # inference: dropout is identity
    subsampling_kernel_size1=3, subsampling_stride1=2,
    subsampling_kernel_size2=3, subsampling_stride2=2,
    num_previous_frames=4,
    is_timewise_ln=True,
    adapter_hidden_size=16,
    num_adapter_blocks=1,
)

_VMEM = pltpu.MemorySpace.VMEM

# Ordered operand names (wrapper builds the operand list from these; kernel
# zips the same names against its positional refs).
_FIXED_NAMES = (
    "x2d", "mavg", "attn_bias", "s1", "s2", "q1", "b1t", "n2", "b2t",
    "wsub", "bsub", "wfc", "bfc", "erep", "hm", "gsum", "shift",
)
_BLOCK_NAMES = (
    "w_dff",   # (n_blk, 2, D, FF)   : [ff1_w1, ff2_w1]
    "w_ffd",   # (n_blk, 2, FF, D)   : [ff1_w2, ff2_w2]
    "w_dd",    # (n_blk, 4, D, D)    : [wq, wk, wv, wo]
    "w_dch",   # (n_blk, 2, D, ch)   : [pw1_a, pw1_b] (GLU halves)
    "pw2",     # (n_blk, ch, D)
    "ad_dn",   # (n_blk, D, A)
    "ad_up",   # (n_blk, A, D)
    "dww",     # (n_blk, K, ch)
    "vd",      # (n_blk, 18, D)  : 0..9 LN (ff1 g/b, mha g/b, conv g/b, ff2 g/b, fin g/b),
               #                   10 ff1_b2, 11 ff2_b2, 12 bq, 13 bk, 14 bv, 15 bo,
               #                   16 pw2_b, 17 ad_up_b
    "vff",     # (n_blk, 2, FF)  : [ff1_b1, ff2_b1]
    "vch",     # (n_blk, 5, ch)  : [dw_ln_g, dw_ln_b, pw1_ba, pw1_bb, dw_b]
    "va",      # (n_blk, 1, A)   : [ad_down_b]
)


# ---------------------------------------------------------------------------
# the single fused encoder kernel
# ---------------------------------------------------------------------------

def _encoder_kernel(*refs, has_adapter, scale, t_frames):
    names = _FIXED_NAMES + _BLOCK_NAMES
    w = dict(zip(names, refs))
    o_ref = refs[len(names)]
    f32 = jnp.float32

    def dot(a, b):
        return jnp.dot(a, b, preferred_element_type=f32)

    def lnrow(v, g, b, eps=1e-5):
        m = jnp.mean(v, axis=-1, keepdims=True)
        var = jnp.mean((v - m) ** 2, axis=-1, keepdims=True)
        return (v - m) * jax.lax.rsqrt(var + eps) * g + b

    def silu(v):
        return v * jax.nn.sigmoid(v)

    # ---- time normalization (per-batch mean / unbiased std over T frames) ----
    # mavg is block-diag(1/T) over batches, so no reshapes / per-batch loops.
    x2d = w["x2d"][...]                                  # (B*T, F)
    mavg = w["mavg"][...]
    mean = dot(mavg, x2d)
    dcen = x2d - mean
    var = dot(mavg, dcen * dcen) * (t_frames / (t_frames - 1.0))   # unbiased (torch.std)
    xn = dcen / (jnp.sqrt(var) + 1e-5)

    # ---- Conv2DSubSampling: conv1 -> ReLU -> conv2 -> ReLU -> flatten -> sub_fc ----
    # Each conv = sum_kh  S_kh @ (x @ W_kh)   with constant row-selection S and
    # kron-folded weight matrices W (built in the wrapper).
    h1 = None
    for kh in range(w["s1"].shape[0]):
        term = dot(w["s1"][kh], dot(xn, w["q1"][kh]))
        h1 = term if h1 is None else h1 + term
    h1 = jnp.maximum(h1 + w["b1t"][...], 0.0)            # (B*T1, F1*C)

    h2 = None
    for kh in range(w["s2"].shape[0]):
        term = dot(w["s2"][kh], dot(h1, w["n2"][kh]))
        h2 = term if h2 is None else h2 + term
    h2 = jnp.maximum(h2 + w["b2t"][...], 0.0)            # (B*T2, F2*C)

    x = dot(h2, w["wsub"][...]) + w["bsub"][...]         # sub_fc
    x = dot(x, w["wfc"][...]) + w["bfc"][...]            # encoder.fc (dropout = identity)

    # ---- hoisted (block-invariant) attention / conv constants ----
    erep = w["erep"][...]      # (H*R, R)   head replication
    hm = w["hm"][...]          # (H*R, D)   head lane masks
    gsum = w["gsum"][...]      # (H*R, H*R) per-head group-sum matrix
    bias = w["attn_bias"][...]  # (R, H*R)   0 / -1e30 additive mask
    n_blk = w["vd"].shape[0]
    conv_k = w["shift"].shape[0]

    for blk in range(n_blk):                             # static unroll over blocks
        vd = w["vd"][blk]                                # (18, D)
        vff = w["vff"][blk]                              # (2, FF)
        vch = w["vch"][blk]                              # (5, ch)

        # ---- Macaron FFN 1 (half-step residual) ----
        h = lnrow(x, vd[0:1], vd[1:2])
        h = silu(dot(h, w["w_dff"][blk, 0]) + vff[0:1])
        x = x + 0.5 * (dot(h, w["w_ffd"][blk, 0]) + vd[10:11])

        # ---- causal windowed MHA: all (batch, head) pairs in ONE masked softmax ----
        y = lnrow(x, vd[2:3], vd[3:4])
        q = dot(y, w["w_dd"][blk, 0]) + vd[12:13]
        k = dot(y, w["w_dd"][blk, 1]) + vd[13:14]
        v = dot(y, w["w_dd"][blk, 2]) + vd[14:15]
        khm = dot(erep, k) * hm                          # (H*R, D) head-masked keys
        vhm = dot(erep, v) * hm                          # (H*R, D) head-masked values
        s = jax.lax.dot_general(q * scale, khm, (((1,), (1,)), ((), ())),
                                preferred_element_type=f32) + bias   # (R, H*R)
        s = s - jnp.max(s, axis=-1, keepdims=True)
        e = jnp.exp(s)
        p = e * pl.reciprocal(dot(e, gsum), approx=True)  # per-head normalization
        attn = dot(p, vhm)                                # (R, D), heads re-merged
        x = x + dot(attn, w["w_dd"][blk, 3]) + vd[15:16]

        # ---- convolution module: pointwise-GLU -> causal depthwise -> LN+SiLU -> pw ----
        y = lnrow(x, vd[4:5], vd[5:6])
        ya = dot(y, w["w_dch"][blk, 0]) + vch[2:3]
        yb = dot(y, w["w_dch"][blk, 1]) + vch[3:4]
        y = ya * jax.nn.sigmoid(yb)                      # GLU
        dww = w["dww"][blk]                              # (K, ch)
        acc = None
        for kk in range(conv_k):                         # causal shift via constant matmuls
            term = dot(w["shift"][kk], y) * dww[kk:kk + 1]
            acc = term if acc is None else acc + term
        acc = acc + vch[4:5]
        # TODO(synk): is_timewise_ln interpreted as per-timestep LayerNorm over channels.
        y = silu(lnrow(acc, vch[0:1], vch[1:2]))
        x = x + dot(y, w["pw2"][blk]) + vd[16:17]

        # ---- Macaron FFN 2 (half-step residual) + final LayerNorm ----
        h = lnrow(x, vd[6:7], vd[7:8])
        h = silu(dot(h, w["w_dff"][blk, 1]) + vff[1:2])
        x = x + 0.5 * (dot(h, w["w_ffd"][blk, 1]) + vd[11:12])
        x = lnrow(x, vd[8:9], vd[9:10])

        # ---- bottleneck adapter (adapter blocks only; static skip otherwise) ----
        if has_adapter[blk]:
            va = w["va"][blk]
            a = jnp.maximum(dot(x, w["ad_dn"][blk]) + va[0:1], 0.0)
            x = x + dot(a, w["ad_up"][blk]) + vd[17:18]

    o_ref[...] = x


# ---------------------------------------------------------------------------
# wrapper: constant / weight preprocessing + single pallas_call
# ---------------------------------------------------------------------------

def encoder_forward(params, padded_input, input_lengths, cfg=CFG):
    B, T, F = padded_input.shape
    D = cfg["subsampled_input_size"]
    C = D                                               # conv channel count
    FF = cfg["ff_hidden_size"]
    ch = cfg["conv_hidden_size"]
    K = cfg["conv_kernel_size"]
    A = cfg["adapter_hidden_size"]
    H = cfg["mha_num_heads"]
    hd = D // H
    window = cfg["num_previous_frames"]
    k1, st1 = cfg["subsampling_kernel_size1"], cfg["subsampling_stride1"]
    k2, st2 = cfg["subsampling_kernel_size2"], cfg["subsampling_stride2"]
    T1 = (T - k1) // st1 + 1
    F1 = (F - k1) // st1 + 1
    T2 = (T1 - k2) // st2 + 1
    F2 = (F1 - k2) // st2 + 1
    R = B * T2

    # subsampled lengths (no-padding conv length arithmetic)
    l1 = (input_lengths - k1) // st1 + 1
    sub_lengths = (l1 - k2) // st2 + 1

    sub = params["sub"]

    # ---------- weight-independent constants (numpy, baked at trace time) ----------
    mavg = np.kron(np.eye(B, dtype=np.float32),
                   np.full((T, T), 1.0 / T, np.float32))            # (B*T, B*T)

    def time_sel(n_in, n_out, k, stride):
        r = np.arange(B * n_out); c = np.arange(B * n_in)
        br, tr = r // n_out, r % n_out
        bc, tc = c // n_in, c % n_in
        out = np.zeros((k, B * n_out, B * n_in), np.float32)
        for kk in range(k):
            out[kk] = ((br[:, None] == bc[None, :]) &
                       (tc[None, :] == stride * tr[:, None] + kk)).astype(np.float32)
        return out

    def freq_sel(n_in, n_out, k, stride):
        fi = np.arange(n_in)[:, None]; fo = np.arange(n_out)[None, :]
        return [(fi == stride * fo + kk).astype(np.float32) for kk in range(k)]

    s1m = time_sel(T, T1, k1, st1)        # (k1, B*T1, B*T)
    s2m = time_sel(T1, T2, k2, st2)       # (k2, B*T2, B*T1)
    fsel1 = freq_sel(F, F1, k1, st1)      # list of (F, F1)
    fsel2 = freq_sel(F1, F2, k2, st2)     # list of (F1, F2)

    erep = np.tile(np.eye(R, dtype=np.float32), (H, 1))              # (H*R, R)
    hm = ((np.arange(H * R)[:, None] // R) ==
          (np.arange(D)[None, :] // hd)).astype(np.float32)          # (H*R, D)
    gsum = ((np.arange(H * R)[:, None] // R) ==
            (np.arange(H * R)[None, :] // R)).astype(np.float32)     # (H*R, H*R)

    r = np.arange(R); bq, tq = r // T2, r % T2
    shift = np.zeros((K, R, R), np.float32)
    for kk in range(K):
        src_t = tq - (K - 1) + kk
        valid = src_t >= 0
        src_r = bq * T2 + np.clip(src_t, 0, T2 - 1)
        shift[kk, r[valid], src_r[valid]] = 1.0

    # ---------- attention mask bias (depends on sub_lengths -> jnp) ----------
    cidx = np.arange(H * R); sidx = cidx % R
    bk_, tk_ = sidx // T2, sidx % T2
    allowed_static = ((bq[:, None] == bk_[None, :]) &
                      (tk_[None, :] <= tq[:, None]) &
                      (tk_[None, :] >= tq[:, None] - window))
    len_per_row = sub_lengths[jnp.asarray(bq)]                       # (R,)
    allowed = jnp.asarray(allowed_static) & (jnp.asarray(tk_)[None, :] < len_per_row[:, None])
    attn_bias = jnp.where(allowed, 0.0, -1e30).astype(jnp.float32)   # (R, H*R)

    # ---------- subsampling weights folded into selection/kron matmuls ----------
    w1 = sub["conv1_w"]                                              # (C, 1, k1, k1)
    q1 = jnp.stack([
        sum(jnp.kron(jnp.asarray(fsel1[kw]), w1[:, 0, kh, kw][None, :]) for kw in range(k1))
        for kh in range(k1)])                                        # (k1, F, F1*C)
    b1t = jnp.tile(sub["conv1_b"], (F1,))[None, :]                   # (1, F1*C)
    w2 = sub["conv2_w"]                                              # (C, C, k2, k2)
    n2 = jnp.stack([
        sum(jnp.kron(jnp.asarray(fsel2[kw]), w2[:, :, kh, kw].T) for kw in range(k2))
        for kh in range(k2)])                                        # (k2, F1*C, F2*C)
    b2t = jnp.tile(sub["conv2_b"], (F2,))[None, :]                   # (1, F2*C)
    # permute sub_fc rows from torch (c, f2) feature order to our (f2, c) order
    wsub = (sub["sub_fc_w"].reshape(C, F2, D).transpose(1, 0, 2).reshape(F2 * C, D))
    bsub = sub["sub_fc_b"][None, :]
    wfc = params["fc_w"]
    bfc = params["fc_b"][None, :]

    # ---------- per-block weights, stacked over blocks / packed by shape ----------
    blocks = list(params["adapter_blocks"]) + list(params["conformer_blocks"])
    has_adapter = tuple(("ad_down_w" in p) for p in blocks)

    def g(p, name, shape):
        return p[name] if name in p else jnp.zeros(shape, jnp.float32)

    w_dff = jnp.stack([jnp.stack([p["ff1_w1"], p["ff2_w1"]]) for p in blocks])
    w_ffd = jnp.stack([jnp.stack([p["ff1_w2"], p["ff2_w2"]]) for p in blocks])
    w_dd = jnp.stack([jnp.stack([p["wq"], p["wk"], p["wv"], p["wo"]]) for p in blocks])
    w_dch = jnp.stack([jnp.stack([p["pw1_w"][:, :ch], p["pw1_w"][:, ch:]]) for p in blocks])
    pw2 = jnp.stack([p["pw2_w"] for p in blocks])
    ad_dn = jnp.stack([g(p, "ad_down_w", (D, A)) for p in blocks])
    ad_up = jnp.stack([g(p, "ad_up_w", (A, D)) for p in blocks])
    dww = jnp.stack([p["dw_w"] for p in blocks])
    vd = jnp.stack([jnp.stack([
        p["ff1_ln_g"], p["ff1_ln_b"], p["mha_ln_g"], p["mha_ln_b"],
        p["conv_ln_g"], p["conv_ln_b"], p["ff2_ln_g"], p["ff2_ln_b"],
        p["final_ln_g"], p["final_ln_b"],
        p["ff1_b2"], p["ff2_b2"], p["bq"], p["bk"], p["bv"], p["bo"],
        p["pw2_b"], g(p, "ad_up_b", (D,))]) for p in blocks])
    vff = jnp.stack([jnp.stack([p["ff1_b1"], p["ff2_b1"]]) for p in blocks])
    vch = jnp.stack([jnp.stack([p["dw_ln_g"], p["dw_ln_b"],
                                p["pw1_b"][:ch], p["pw1_b"][ch:], p["dw_b"]])
                     for p in blocks])
    va = jnp.stack([g(p, "ad_down_b", (A,))[None, :] for p in blocks])

    fixed = dict(
        x2d=padded_input.reshape(B * T, F).astype(jnp.float32),
        mavg=jnp.asarray(mavg), attn_bias=attn_bias,
        s1=jnp.asarray(s1m), s2=jnp.asarray(s2m), q1=q1, b1t=b1t, n2=n2, b2t=b2t,
        wsub=wsub, bsub=bsub, wfc=wfc, bfc=bfc,
        erep=jnp.asarray(erep), hm=jnp.asarray(hm), gsum=jnp.asarray(gsum),
        shift=jnp.asarray(shift))
    blk = dict(w_dff=w_dff, w_ffd=w_ffd, w_dd=w_dd, w_dch=w_dch, pw2=pw2,
               ad_dn=ad_dn, ad_up=ad_up, dww=dww, vd=vd, vff=vff, vch=vch, va=va)
    operands = [fixed[n] for n in _FIXED_NAMES] + [blk[n] for n in _BLOCK_NAMES]

    kernel = functools.partial(
        _encoder_kernel,
        has_adapter=has_adapter,
        scale=1.0 / math.sqrt(hd),
        t_frames=float(T))

    # Single invocation, everything resident in VMEM (total footprint << 1 MiB).
    # TODO(synk): a leading "parallel" batch grid axis would engage v7x's 2nd
    # TensorCore, at the cost of serial grid steps on single-TC v5e/v6e.
    out2d = pl.pallas_call(
        kernel,
        out_shape=jax.ShapeDtypeStruct((R, D), jnp.float32),
        in_specs=[pl.BlockSpec(memory_space=_VMEM)] * len(operands),
        out_specs=pl.BlockSpec(memory_space=_VMEM),
    )(*operands)

    return out2d.reshape(B, T2, D), sub_lengths


# ---------------------------------------------------------------------------
# deterministic init (mirrors the torch module's parameter shapes)
# ---------------------------------------------------------------------------

def _dense_init(key, fan_in, fan_out):
    kw, kb = jax.random.split(key)
    bound = 1.0 / math.sqrt(fan_in)
    w = jax.random.uniform(kw, (fan_in, fan_out), jnp.float32, -bound, bound)
    b = jax.random.uniform(kb, (fan_out,), jnp.float32, -bound, bound)
    return w, b


def init_block_params(key, cfg, with_adapter):
    d, ff = cfg["subsampled_input_size"], cfg["ff_hidden_size"]
    ch, ksz = cfg["conv_hidden_size"], cfg["conv_kernel_size"]
    keys = jax.random.split(key, 16)
    p = {}
    p["ff1_ln_g"], p["ff1_ln_b"] = jnp.ones(d), jnp.zeros(d)
    p["ff1_w1"], p["ff1_b1"] = _dense_init(keys[0], d, ff)
    p["ff1_w2"], p["ff1_b2"] = _dense_init(keys[1], ff, d)
    p["ff2_ln_g"], p["ff2_ln_b"] = jnp.ones(d), jnp.zeros(d)
    p["ff2_w1"], p["ff2_b1"] = _dense_init(keys[2], d, ff)
    p["ff2_w2"], p["ff2_b2"] = _dense_init(keys[3], ff, d)
    p["mha_ln_g"], p["mha_ln_b"] = jnp.ones(d), jnp.zeros(d)
    p["wq"], p["bq"] = _dense_init(keys[4], d, d)
    p["wk"], p["bk"] = _dense_init(keys[5], d, d)
    p["wv"], p["bv"] = _dense_init(keys[6], d, d)
    p["wo"], p["bo"] = _dense_init(keys[7], d, d)
    p["conv_ln_g"], p["conv_ln_b"] = jnp.ones(d), jnp.zeros(d)
    p["pw1_w"], p["pw1_b"] = _dense_init(keys[8], d, 2 * ch)
    bound = 1.0 / math.sqrt(ksz)
    p["dw_w"] = jax.random.uniform(keys[9], (ksz, ch), jnp.float32, -bound, bound)
    p["dw_b"] = jax.random.uniform(keys[10], (ch,), jnp.float32, -bound, bound)
    p["dw_ln_g"], p["dw_ln_b"] = jnp.ones(ch), jnp.zeros(ch)
    p["pw2_w"], p["pw2_b"] = _dense_init(keys[11], ch, d)
    p["final_ln_g"], p["final_ln_b"] = jnp.ones(d), jnp.zeros(d)
    if with_adapter:
        a = cfg["adapter_hidden_size"]
        p["ad_down_w"], p["ad_down_b"] = _dense_init(keys[12], d, a)
        p["ad_up_w"], p["ad_up_b"] = _dense_init(keys[13], a, d)
    return p


def init_params(key, cfg):
    k_sub, k_fc, k_blocks = jax.random.split(key, 3)
    d, f = cfg["subsampled_input_size"], cfg["input_size"]
    k1, s1 = cfg["subsampling_kernel_size1"], cfg["subsampling_stride1"]
    k2, s2 = cfg["subsampling_kernel_size2"], cfg["subsampling_stride2"]
    f1 = (f - k1) // s1 + 1
    f2 = (f1 - k2) // s2 + 1
    ks = jax.random.split(k_sub, 6)
    sub = {}
    b1 = 1.0 / math.sqrt(1 * k1 * k1)
    sub["conv1_w"] = jax.random.uniform(ks[0], (d, 1, k1, k1), jnp.float32, -b1, b1)
    sub["conv1_b"] = jax.random.uniform(ks[1], (d,), jnp.float32, -b1, b1)
    b2 = 1.0 / math.sqrt(d * k2 * k2)
    sub["conv2_w"] = jax.random.uniform(ks[2], (d, d, k2, k2), jnp.float32, -b2, b2)
    sub["conv2_b"] = jax.random.uniform(ks[3], (d,), jnp.float32, -b2, b2)
    sub["sub_fc_w"], sub["sub_fc_b"] = _dense_init(ks[4], d * f2, d)
    fc_w, fc_b = _dense_init(k_fc, d, d)
    n_adapter = cfg["num_adapter_blocks"]
    n_conf = cfg["num_conformer_blocks"] - n_adapter
    bkeys = jax.random.split(k_blocks, n_adapter + n_conf)
    adapter_blocks = [init_block_params(bkeys[i], cfg, True) for i in range(n_adapter)]
    conformer_blocks = [init_block_params(bkeys[n_adapter + i], cfg, False)
                        for i in range(n_conf)]
    return dict(sub=sub, fc_w=fc_w, fc_b=fc_b,
                adapter_blocks=adapter_blocks, conformer_blocks=conformer_blocks)


if __name__ == "__main__":
    B, T = 2, 32
    key = jax.random.PRNGKey(0)
    kp, kx = jax.random.split(key)
    params = init_params(kp, CFG)
    padded_input = jax.random.normal(kx, (B, T, CFG["input_size"]), jnp.float32)
    input_lengths = jnp.array([32, 25], dtype=jnp.int32)

    fwd = jax.jit(encoder_forward)          # cfg stays a Python default (static)
    out, out_lens = fwd(params, padded_input, input_lengths)
    jax.block_until_ready((out, out_lens))

    assert out.shape == (B, 7, CFG["subsampled_input_size"]), out.shape
    assert out_lens.shape == (B,), out_lens.shape
    assert bool(jnp.all(jnp.isfinite(out)))
    print("KERNEL_OK")
</pallas_src>

<mosaic_0001>
module attributes {stable_mosaic.version = 11 : i64} {
  func.func @_encoder_kernel(%arg0: memref<64x16xf32, #tpu.memory_space<vmem>>, %arg1: memref<64x64xf32, #tpu.memory_space<vmem>>, %arg2: memref<14x56xf32, #tpu.memory_space<vmem>>, %arg3: memref<3x30x64xf32, #tpu.memory_space<vmem>>, %arg4: memref<3x14x30xf32, #tpu.memory_space<vmem>>, %arg5: memref<3x16x224xf32, #tpu.memory_space<vmem>>, %arg6: memref<1x224xf32, #tpu.memory_space<vmem>>, %arg7: memref<3x224x96xf32, #tpu.memory_space<vmem>>, %arg8: memref<1x96xf32, #tpu.memory_space<vmem>>, %arg9: memref<96x32xf32, #tpu.memory_space<vmem>>, %arg10: memref<1x32xf32, #tpu.memory_space<vmem>>, %arg11: memref<32x32xf32, #tpu.memory_space<vmem>>, %arg12: memref<1x32xf32, #tpu.memory_space<vmem>>, %arg13: memref<56x14xf32, #tpu.memory_space<vmem>>, %arg14: memref<56x32xf32, #tpu.memory_space<vmem>>, %arg15: memref<56x56xf32, #tpu.memory_space<vmem>>, %arg16: memref<3x14x14xf32, #tpu.memory_space<vmem>>, %arg17: memref<2x2x32x64xf32, #tpu.memory_space<vmem>>, %arg18: memref<2x2x64x32xf32, #tpu.memory_space<vmem>>, %arg19: memref<2x4x32x32xf32, #tpu.memory_space<vmem>>, %arg20: memref<2x2x32x32xf32, #tpu.memory_space<vmem>>, %arg21: memref<2x32x32xf32, #tpu.memory_space<vmem>>, %arg22: memref<2x32x16xf32, #tpu.memory_space<vmem>>, %arg23: memref<2x16x32xf32, #tpu.memory_space<vmem>>, %arg24: memref<2x3x32xf32, #tpu.memory_space<vmem>>, %arg25: memref<2x18x32xf32, #tpu.memory_space<vmem>>, %arg26: memref<2x2x64xf32, #tpu.memory_space<vmem>>, %arg27: memref<2x5x32xf32, #tpu.memory_space<vmem>>, %arg28: memref<2x1x16xf32, #tpu.memory_space<vmem>>, %arg29: memref<14x32xf32, #tpu.memory_space<vmem>>) attributes {dimension_semantics = [], scalar_prefetch = 0 : i64, scratch_operands = 0 : i64, tpu.core_type = #tpu.core_type<tc>} {
    %c0 = arith.constant 0 : index
    %c0_0 = arith.constant 0 : index
    %0 = vector.load %arg0[%c0, %c0_0] : memref<64x16xf32, #tpu.memory_space<vmem>>, vector<64x16xf32>
    %c0_1 = arith.constant 0 : index
    %c0_2 = arith.constant 0 : index
    %1 = vector.load %arg1[%c0_1, %c0_2] : memref<64x64xf32, #tpu.memory_space<vmem>>, vector<64x64xf32>
    %cst = arith.constant dense<0.000000e+00> : vector<64x16xf32>
    %2 = tpu.matmul %1, %0, %cst {dimension_numbers = #tpu.dot_dimension_numbers<[1], [0], [0], [1], [0, 0, 1, 1], [], []>} : vector<64x64xf32>, vector<64x16xf32>, vector<64x16xf32> -> vector<64x16xf32>
    %3 = arith.subf %0, %2 : vector<64x16xf32>
    %4 = arith.mulf %3, %3 : vector<64x16xf32>
    %cst_3 = arith.constant dense<0.000000e+00> : vector<64x16xf32>
    %5 = tpu.matmul %1, %4, %cst_3 {dimension_numbers = #tpu.dot_dimension_numbers<[1], [0], [0], [1], [0, 0, 1, 1], [], []>} : vector<64x64xf32>, vector<64x16xf32>, vector<64x16xf32> -> vector<64x16xf32>
    %cst_4 = arith.constant 1.03225803 : f32
    %6 = vector.broadcast %cst_4 : f32 to vector<64x16xf32>
    %7 = arith.mulf %5, %6 : vector<64x16xf32>
    %8 = math.sqrt %7 : vector<64x16xf32>
    %cst_5 = arith.constant 9.99999974E-6 : f32
    %9 = vector.broadcast %cst_5 : f32 to vector<64x16xf32>
    %10 = arith.addf %8, %9 : vector<64x16xf32>
    %11 = arith.divf %3, %10 : vector<64x16xf32>
    %c0_6 = arith.constant 0 : index
    %c0_7 = arith.constant 0 : index
    %c0_8 = arith.constant 0 : index
    %12 = vector.load %arg3[%c0_6, %c0_7, %c0_8] : memref<3x30x64xf32, #tpu.memory_space<vmem>>, vector<1x30x64xf32>
    %13 = vector.shape_cast %12 : vector<1x30x64xf32> to vector<30x64xf32>
    %c0_9 = arith.constant 0 : index
    %c0_10 = arith.constant 0 : index
    %c0_11 = arith.constant 0 : index
    %14 = vector.load %arg5[%c0_9, %c0_10, %c0_11] : memref<3x16x224xf32, #tpu.memory_space<vmem>>, vector<1x16x224xf32>
    %15 = vector.shape_cast %14 : vector<1x16x224xf32> to vector<16x224xf32>
    %cst_12 = arith.constant dense<0.000000e+00> : vector<64x224xf32>
    %16 = tpu.matmul %11, %15, %cst_12 {dimension_numbers = #tpu.dot_dimension_numbers<[1], [0], [0], [1], [0, 0, 1, 1], [], []>} : vector<64x16xf32>, vector<16x224xf32>, vector<64x224xf32> -> vector<64x224xf32>
    %cst_13 = arith.constant dense<0.000000e+00> : vector<30x224xf32>
    %17 = tpu.matmul %13, %16, %cst_13 {dimension_numbers = #tpu.dot_dimension_numbers<[1], [0], [0], [1], [0, 0, 1, 1], [], []>} : vector<30x64xf32>, vector<64x224xf32>, vector<30x224xf32> -> vector<30x224xf32>
    %c1 = arith.constant 1 : index
    %c0_14 = arith.constant 0 : index
    %c0_15 = arith.constant 0 : index
    %18 = vector.load %arg3[%c1, %c0_14, %c0_15] : memref<3x30x64xf32, #tpu.memory_space<vmem>>, vector<1x30x64xf32>
    %19 = vector.shape_cast %18 : vector<1x30x64xf32> to vector<30x64xf32>
    %c1_16 = arith.constant 1 : index
    %c0_17 = arith.constant 0 : index
    %c0_18 = arith.constant 0 : index
    %20 = vector.load %arg5[%c1_16, %c0_17, %c0_18] : memref<3x16x224xf32, #tpu.memory_space<vmem>>, vector<1x16x224xf32>
    %21 = vector.shape_cast %20 : vector<1x16x224xf32> to vector<16x224xf32>
    %cst_19 = arith.constant dense<0.000000e+00> : vector<64x224xf32>
    %22 = tpu.matmul %11, %21, %cst_19 {dimension_numbers = #tpu.dot_dimension_numbers<[1], [0], [0], [1], [0, 0, 1, 1], [], []>} : vector<64x16xf32>, vector<16x224xf32>, vector<64x224xf32> -> vector<64x224xf32>
    %cst_20 = arith.constant dense<0.000000e+00> : vector<30x224xf32>
    %23 = tpu.matmul %19, %22, %cst_20 {dimension_numbers = #tpu.dot_dimension_numbers<[1], [0], [0], [1], [0, 0, 1, 1], [], []>} : vector<30x64xf32>, vector<64x224xf32>, vector<30x224xf32> -> vector<30x224xf32>
    %24 = arith.addf %17, %23 : vector<30x224xf32>
    %c2 = arith.constant 2 : index
    %c0_21 = arith.constant 0 : index
    %c0_22 = arith.constant 0 : index
    %25 = vector.load %arg3[%c2, %c0_21, %c0_22] : memref<3x30x64xf32, #tpu.memory_space<vmem>>, vector<1x30x64xf32>
    %26 = vector.shape_cast %25 : vector<1x30x64xf32> to vector<30x64xf32>
    %c2_23 = arith.constant 2 : index
    %c0_24 = arith.constant 0 : index
    %c0_25 = arith.constant 0 : index
    %27 = vector.load %arg5[%c2_23, %c0_24, %c0_25] : memref<3x16x224xf32, #tpu.memory_space<vmem>>, vector<1x16x224xf32>
    %28 = vector.shape_cast %27 : vector<1x16x224xf32> to vector<16x224xf32>
    %cst_26 = arith.constant dense<0.000000e+00> : vector<64x224xf32>
    %29 = tpu.matmul %11, %28, %cst_26 {dimension_numbers = #tpu.dot_dimension_numbers<[1], [0], [0], [1], [0, 0, 1, 1], [], []>} : vector<64x16xf32>, vector<16x224xf32>, vector<64x224xf32> -> vector<64x224xf32>
    %cst_27 = arith.constant dense<0.000000e+00> : vector<30x224xf32>
    %30 = tpu.matmul %26, %29, %cst_27 {dimension_numbers = #tpu.dot_dimension_numbers<[1], [0], [0], [1], [0, 0, 1, 1], [], []>} : vector<30x64xf32>, vector<64x224xf32>, vector<30x224xf32> -> vector<30x224xf32>
    %31 = arith.addf %24, %30 : vector<30x224xf32>
    %c0_28 = arith.constant 0 : index
    %c0_29 = arith.constant 0 : index
    %32 = vector.load %arg6[%c0_28, %c0_29] : memref<1x224xf32, #tpu.memory_space<vmem>>, vector<1x224xf32>
    %33 = vector.broadcast %32 : vector<1x224xf32> to vector<30x224xf32>
    %34 = arith.addf %31, %33 : vector<30x224xf32>
    %cst_30 = arith.constant 0.000000e+00 : f32
    %35 = vector.broadcast %cst_30 : f32 to vector<30x224xf32>
    %36 = arith.maximumf %34, %35 : vector<30x224xf32>
    %c0_31 = arith.constant 0 : index
    %c0_32 = arith.constant 0 : index
    %c0_33 = arith.constant 0 : index
    %37 = vector.load %arg4[%c0_31, %c0_32, %c0_33] : memref<3x14x30xf32, #tpu.memory_space<vmem>>, vector<1x14x30xf32>
    %38 = vector.shape_cast %37 : vector<1x14x30xf32> to vector<14x30xf32>
    %c0_34 = arith.constant 0 : index
    %c0_35 = arith.constant 0 : index
    %c0_36 = arith.constant 0 : index
    %39 = vector.load %arg7[%c0_34, %c0_35, %c0_36] : memref<3x224x96xf32, #tpu.memory_space<vmem>>, vector<1x224x96xf32>
    %40 = vector.shape_cast %39 : vector<1x224x96xf32> to vector<224x96xf32>
    %cst_37 = arith.constant dense<0.000000e+00> : vector<30x96xf32>
    %41 = tpu.matmul %36, %40, %cst_37 {dimension_numbers = #tpu.dot_dimension_numbers<[1], [0], [0], [1], [0, 0, 1, 1], [], []>} : vector<30x224xf32>, vector<224x96xf32>, vector<30x96xf32> -> vector<30x96xf32>
    %cst_38 = arith.constant dense<0.000000e+00> : vector<14x96xf32>
    %42 = tpu.matmul %38, %41, %cst_38 {dimension_numbers = #tpu.dot_dimension_numbers<[1], [0], [0], [1], [0, 0, 1, 1], [], []>} : vector<14x30xf32>, vector<30x96xf32>, vector<14x96xf32> -> vector<14x96xf32>
    %c1_39 = arith.constant 1 : index
    %c0_40 = arith.constant 0 : index
    %c0_41 = arith.constant 0 : index
    %43 = vector.load %arg4[%c1_39, %c0_40, %c0_41] : memref<3x14x30xf32, #tpu.memory_space<vmem>>, vector<1x14x30xf32>
    %44 = vector.shape_cast %43 : vector<1x14x30xf32> to vector<14x30xf32>
    %c1_42 = arith.constant 1 : index
    %c0_43 = arith.constant 0 : index
    %c0_44 = arith.constant 0 : index
    %45 = vector.load %arg7[%c1_42, %c0_43, %c0_44] : memref<3x224x96xf32, #tpu.memory_space<vmem>>, vector<1x224x96xf32>
    %46 = vector.shape_cast %45 : vector<1x224x96xf32> to vector<224x96xf32>
    %cst_45 = arith.constant dense<0.000000e+00> : vector<30x96xf32>
    %47 = tpu.matmul %36, %46, %cst_45 {dimension_numbers = #tpu.dot_dimension_numbers<[1], [0], [0], [1], [0, 0, 1, 1], [], []>} : vector<30x224xf32>, vector<224x96xf32>, vector<30x96xf32> -> vector<30x96xf32>
    %cst_46 = arith.constant dense<0.000000e+00> : vector<14x96xf32>
    %48 = tpu.matmul %44, %47, %cst_46 {dimension_numbers = #tpu.dot_dimension_numbers<[1], [0], [0], [1], [0, 0, 1, 1], [], []>} : vector<14x30xf32>, vector<30x96xf32>, vector<14x96xf32> -> vector<14x96xf32>
    %49 = arith.addf %42, %48 : vector<14x96xf32>
    %c2_47 = arith.constant 2 : index
    %c0_48 = arith.constant 0 : index
    %c0_49 = arith.constant 0 : index
    %50 = vector.load %arg4[%c2_47, %c0_48, %c0_49] : memref<3x14x30xf32, #tpu.memory_space<vmem>>, vector<1x14x30xf32>
    %51 = vector.shape_cast %50 : vector<1x14x30xf32> to vector<14x30xf32>
    %c2_50 = arith.constant 2 : index
    %c0_51 = arith.constant 0 : index
    %c0_52 = arith.constant 0 : index
    %52 = vector.load %arg7[%c2_50, %c0_51, %c0_52] : memref<3x224x96xf32, #tpu.memory_space<vmem>>, vector<1x224x96xf32>
    %53 = vector.shape_cast %52 : vector<1x224x96xf32> to vector<224x96xf32>
    %cst_53 = arith.constant dense<0.000000e+00> : vector<30x96xf32>
    %54 = tpu.matmul %36, %53, %cst_53 {dimension_numbers = #tpu.dot_dimension_numbers<[1], [0], [0], [1], [0, 0, 1, 1], [], []>} : vector<30x224xf32>, vector<224x96xf32>, vector<30x96xf32> -> vector<30x96xf32>
    %cst_54 = arith.constant dense<0.000000e+00> : vector<14x96xf32>
    %55 = tpu.matmul %51, %54, %cst_54 {dimension_numbers = #tpu.dot_dimension_numbers<[1], [0], [0], [1], [0, 0, 1, 1], [], []>} : vector<14x30xf32>, vector<30x96xf32>, vector<14x96xf32> -> vector<14x96xf32>
    %56 = arith.addf %49, %55 : vector<14x96xf32>
    %c0_55 = arith.constant 0 : index
    %c0_56 = arith.constant 0 : index
    %57 = vector.load %arg8[%c0_55, %c0_56] : memref<1x96xf32, #tpu.memory_space<vmem>>, vector<1x96xf32>
    %58 = vector.broadcast %57 : vector<1x96xf32> to vector<14x96xf32>
    %59 = arith.addf %56, %58 : vector<14x96xf32>
    %cst_57 = arith.constant 0.000000e+00 : f32
    %60 = vector.broadcast %cst_57 : f32 to vector<14x96xf32>
    %61 = arith.maximumf %59, %60 : vector<14x96xf32>
    %c0_58 = arith.constant 0 : index
    %c0_59 = arith.constant 0 : index
    %62 = vector.load %arg9[%c0_58, %c0_59] : memref<96x32xf32, #tpu.memory_space<vmem>>, vector<96x32xf32>
    %cst_60 = arith.constant dense<0.000000e+00> : vector<14x32xf32>
    %63 = tpu.matmul %61, %62, %cst_60 {dimension_numbers = #tpu.dot_dimension_numbers<[1], [0], [0], [1], [0, 0, 1, 1], [], []>} : vector<14x96xf32>, vector<96x32xf32>, vector<14x32xf32> -> vector<14x32xf32>
    %c0_61 = arith.constant 0 : index
    %c0_62 = arith.constant 0 : index
    %64 = vector.load %arg10[%c0_61, %c0_62] : memref<1x32xf32, #tpu.memory_space<vmem>>, vector<1x32xf32>
    %65 = vector.broadcast %64 : vector<1x32xf32> to vector<14x32xf32>
    %66 = arith.addf %63, %65 : vector<14x32xf32>
    %c0_63 = arith.constant 0 : index
    %c0_64 = arith.constant 0 : index
    %67 = vector.load %arg11[%c0_63, %c0_64] : memref<32x32xf32, #tpu.memory_space<vmem>>, vector<32x32xf32>
    %cst_65 = arith.constant dense<0.000000e+00> : vector<14x32xf32>
    %68 = tpu.matmul %66, %67, %cst_65 {dimension_numbers = #tpu.dot_dimension_numbers<[1], [0], [0], [1], [0, 0, 1, 1], [], []>} : vector<14x32xf32>, vector<32x32xf32>, vector<14x32xf32> -> vector<14x32xf32>
    %c0_66 = arith.constant 0 : index
    %c0_67 = arith.constant 0 : index
    %69 = vector.load %arg12[%c0_66, %c0_67] : memref<1x32xf32, #tpu.memory_space<vmem>>, vector<1x32xf32>
    %70 = vector.broadcast %69 : vector<1x32xf32> to vector<14x32xf32>
    %71 = arith.addf %68, %70 : vector<14x32xf32>
    %c0_68 = arith.constant 0 : index
    %c0_69 = arith.constant 0 : index
    %72 = vector.load %arg13[%c0_68, %c0_69] : memref<56x14xf32, #tpu.memory_space<vmem>>, vector<56x14xf32>
    %c0_70 = arith.constant 0 : index
    %c0_71 = arith.constant 0 : index
    %73 = vector.load %arg14[%c0_70, %c0_71] : memref<56x32xf32, #tpu.memory_space<vmem>>, vector<56x32xf32>
    %c0_72 = arith.constant 0 : index
    %c0_73 = arith.constant 0 : index
    %74 = vector.load %arg15[%c0_72, %c0_73] : memref<56x56xf32, #tpu.memory_space<vmem>>, vector<56x56xf32>
    %c0_74 = arith.constant 0 : index
    %c0_75 = arith.constant 0 : index
    %75 = vector.load %arg2[%c0_74, %c0_75] : memref<14x56xf32, #tpu.memory_space<vmem>>, vector<14x56xf32>
    %c0_76 = arith.constant 0 : index
    %c0_77 = arith.constant 0 : index
    %c0_78 = arith.constant 0 : index
    %76 = vector.load %arg25[%c0_76, %c0_77, %c0_78] : memref<2x18x32xf32, #tpu.memory_space<vmem>>, vector<1x18x32xf32>
    %77 = vector.shape_cast %76 : vector<1x18x32xf32> to vector<18x32xf32>
    %c0_79 = arith.constant 0 : index
    %c0_80 = arith.constant 0 : index
    %c0_81 = arith.constant 0 : index
    %78 = vector.load %arg26[%c0_79, %c0_80, %c0_81] : memref<2x2x64xf32, #tpu.memory_space<vmem>>, vector<1x2x64xf32>
    %79 = vector.shape_cast %78 : vector<1x2x64xf32> to vector<2x64xf32>
    %c0_82 = arith.constant 0 : index
    %c0_83 = arith.constant 0 : index
    %c0_84 = arith.constant 0 : index
    %80 = vector.load %arg27[%c0_82, %c0_83, %c0_84] : memref<2x5x32xf32, #tpu.memory_space<vmem>>, vector<1x5x32xf32>
    %81 = vector.shape_cast %80 : vector<1x5x32xf32> to vector<5x32xf32>
    %82 = vector.extract_strided_slice %77 {offsets = [0, 0], sizes = [1, 32], strides = [1, 1]} : vector<18x32xf32> to vector<1x32xf32>
    %83 = vector.extract_strided_slice %77 {offsets = [1, 0], sizes = [1, 32], strides = [1, 1]} : vector<18x32xf32> to vector<1x32xf32>
    %cst_85 = arith.constant dense<0.000000e+00> : vector<14xf32>
    %84 = vector.multi_reduction <add>, %71, %cst_85 [1] : vector<14x32xf32> to vector<14xf32>
    %85 = vector.shape_cast %84 : vector<14xf32> to vector<14x1xf32>
    %cst_86 = arith.constant 3.200000e+01 : f32
    %86 = vector.broadcast %cst_86 : f32 to vector<14x1xf32>
    %87 = arith.divf %85, %86 : vector<14x1xf32>
    %88 = vector.broadcast %87 : vector<14x1xf32> to vector<14x32xf32>
    %89 = arith.subf %71, %88 : vector<14x32xf32>
    %90 = arith.mulf %89, %89 : vector<14x32xf32>
    %cst_87 = arith.constant dense<0.000000e+00> : vector<14xf32>
    %91 = vector.multi_reduction <add>, %90, %cst_87 [1] : vector<14x32xf32> to vector<14xf32>
    %92 = vector.shape_cast %91 : vector<14xf32> to vector<14x1xf32>
    %cst_88 = arith.constant 3.200000e+01 : f32
    %93 = vector.broadcast %cst_88 : f32 to vector<14x1xf32>
    %94 = arith.divf %92, %93 : vector<14x1xf32>
    %95 = vector.broadcast %87 : vector<14x1xf32> to vector<14x32xf32>
    %96 = arith.subf %71, %95 : vector<14x32xf32>
    %cst_89 = arith.constant 9.99999974E-6 : f32
    %97 = vector.broadcast %cst_89 : f32 to vector<14x1xf32>
    %98 = arith.addf %94, %97 : vector<14x1xf32>
    %99 = math.rsqrt %98 : vector<14x1xf32>
    %100 = vector.broadcast %99 : vector<14x1xf32> to vector<14x32xf32>
    %101 = arith.mulf %96, %100 : vector<14x32xf32>
    %102 = vector.broadcast %82 : vector<1x32xf32> to vector<14x32xf32>
    %103 = arith.mulf %101, %102 : vector<14x32xf32>
    %104 = vector.broadcast %83 : vector<1x32xf32> to vector<14x32xf32>
    %105 = arith.addf %103, %104 : vector<14x32xf32>
    %c0_90 = arith.constant 0 : index
    %c0_91 = arith.constant 0 : index
    %c0_92 = arith.constant 0 : index
    %c0_93 = arith.constant 0 : index
    %106 = vector.load %arg17[%c0_90, %c0_91, %c0_92, %c0_93] : memref<2x2x32x64xf32, #tpu.memory_space<vmem>>, vector<1x1x32x64xf32>
    %107 = vector.shape_cast %106 : vector<1x1x32x64xf32> to vector<32x64xf32>
    %cst_94 = arith.constant dense<0.000000e+00> : vector<14x64xf32>
    %108 = tpu.matmul %105, %107, %cst_94 {dimension_numbers = #tpu.dot_dimension_numbers<[1], [0], [0], [1], [0, 0, 1, 1], [], []>} : vector<14x32xf32>, vector<32x64xf32>, vector<14x64xf32> -> vector<14x64xf32>
    %109 = vector.extract_strided_slice %79 {offsets = [0, 0], sizes = [1, 64], strides = [1, 1]} : vector<2x64xf32> to vector<1x64xf32>
    %110 = vector.broadcast %109 : vector<1x64xf32> to vector<14x64xf32>
    %111 = arith.addf %108, %110 : vector<14x64xf32>
    %112 = arith.negf %111 : vector<14x64xf32>
    %113 = math.exp %112 : vector<14x64xf32>
    %cst_95 = arith.constant 1.000000e+00 : f32
    %114 = vector.broadcast %cst_95 : f32 to vector<14x64xf32>
    %115 = arith.addf %114, %113 : vector<14x64xf32>
    %116 = arith.divf %114, %115 : vector<14x64xf32>
    %117 = arith.mulf %111, %116 : vector<14x64xf32>
    %c0_96 = arith.constant 0 : index
    %c0_97 = arith.constant 0 : index
    %c0_98 = arith.constant 0 : index
    %c0_99 = arith.constant 0 : index
    %118 = vector.load %arg18[%c0_96, %c0_97, %c0_98, %c0_99] : memref<2x2x64x32xf32, #tpu.memory_space<vmem>>, vector<1x1x64x32xf32>
    %119 = vector.shape_cast %118 : vector<1x1x64x32xf32> to vector<64x32xf32>
    %cst_100 = arith.constant dense<0.000000e+00> : vector<14x32xf32>
    %120 = tpu.matmul %117, %119, %cst_100 {dimension_numbers = #tpu.dot_dimension_numbers<[1], [0], [0], [1], [0, 0, 1, 1], [], []>} : vector<14x64xf32>, vector<64x32xf32>, vector<14x32xf32> -> vector<14x32xf32>
    %121 = vector.extract_strided_slice %77 {offsets = [10, 0], sizes = [1, 32], strides = [1, 1]} : vector<18x32xf32> to vector<1x32xf32>
    %122 = vector.broadcast %121 : vector<1x32xf32> to vector<14x32xf32>
    %123 = arith.addf %120, %122 : vector<14x32xf32>
    %cst_101 = arith.constant 5.000000e-01 : f32
    %124 = vector.broadcast %cst_101 : f32 to vector<14x32xf32>
    %125 = arith.mulf %124, %123 : vector<14x32xf32>
    %126 = arith.addf %71, %125 : vector<14x32xf32>
    %127 = vector.extract_strided_slice %77 {offsets = [2, 0], sizes = [1, 32], strides = [1, 1]} : vector<18x32xf32> to vector<1x32xf32>
    %128 = vector.extract_strided_slice %77 {offsets = [3, 0], sizes = [1, 32], strides = [1, 1]} : vector<18x32xf32> to vector<1x32xf32>
    %cst_102 = arith.constant dense<0.000000e+00> : vector<14xf32>
    %129 = vector.multi_reduction <add>, %126, %cst_102 [1] : vector<14x32xf32> to vector<14xf32>
    %130 = vector.shape_cast %129 : vector<14xf32> to vector<14x1xf32>
    %cst_103 = arith.constant 3.200000e+01 : f32
    %131 = vector.broadcast %cst_103 : f32 to vector<14x1xf32>
    %132 = arith.divf %130, %131 : vector<14x1xf32>
    %133 = vector.broadcast %132 : vector<14x1xf32> to vector<14x32xf32>
    %134 = arith.subf %126, %133 : vector<14x32xf32>
    %135 = arith.mulf %134, %134 : vector<14x32xf32>
    %cst_104 = arith.constant dense<0.000000e+00> : vector<14xf32>
    %136 = vector.multi_reduction <add>, %135, %cst_104 [1] : vector<14x32xf32> to vector<14xf32>
    %137 = vector.shape_cast %136 : vector<14xf32> to vector<14x1xf32>
    %cst_105 = arith.constant 3.200000e+01 : f32
    %138 = vector.broadcast %cst_105 : f32 to vector<14x1xf32>
    %139 = arith.divf %137, %138 : vector<14x1xf32>
    %140 = vector.broadcast %132 : vector<14x1xf32> to vector<14x32xf32>
    %141 = arith.subf %126, %140 : vector<14x32xf32>
    %cst_106 = arith.constant 9.99999974E-6 : f32
    %142 = vector.broadcast %cst_106 : f32 to vector<14x1xf32>
    %143 = arith.addf %139, %142 : vector<14x1xf32>
    %144 = math.rsqrt %143 : vector<14x1xf32>
    %145 = vector.broadcast %144 : vector<14x1xf32> to vector<14x32xf32>
    %146 = arith.mulf %141, %145 : vector<14x32xf32>
    %147 = vector.broadcast %127 : vector<1x32xf32> to vector<14x32xf32>
    %148 = arith.mulf %146, %147 : vector<14x32xf32>
    %149 = vector.broadcast %128 : vector<1x32xf32> to vector<14x32xf32>
    %150 = arith.addf %148, %149 : vector<14x32xf32>
    %c0_107 = arith.constant 0 : index
    %c0_108 = arith.constant 0 : index
    %c0_109 = arith.constant 0 : index
    %c0_110 = arith.constant 0 : index
    %151 = vector.load %arg19[%c0_107, %c0_108, %c0_109, %c0_110] : memref<2x4x32x32xf32, #tpu.memory_space<vmem>>, vector<1x1x32x32xf32>
    %152 = vector.shape_cast %151 : vector<1x1x32x32xf32> to vector<32x32xf32>
    %cst_111 = arith.constant dense<0.000000e+00> : vector<14x32xf32>
    %153 = tpu.matmul %150, %152, %cst_111 {dimension_numbers = #tpu.dot_dimension_numbers<[1], [0], [0], [1], [0, 0, 1, 1], [], []>} : vector<14x32xf32>, vector<32x32xf32>, vector<14x32xf32> -> vector<14x32xf32>
    %154 = vector.extract_strided_slice %77 {offsets = [12, 0], sizes = [1, 32], strides = [1, 1]} : vector<18x32xf32> to vector<1x32xf32>
    %155 = vector.broadcast %154 : vector<1x32xf32> to vector<14x32xf32>
    %156 = arith.addf %153, %155 : vector<14x32xf32>
    %c0_112 = arith.constant 0 : index
    %c1_113 = arith.constant 1 : index
    %c0_114 = arith.constant 0 : index
    %c0_115 = arith.constant 0 : index
    %157 = vector.load %arg19[%c0_112, %c1_113, %c0_114, %c0_115] : memref<2x4x32x32xf32, #tpu.memory_space<vmem>>, vector<1x1x32x32xf32>
    %158 = vector.shape_cast %157 : vector<1x1x32x32xf32> to vector<32x32xf32>
    %cst_116 = arith.constant dense<0.000000e+00> : vector<14x32xf32>
    %159 = tpu.matmul %150, %158, %cst_116 {dimension_numbers = #tpu.dot_dimension_numbers<[1], [0], [0], [1], [0, 0, 1, 1], [], []>} : vector<14x32xf32>, vector<32x32xf32>, vector<14x32xf32> -> vector<14x32xf32>
    %160 = vector.extract_strided_slice %77 {offsets = [13, 0], sizes = [1, 32], strides = [1, 1]} : vector<18x32xf32> to vector<1x32xf32>
    %161 = vector.broadcast %160 : vector<1x32xf32> to vector<14x32xf32>
    %162 = arith.addf %159, %161 : vector<14x32xf32>
    %c0_117 = arith.constant 0 : index
    %c2_118 = arith.constant 2 : index
    %c0_119 = arith.constant 0 : index
    %c0_120 = arith.constant 0 : index
    %163 = vector.load %arg19[%c0_117, %c2_118, %c0_119, %c0_120] : memref<2x4x32x32xf32, #tpu.memory_space<vmem>>, vector<1x1x32x32xf32>
    %164 = vector.shape_cast %163 : vector<1x1x32x32xf32> to vector<32x32xf32>
    %cst_121 = arith.constant dense<0.000000e+00> : vector<14x32xf32>
    %165 = tpu.matmul %150, %164, %cst_121 {dimension_numbers = #tpu.dot_dimension_numbers<[1], [0], [0], [1], [0, 0, 1, 1], [], []>} : vector<14x32xf32>, vector<32x32xf32>, vector<14x32xf32> -> vector<14x32xf32>
    %166 = vector.extract_strided_slice %77 {offsets = [14, 0], sizes = [1, 32], strides = [1, 1]} : vector<18x32xf32> to vector<1x32xf32>
    %167 = vector.broadcast %166 : vector<1x32xf32> to vector<14x32xf32>
    %168 = arith.addf %165, %167 : vector<14x32xf32>
    %cst_122 = arith.constant dense<0.000000e+00> : vector<56x32xf32>
    %169 = tpu.matmul %72, %162, %cst_122 {dimension_numbers = #tpu.dot_dimension_numbers<[1], [0], [0], [1], [0, 0, 1, 1], [], []>} : vector<56x14xf32>, vector<14x32xf32>, vector<56x32xf32> -> vector<56x32xf32>
    %170 = arith.mulf %169, %73 : vector<56x32xf32>
    %cst_123 = arith.constant dense<0.000000e+00> : vector<56x32xf32>
    %171 = tpu.matmul %72, %168, %cst_123 {dimension_numbers = #tpu.dot_dimension_numbers<[1], [0], [0], [1], [0, 0, 1, 1], [], []>} : vector<56x14xf32>, vector<14x32xf32>, vector<56x32xf32> -> vector<56x32xf32>
    %172 = arith.mulf %171, %73 : vector<56x32xf32>
    %cst_124 = arith.constant 0.353553385 : f32
    %173 = vector.broadcast %cst_124 : f32 to vector<14x32xf32>
    %174 = arith.mulf %156, %173 : vector<14x32xf32>
    %cst_125 = arith.constant dense<0.000000e+00> : vector<14x56xf32>
    %175 = tpu.matmul %174, %170, %cst_125 {dimension_numbers = #tpu.dot_dimension_numbers<[1], [1], [0], [0], [0, 0, 1, 0], [], []>} : vector<14x32xf32>, vector<56x32xf32>, vector<14x56xf32> -> vector<14x56xf32>
    %176 = arith.addf %175, %75 : vector<14x56xf32>
    %cst_126 = arith.constant dense<0xFF800000> : vector<14xf32>
    %177 = vector.multi_reduction <maximumf>, %176, %cst_126 [1] : vector<14x56xf32> to vector<14xf32>
    %178 = vector.shape_cast %177 : vector<14xf32> to vector<14x1xf32>
    %179 = vector.broadcast %178 : vector<14x1xf32> to vector<14x56xf32>
    %180 = arith.subf %176, %179 : vector<14x56xf32>
    %181 = math.exp %180 : vector<14x56xf32>
    %cst_127 = arith.constant dense<0.000000e+00> : vector<14x56xf32>
    %182 = tpu.matmul %181, %74, %cst_127 {dimension_numbers = #tpu.dot_dimension_numbers<[1], [0], [0], [1], [0, 0, 1, 1], [], []>} : vector<14x56xf32>, vector<56x56xf32>, vector<14x56xf32> -> vector<14x56xf32>
    %183 = tpu.reciprocal %182 {approx = true} : vector<14x56xf32> -> vector<14x56xf32>
    %184 = arith.mulf %181, %183 : vector<14x56xf32>
    %cst_128 = arith.constant dense<0.000000e+00> : vector<14x32xf32>
    %185 = tpu.matmul %184, %172, %cst_128 {dimension_numbers = #tpu.dot_dimension_numbers<[1], [0], [0], [1], [0, 0, 1, 1], [], []>} : vector<14x56xf32>, vector<56x32xf32>, vector<14x32xf32> -> vector<14x32xf32>
    %c0_129 = arith.constant 0 : index
    %c3 = arith.constant 3 : index
    %c0_130 = arith.constant 0 : index
    %c0_131 = arith.constant 0 : index
    %186 = vector.load %arg19[%c0_129, %c3, %c0_130, %c0_131] : memref<2x4x32x32xf32, #tpu.memory_space<vmem>>, vector<1x1x32x32xf32>
    %187 = vector.shape_cast %186 : vector<1x1x32x32xf32> to vector<32x32xf32>
    %cst_132 = arith.constant dense<0.000000e+00> : vector<14x32xf32>
    %188 = tpu.matmul %185, %187, %cst_132 {dimension_numbers = #tpu.dot_dimension_numbers<[1], [0], [0], [1], [0, 0, 1, 1], [], []>} : vector<14x32xf32>, vector<32x32xf32>, vector<14x32xf32> -> vector<14x32xf32>
    %189 = arith.addf %126, %188 : vector<14x32xf32>
    %190 = vector.extract_strided_slice %77 {offsets = [15, 0], sizes = [1, 32], strides = [1, 1]} : vector<18x32xf32> to vector<1x32xf32>
    %191 = vector.broadcast %190 : vector<1x32xf32> to vector<14x32xf32>
    %192 = arith.addf %189, %191 : vector<14x32xf32>
    %193 = vector.extract_strided_slice %77 {offsets = [4, 0], sizes = [1, 32], strides = [1, 1]} : vector<18x32xf32> to vector<1x32xf32>
    %194 = vector.extract_strided_slice %77 {offsets = [5, 0], sizes = [1, 32], strides = [1, 1]} : vector<18x32xf32> to vector<1x32xf32>
    %cst_133 = arith.constant dense<0.000000e+00> : vector<14xf32>
    %195 = vector.multi_reduction <add>, %192, %cst_133 [1] : vector<14x32xf32> to vector<14xf32>
    %196 = vector.shape_cast %195 : vector<14xf32> to vector<14x1xf32>
    %cst_134 = arith.constant 3.200000e+01 : f32
    %197 = vector.broadcast %cst_134 : f32 to vector<14x1xf32>
    %198 = arith.divf %196, %197 : vector<14x1xf32>
    %199 = vector.broadcast %198 : vector<14x1xf32> to vector<14x32xf32>
    %200 = arith.subf %192, %199 : vector<14x32xf32>
    %201 = arith.mulf %200, %200 : vector<14x32xf32>
    %cst_135 = arith.constant dense<0.000000e+00> : vector<14xf32>
    %202 = vector.multi_reduction <add>, %201, %cst_135 [1] : vector<14x32xf32> to vector<14xf32>
    %203 = vector.shape_cast %202 : vector<14xf32> to vector<14x1xf32>
    %cst_136 = arith.constant 3.200000e+01 : f32
    %204 = vector.broadcast %cst_136 : f32 to vector<14x1xf32>
    %205 = arith.divf %203, %204 : vector<14x1xf32>
    %206 = vector.broadcast %198 : vector<14x1xf32> to vector<14x32xf32>
    %207 = arith.subf %192, %206 : vector<14x32xf32>
    %cst_137 = arith.constant 9.99999974E-6 : f32
    %208 = vector.broadcast %cst_137 : f32 to vector<14x1xf32>
    %209 = arith.addf %205, %208 : vector<14x1xf32>
    %210 = math.rsqrt %209 : vector<14x1xf32>
    %211 = vector.broadcast %210 : vector<14x1xf32> to vector<14x32xf32>
    %212 = arith.mulf %207, %211 : vector<14x32xf32>
    %213 = vector.broadcast %193 : vector<1x32xf32> to vector<14x32xf32>
    %214 = arith.mulf %212, %213 : vector<14x32xf32>
    %215 = vector.broadcast %194 : vector<1x32xf32> to vector<14x32xf32>
    %216 = arith.addf %214, %215 : vector<14x32xf32>
    %c0_138 = arith.constant 0 : index
    %c0_139 = arith.constant 0 : index
    %c0_140 = arith.constant 0 : index
    %c0_141 = arith.constant 0 : index
    %217 = vector.load %arg20[%c0_138, %c0_139, %c0_140, %c0_141] : memref<2x2x32x32xf32, #tpu.memory_space<vmem>>, vector<1x1x32x32xf32>
    %218 = vector.shape_cast %217 : vector<1x1x32x32xf32> to vector<32x32xf32>
    %cst_142 = arith.constant dense<0.000000e+00> : vector<14x32xf32>
    %219 = tpu.matmul %216, %218, %cst_142 {dimension_numbers = #tpu.dot_dimension_numbers<[1], [0], [0], [1], [0, 0, 1, 1], [], []>} : vector<14x32xf32>, vector<32x32xf32>, vector<14x32xf32> -> vector<14x32xf32>
    %220 = vector.extract_strided_slice %81 {offsets = [2, 0], sizes = [1, 32], strides = [1, 1]} : vector<5x32xf32> to vector<1x32xf32>
    %221 = vector.broadcast %220 : vector<1x32xf32> to vector<14x32xf32>
    %222 = arith.addf %219, %221 : vector<14x32xf32>
    %c0_143 = arith.constant 0 : index
    %c1_144 = arith.constant 1 : index
    %c0_145 = arith.constant 0 : index
    %c0_146 = arith.constant 0 : index
    %223 = vector.load %arg20[%c0_143, %c1_144, %c0_145, %c0_146] : memref<2x2x32x32xf32, #tpu.memory_space<vmem>>, vector<1x1x32x32xf32>
    %224 = vector.shape_cast %223 : vector<1x1x32x32xf32> to vector<32x32xf32>
    %cst_147 = arith.constant dense<0.000000e+00> : vector<14x32xf32>
    %225 = tpu.matmul %216, %224, %cst_147 {dimension_numbers = #tpu.dot_dimension_numbers<[1], [0], [0], [1], [0, 0, 1, 1], [], []>} : vector<14x32xf32>, vector<32x32xf32>, vector<14x32xf32> -> vector<14x32xf32>
    %226 = vector.extract_strided_slice %81 {offsets = [3, 0], sizes = [1, 32], strides = [1, 1]} : vector<5x32xf32> to vector<1x32xf32>
    %227 = vector.broadcast %226 : vector<1x32xf32> to vector<14x32xf32>
    %228 = arith.addf %225, %227 : vector<14x32xf32>
    %229 = arith.negf %228 : vector<14x32xf32>
    %230 = math.exp %229 : vector<14x32xf32>
    %cst_148 = arith.constant 1.000000e+00 : f32
    %231 = vector.broadcast %cst_148 : f32 to vector<14x32xf32>
    %232 = arith.addf %231, %230 : vector<14x32xf32>
    %233 = arith.divf %231, %232 : vector<14x32xf32>
    %234 = arith.mulf %222, %233 : vector<14x32xf32>
    %c0_149 = arith.constant 0 : index
    %c0_150 = arith.constant 0 : index
    %c0_151 = arith.constant 0 : index
    %235 = vector.load %arg24[%c0_149, %c0_150, %c0_151] : memref<2x3x32xf32, #tpu.memory_space<vmem>>, vector<1x3x32xf32>
    %236 = vector.shape_cast %235 : vector<1x3x32xf32> to vector<3x32xf32>
    %c0_152 = arith.constant 0 : index
    %c0_153 = arith.constant 0 : index
    %c0_154 = arith.constant 0 : index
    %237 = vector.load %arg16[%c0_152, %c0_153, %c0_154] : memref<3x14x14xf32, #tpu.memory_space<vmem>>, vector<1x14x14xf32>
    %238 = vector.shape_cast %237 : vector<1x14x14xf32> to vector<14x14xf32>
    %cst_155 = arith.constant dense<0.000000e+00> : vector<14x32xf32>
    %239 = tpu.matmul %238, %234, %cst_155 {dimension_numbers = #tpu.dot_dimension_numbers<[1], [0], [0], [1], [0, 0, 1, 1], [], []>} : vector<14x14xf32>, vector<14x32xf32>, vector<14x32xf32> -> vector<14x32xf32>
    %240 = vector.extract_strided_slice %236 {offsets = [0, 0], sizes = [1, 32], strides = [1, 1]} : vector<3x32xf32> to vector<1x32xf32>
    %241 = vector.broadcast %240 : vector<1x32xf32> to vector<14x32xf32>
    %242 = arith.mulf %239, %241 : vector<14x32xf32>
    %c1_156 = arith.constant 1 : index
    %c0_157 = arith.constant 0 : index
    %c0_158 = arith.constant 0 : index
    %243 = vector.load %arg16[%c1_156, %c0_157, %c0_158] : memref<3x14x14xf32, #tpu.memory_space<vmem>>, vector<1x14x14xf32>
    %244 = vector.shape_cast %243 : vector<1x14x14xf32> to vector<14x14xf32>
    %cst_159 = arith.constant dense<0.000000e+00> : vector<14x32xf32>
    %245 = tpu.matmul %244, %234, %cst_159 {dimension_numbers = #tpu.dot_dimension_numbers<[1], [0], [0], [1], [0, 0, 1, 1], [], []>} : vector<14x14xf32>, vector<14x32xf32>, vector<14x32xf32> -> vector<14x32xf32>
    %246 = vector.extract_strided_slice %236 {offsets = [1, 0], sizes = [1, 32], strides = [1, 1]} : vector<3x32xf32> to vector<1x32xf32>
    %247 = vector.broadcast %246 : vector<1x32xf32> to vector<14x32xf32>
    %248 = arith.mulf %245, %247 : vector<14x32xf32>
    %249 = arith.addf %242, %248 : vector<14x32xf32>
    %c2_160 = arith.constant 2 : index
    %c0_161 = arith.constant 0 : index
    %c0_162 = arith.constant 0 : index
    %250 = vector.load %arg16[%c2_160, %c0_161, %c0_162] : memref<3x14x14xf32, #tpu.memory_space<vmem>>, vector<1x14x14xf32>
    %251 = vector.shape_cast %250 : vector<1x14x14xf32> to vector<14x14xf32>
    %cst_163 = arith.constant dense<0.000000e+00> : vector<14x32xf32>
    %252 = tpu.matmul %251, %234, %cst_163 {dimension_numbers = #tpu.dot_dimension_numbers<[1], [0], [0], [1], [0, 0, 1, 1], [], []>} : vector<14x14xf32>, vector<14x32xf32>, vector<14x32xf32> -> vector<14x32xf32>
    %253 = vector.extract_strided_slice %236 {offsets = [2, 0], sizes = [1, 32], strides = [1, 1]} : vector<3x32xf32> to vector<1x32xf32>
    %254 = vector.broadcast %253 : vector<1x32xf32> to vector<14x32xf32>
    %255 = arith.mulf %252, %254 : vector<14x32xf32>
    %256 = arith.addf %249, %255 : vector<14x32xf32>
    %257 = vector.extract_strided_slice %81 {offsets = [4, 0], sizes = [1, 32], strides = [1, 1]} : vector<5x32xf32> to vector<1x32xf32>
    %258 = vector.broadcast %257 : vector<1x32xf32> to vector<14x32xf32>
    %259 = arith.addf %256, %258 : vector<14x32xf32>
    %260 = vector.extract_strided_slice %81 {offsets = [0, 0], sizes = [1, 32], strides = [1, 1]} : vector<5x32xf32> to vector<1x32xf32>
    %261 = vector.extract_strided_slice %81 {offsets = [1, 0], sizes = [1, 32], strides = [1, 1]} : vector<5x32xf32> to vector<1x32xf32>
    %cst_164 = arith.constant dense<0.000000e+00> : vector<14xf32>
    %262 = vector.multi_reduction <add>, %259, %cst_164 [1] : vector<14x32xf32> to vector<14xf32>
    %263 = vector.shape_cast %262 : vector<14xf32> to vector<14x1xf32>
    %cst_165 = arith.constant 3.200000e+01 : f32
    %264 = vector.broadcast %cst_165 : f32 to vector<14x1xf32>
    %265 = arith.divf %263, %264 : vector<14x1xf32>
    %266 = vector.broadcast %265 : vector<14x1xf32> to vector<14x32xf32>
    %267 = arith.subf %259, %266 : vector<14x32xf32>
    %268 = arith.mulf %267, %267 : vector<14x32xf32>
    %cst_166 = arith.constant dense<0.000000e+00> : vector<14xf32>
    %269 = vector.multi_reduction <add>, %268, %cst_166 [1] : vector<14x32xf32> to vector<14xf32>
    %270 = vector.shape_cast %269 : vector<14xf32> to vector<14x1xf32>
    %cst_167 = arith.constant 3.200000e+01 : f32
    %271 = vector.broadcast %cst_167 : f32 to vector<14x1xf32>
    %272 = arith.divf %270, %271 : vector<14x1xf32>
    %273 = vector.broadcast %265 : vector<14x1xf32> to vector<14x32xf32>
    %274 = arith.subf %259, %273 : vector<14x32xf32>
    %cst_168 = arith.constant 9.99999974E-6 : f32
    %275 = vector.broadcast %cst_168 : f32 to vector<14x1xf32>
    %276 = arith.addf %272, %275 : vector<14x1xf32>
    %277 = math.rsqrt %276 : vector<14x1xf32>
    %278 = vector.broadcast %277 : vector<14x1xf32> to vector<14x32xf32>
    %279 = arith.mulf %274, %278 : vector<14x32xf32>
    %280 = vector.broadcast %260 : vector<1x32xf32> to vector<14x32xf32>
    %281 = arith.mulf %279, %280 : vector<14x32xf32>
    %282 = vector.broadcast %261 : vector<1x32xf32> to vector<14x32xf32>
    %283 = arith.addf %281, %282 : vector<14x32xf32>
    %284 = arith.negf %283 : vector<14x32xf32>
    %285 = math.exp %284 : vector<14x32xf32>
    %cst_169 = arith.constant 1.000000e+00 : f32
    %286 = vector.broadcast %cst_169 : f32 to vector<14x32xf32>
    %287 = arith.addf %286, %285 : vector<14x32xf32>
    %288 = arith.divf %286, %287 : vector<14x32xf32>
    %289 = arith.mulf %283, %288 : vector<14x32xf32>
    %c0_170 = arith.constant 0 : index
    %c0_171 = arith.constant 0 : index
    %c0_172 = arith.constant 0 : index
    %290 = vector.load %arg21[%c0_170, %c0_171, %c0_172] : memref<2x32x32xf32, #tpu.memory_space<vmem>>, vector<1x32x32xf32>
    %291 = vector.shape_cast %290 : vector<1x32x32xf32> to vector<32x32xf32>
    %cst_173 = arith.constant dense<0.000000e+00> : vector<14x32xf32>
    %292 = tpu.matmul %289, %291, %cst_173 {dimension_numbers = #tpu.dot_dimension_numbers<[1], [0], [0], [1], [0, 0, 1, 1], [], []>} : vector<14x32xf32>, vector<32x32xf32>, vector<14x32xf32> -> vector<14x32xf32>
    %293 = arith.addf %192, %292 : vector<14x32xf32>
    %294 = vector.extract_strided_slice %77 {offsets = [16, 0], sizes = [1, 32], strides = [1, 1]} : vector<18x32xf32> to vector<1x32xf32>
    %295 = vector.broadcast %294 : vector<1x32xf32> to vector<14x32xf32>
    %296 = arith.addf %293, %295 : vector<14x32xf32>
    %297 = vector.extract_strided_slice %77 {offsets = [6, 0], sizes = [1, 32], strides = [1, 1]} : vector<18x32xf32> to vector<1x32xf32>
    %298 = vector.extract_strided_slice %77 {offsets = [7, 0], sizes = [1, 32], strides = [1, 1]} : vector<18x32xf32> to vector<1x32xf32>
    %cst_174 = arith.constant dense<0.000000e+00> : vector<14xf32>
    %299 = vector.multi_reduction <add>, %296, %cst_174 [1] : vector<14x32xf32> to vector<14xf32>
    %300 = vector.shape_cast %299 : vector<14xf32> to vector<14x1xf32>
    %cst_175 = arith.constant 3.200000e+01 : f32
    %301 = vector.broadcast %cst_175 : f32 to vector<14x1xf32>
    %302 = arith.divf %300, %301 : vector<14x1xf32>
    %303 = vector.broadcast %302 : vector<14x1xf32> to vector<14x32xf32>
    %304 = arith.subf %296, %303 : vector<14x32xf32>
    %305 = arith.mulf %304, %304 : vector<14x32xf32>
    %cst_176 = arith.constant dense<0.000000e+00> : vector<14xf32>
    %306 = vector.multi_reduction <add>, %305, %cst_176 [1] : vector<14x32xf32> to vector<14xf32>
    %307 = vector.shape_cast %306 : vector<14xf32> to vector<14x1xf32>
    %cst_177 = arith.constant 3.200000e+01 : f32
    %308 = vector.broadcast %cst_177 : f32 to vector<14x1xf32>
    %309 = arith.divf %307, %308 : vector<14x1xf32>
    %310 = vector.broadcast %302 : vector<14x1xf32> to vector<14x32xf32>
    %311 = arith.subf %296, %310 : vector<14x32xf32>
    %cst_178 = arith.constant 9.99999974E-6 : f32
    %312 = vector.broadcast %cst_178 : f32 to vector<14x1xf32>
    %313 = arith.addf %309, %312 : vector<14x1xf32>
    %314 = math.rsqrt %313 : vector<14x1xf32>
    %315 = vector.broadcast %314 : vector<14x1xf32> to vector<14x32xf32>
    %316 = arith.mulf %311, %315 : vector<14x32xf32>
    %317 = vector.broadcast %297 : vector<1x32xf32> to vector<14x32xf32>
    %318 = arith.mulf %316, %317 : vector<14x32xf32>
    %319 = vector.broadcast %298 : vector<1x32xf32> to vector<14x32xf32>
    %320 = arith.addf %318, %319 : vector<14x32xf32>
    %c0_179 = arith.constant 0 : index
    %c1_180 = arith.constant 1 : index
    %c0_181 = arith.constant 0 : index
    %c0_182 = arith.constant 0 : index
    %321 = vector.load %arg17[%c0_179, %c1_180, %c0_181, %c0_182] : memref<2x2x32x64xf32, #tpu.memory_space<vmem>>, vector<1x1x32x64xf32>
    %322 = vector.shape_cast %321 : vector<1x1x32x64xf32> to vector<32x64xf32>
    %cst_183 = arith.constant dense<0.000000e+00> : vector<14x64xf32>
    %323 = tpu.matmul %320, %322, %cst_183 {dimension_numbers = #tpu.dot_dimension_numbers<[1], [0], [0], [1], [0, 0, 1, 1], [], []>} : vector<14x32xf32>, vector<32x64xf32>, vector<14x64xf32> -> vector<14x64xf32>
    %324 = vector.extract_strided_slice %79 {offsets = [1, 0], sizes = [1, 64], strides = [1, 1]} : vector<2x64xf32> to vector<1x64xf32>
    %325 = vector.broadcast %324 : vector<1x64xf32> to vector<14x64xf32>
    %326 = arith.addf %323, %325 : vector<14x64xf32>
    %327 = arith.negf %326 : vector<14x64xf32>
    %328 = math.exp %327 : vector<14x64xf32>
    %cst_184 = arith.constant 1.000000e+00 : f32
    %329 = vector.broadcast %cst_184 : f32 to vector<14x64xf32>
    %330 = arith.addf %329, %328 : vector<14x64xf32>
    %331 = arith.divf %329, %330 : vector<14x64xf32>
    %332 = arith.mulf %326, %331 : vector<14x64xf32>
    %c0_185 = arith.constant 0 : index
    %c1_186 = arith.constant 1 : index
    %c0_187 = arith.constant 0 : index
    %c0_188 = arith.constant 0 : index
    %333 = vector.load %arg18[%c0_185, %c1_186, %c0_187, %c0_188] : memref<2x2x64x32xf32, #tpu.memory_space<vmem>>, vector<1x1x64x32xf32>
    %334 = vector.shape_cast %333 : vector<1x1x64x32xf32> to vector<64x32xf32>
    %cst_189 = arith.constant dense<0.000000e+00> : vector<14x32xf32>
    %335 = tpu.matmul %332, %334, %cst_189 {dimension_numbers = #tpu.dot_dimension_numbers<[1], [0], [0], [1], [0, 0, 1, 1], [], []>} : vector<14x64xf32>, vector<64x32xf32>, vector<14x32xf32> -> vector<14x32xf32>
    %336 = vector.extract_strided_slice %77 {offsets = [11, 0], sizes = [1, 32], strides = [1, 1]} : vector<18x32xf32> to vector<1x32xf32>
    %337 = vector.broadcast %336 : vector<1x32xf32> to vector<14x32xf32>
    %338 = arith.addf %335, %337 : vector<14x32xf32>
    %cst_190 = arith.constant 5.000000e-01 : f32
    %339 = vector.broadcast %cst_190 : f32 to vector<14x32xf32>
    %340 = arith.mulf %339, %338 : vector<14x32xf32>
    %341 = arith.addf %296, %340 : vector<14x32xf32>
    %342 = vector.extract_strided_slice %77 {offsets = [8, 0], sizes = [1, 32], strides = [1, 1]} : vector<18x32xf32> to vector<1x32xf32>
    %343 = vector.extract_strided_slice %77 {offsets = [9, 0], sizes = [1, 32], strides = [1, 1]} : vector<18x32xf32> to vector<1x32xf32>
    %cst_191 = arith.constant dense<0.000000e+00> : vector<14xf32>
    %344 = vector.multi_reduction <add>, %341, %cst_191 [1] : vector<14x32xf32> to vector<14xf32>
    %345 = vector.shape_cast %344 : vector<14xf32> to vector<14x1xf32>
    %cst_192 = arith.constant 3.200000e+01 : f32
    %346 = vector.broadcast %cst_192 : f32 to vector<14x1xf32>
    %347 = arith.divf %345, %346 : vector<14x1xf32>
    %348 = vector.broadcast %347 : vector<14x1xf32> to vector<14x32xf32>
    %349 = arith.subf %341, %348 : vector<14x32xf32>
    %350 = arith.mulf %349, %349 : vector<14x32xf32>
    %cst_193 = arith.constant dense<0.000000e+00> : vector<14xf32>
    %351 = vector.multi_reduction <add>, %350, %cst_193 [1] : vector<14x32xf32> to vector<14xf32>
    %352 = vector.shape_cast %351 : vector<14xf32> to vector<14x1xf32>
    %cst_194 = arith.constant 3.200000e+01 : f32
    %353 = vector.broadcast %cst_194 : f32 to vector<14x1xf32>
    %354 = arith.divf %352, %353 : vector<14x1xf32>
    %355 = vector.broadcast %347 : vector<14x1xf32> to vector<14x32xf32>
    %356 = arith.subf %341, %355 : vector<14x32xf32>
    %cst_195 = arith.constant 9.99999974E-6 : f32
    %357 = vector.broadcast %cst_195 : f32 to vector<14x1xf32>
    %358 = arith.addf %354, %357 : vector<14x1xf32>
    %359 = math.rsqrt %358 : vector<14x1xf32>
    %360 = vector.broadcast %359 : vector<14x1xf32> to vector<14x32xf32>
    %361 = arith.mulf %356, %360 : vector<14x32xf32>
    %362 = vector.broadcast %342 : vector<1x32xf32> to vector<14x32xf32>
    %363 = arith.mulf %361, %362 : vector<14x32xf32>
    %364 = vector.broadcast %343 : vector<1x32xf32> to vector<14x32xf32>
    %365 = arith.addf %363, %364 : vector<14x32xf32>
    %c0_196 = arith.constant 0 : index
    %c0_197 = arith.constant 0 : index
    %c0_198 = arith.constant 0 : index
    %366 = vector.load %arg28[%c0_196, %c0_197, %c0_198] : memref<2x1x16xf32, #tpu.memory_space<vmem>>, vector<1x1x16xf32>
    %367 = vector.shape_cast %366 : vector<1x1x16xf32> to vector<1x16xf32>
    %c0_199 = arith.constant 0 : index
    %c0_200 = arith.constant 0 : index
    %c0_201 = arith.constant 0 : index
    %368 = vector.load %arg22[%c0_199, %c0_200, %c0_201] : memref<2x32x16xf32, #tpu.memory_space<vmem>>, vector<1x32x16xf32>
    %369 = vector.shape_cast %368 : vector<1x32x16xf32> to vector<32x16xf32>
    %cst_202 = arith.constant dense<0.000000e+00> : vector<14x16xf32>
    %370 = tpu.matmul %365, %369, %cst_202 {dimension_numbers = #tpu.dot_dimension_numbers<[1], [0], [0], [1], [0, 0, 1, 1], [], []>} : vector<14x32xf32>, vector<32x16xf32>, vector<14x16xf32> -> vector<14x16xf32>
    %371 = vector.broadcast %367 : vector<1x16xf32> to vector<14x16xf32>
    %372 = arith.addf %370, %371 : vector<14x16xf32>
    %cst_203 = arith.constant 0.000000e+00 : f32
    %373 = vector.broadcast %cst_203 : f32 to vector<14x16xf32>
    %374 = arith.maximumf %372, %373 : vector<14x16xf32>
    %c0_204 = arith.constant 0 : index
    %c0_205 = arith.constant 0 : index
    %c0_206 = arith.constant 0 : index
    %375 = vector.load %arg23[%c0_204, %c0_205, %c0_206] : memref<2x16x32xf32, #tpu.memory_space<vmem>>, vector<1x16x32xf32>
    %376 = vector.shape_cast %375 : vector<1x16x32xf32> to vector<16x32xf32>
    %cst_207 = arith.constant dense<0.000000e+00> : vector<14x32xf32>
    %377 = tpu.matmul %374, %376, %cst_207 {dimension_numbers = #tpu.dot_dimension_numbers<[1], [0], [0], [1], [0, 0, 1, 1], [], []>} : vector<14x16xf32>, vector<16x32xf32>, vector<14x32xf32> -> vector<14x32xf32>
    %378 = arith.addf %365, %377 : vector<14x32xf32>
    %379 = vector.extract_strided_slice %77 {offsets = [17, 0], sizes = [1, 32], strides = [1, 1]} : vector<18x32xf32> to vector<1x32xf32>
    %380 = vector.broadcast %379 : vector<1x32xf32> to vector<14x32xf32>
    %381 = arith.addf %378, %380 : vector<14x32xf32>
    %c1_208 = arith.constant 1 : index
    %c0_209 = arith.constant 0 : index
    %c0_210 = arith.constant 0 : index
    %382 = vector.load %arg25[%c1_208, %c0_209, %c0_210] : memref<2x18x32xf32, #tpu.memory_space<vmem>>, vector<1x18x32xf32>
    %383 = vector.shape_cast %382 : vector<1x18x32xf32> to vector<18x32xf32>
    %c1_211 = arith.constant 1 : index
    %c0_212 = arith.constant 0 : index
    %c0_213 = arith.constant 0 : index
    %384 = vector.load %arg26[%c1_211, %c0_212, %c0_213] : memref<2x2x64xf32, #tpu.memory_space<vmem>>, vector<1x2x64xf32>
    %385 = vector.shape_cast %384 : vector<1x2x64xf32> to vector<2x64xf32>
    %c1_214 = arith.constant 1 : index
    %c0_215 = arith.constant 0 : index
    %c0_216 = arith.constant 0 : index
    %386 = vector.load %arg27[%c1_214, %c0_215, %c0_216] : memref<2x5x32xf32, #tpu.memory_space<vmem>>, vector<1x5x32xf32>
    %387 = vector.shape_cast %386 : vector<1x5x32xf32> to vector<5x32xf32>
    %388 = vector.extract_strided_slice %383 {offsets = [0, 0], sizes = [1, 32], strides = [1, 1]} : vector<18x32xf32> to vector<1x32xf32>
    %389 = vector.extract_strided_slice %383 {offsets = [1, 0], sizes = [1, 32], strides = [1, 1]} : vector<18x32xf32> to vector<1x32xf32>
    %cst_217 = arith.constant dense<0.000000e+00> : vector<14xf32>
    %390 = vector.multi_reduction <add>, %381, %cst_217 [1] : vector<14x32xf32> to vector<14xf32>
    %391 = vector.shape_cast %390 : vector<14xf32> to vector<14x1xf32>
    %cst_218 = arith.constant 3.200000e+01 : f32
    %392 = vector.broadcast %cst_218 : f32 to vector<14x1xf32>
    %393 = arith.divf %391, %392 : vector<14x1xf32>
    %394 = vector.broadcast %393 : vector<14x1xf32> to vector<14x32xf32>
    %395 = arith.subf %381, %394 : vector<14x32xf32>
    %396 = arith.mulf %395, %395 : vector<14x32xf32>
    %cst_219 = arith.constant dense<0.000000e+00> : vector<14xf32>
    %397 = vector.multi_reduction <add>, %396, %cst_219 [1] : vector<14x32xf32> to vector<14xf32>
    %398 = vector.shape_cast %397 : vector<14xf32> to vector<14x1xf32>
    %cst_220 = arith.constant 3.200000e+01 : f32
    %399 = vector.broadcast %cst_220 : f32 to vector<14x1xf32>
    %400 = arith.divf %398, %399 : vector<14x1xf32>
    %401 = vector.broadcast %393 : vector<14x1xf32> to vector<14x32xf32>
    %402 = arith.subf %381, %401 : vector<14x32xf32>
    %cst_221 = arith.constant 9.99999974E-6 : f32
    %403 = vector.broadcast %cst_221 : f32 to vector<14x1xf32>
    %404 = arith.addf %400, %403 : vector<14x1xf32>
    %405 = math.rsqrt %404 : vector<14x1xf32>
    %406 = vector.broadcast %405 : vector<14x1xf32> to vector<14x32xf32>
    %407 = arith.mulf %402, %406 : vector<14x32xf32>
    %408 = vector.broadcast %388 : vector<1x32xf32> to vector<14x32xf32>
    %409 = arith.mulf %407, %408 : vector<14x32xf32>
    %410 = vector.broadcast %389 : vector<1x32xf32> to vector<14x32xf32>
    %411 = arith.addf %409, %410 : vector<14x32xf32>
    %c1_222 = arith.constant 1 : index
    %c0_223 = arith.constant 0 : index
    %c0_224 = arith.constant 0 : index
    %c0_225 = arith.constant 0 : index
    %412 = vector.load %arg17[%c1_222, %c0_223, %c0_224, %c0_225] : memref<2x2x32x64xf32, #tpu.memory_space<vmem>>, vector<1x1x32x64xf32>
    %413 = vector.shape_cast %412 : vector<1x1x32x64xf32> to vector<32x64xf32>
    %cst_226 = arith.constant dense<0.000000e+00> : vector<14x64xf32>
    %414 = tpu.matmul %411, %413, %cst_226 {dimension_numbers = #tpu.dot_dimension_numbers<[1], [0], [0], [1], [0, 0, 1, 1], [], []>} : vector<14x32xf32>, vector<32x64xf32>, vector<14x64xf32> -> vector<14x64xf32>
    %415 = vector.extract_strided_slice %385 {offsets = [0, 0], sizes = [1, 64], strides = [1, 1]} : vector<2x64xf32> to vector<1x64xf32>
    %416 = vector.broadcast %415 : vector<1x64xf32> to vector<14x64xf32>
    %417 = arith.addf %414, %416 : vector<14x64xf32>
    %418 = arith.negf %417 : vector<14x64xf32>
    %419 = math.exp %418 : vector<14x64xf32>
    %cst_227 = arith.constant 1.000000e+00 : f32
    %420 = vector.broadcast %cst_227 : f32 to vector<14x64xf32>
    %421 = arith.addf %420, %419 : vector<14x64xf32>
    %422 = arith.divf %420, %421 : vector<14x64xf32>
    %423 = arith.mulf %417, %422 : vector<14x64xf32>
    %c1_228 = arith.constant 1 : index
    %c0_229 = arith.constant 0 : index
    %c0_230 = arith.constant 0 : index
    %c0_231 = arith.constant 0 : index
    %424 = vector.load %arg18[%c1_228, %c0_229, %c0_230, %c0_231] : memref<2x2x64x32xf32, #tpu.memory_space<vmem>>, vector<1x1x64x32xf32>
    %425 = vector.shape_cast %424 : vector<1x1x64x32xf32> to vector<64x32xf32>
    %cst_232 = arith.constant dense<0.000000e+00> : vector<14x32xf32>
    %426 = tpu.matmul %423, %425, %cst_232 {dimension_numbers = #tpu.dot_dimension_numbers<[1], [0], [0], [1], [0, 0, 1, 1], [], []>} : vector<14x64xf32>, vector<64x32xf32>, vector<14x32xf32> -> vector<14x32xf32>
    %427 = vector.extract_strided_slice %383 {offsets = [10, 0], sizes = [1, 32], strides = [1, 1]} : vector<18x32xf32> to vector<1x32xf32>
    %428 = vector.broadcast %427 : vector<1x32xf32> to vector<14x32xf32>
    %429 = arith.addf %426, %428 : vector<14x32xf32>
    %cst_233 = arith.constant 5.000000e-01 : f32
    %430 = vector.broadcast %cst_233 : f32 to vector<14x32xf32>
    %431 = arith.mulf %430, %429 : vector<14x32xf32>
    %432 = arith.addf %381, %431 : vector<14x32xf32>
    %433 = vector.extract_strided_slice %383 {offsets = [2, 0], sizes = [1, 32], strides = [1, 1]} : vector<18x32xf32> to vector<1x32xf32>
    %434 = vector.extract_strided_slice %383 {offsets = [3, 0], sizes = [1, 32], strides = [1, 1]} : vector<18x32xf32> to vector<1x32xf32>
    %cst_234 = arith.constant dense<0.000000e+00> : vector<14xf32>
    %435 = vector.multi_reduction <add>, %432, %cst_234 [1] : vector<14x32xf32> to vector<14xf32>
    %436 = vector.shape_cast %435 : vector<14xf32> to vector<14x1xf32>
    %cst_235 = arith.constant 3.200000e+01 : f32
    %437 = vector.broadcast %cst_235 : f32 to vector<14x1xf32>
    %438 = arith.divf %436, %437 : vector<14x1xf32>
    %439 = vector.broadcast %438 : vector<14x1xf32> to vector<14x32xf32>
    %440 = arith.subf %432, %439 : vector<14x32xf32>
    %441 = arith.mulf %440, %440 : vector<14x32xf32>
    %cst_236 = arith.constant dense<0.000000e+00> : vector<14xf32>
    %442 = vector.multi_reduction <add>, %441, %cst_236 [1] : vector<14x32xf32> to vector<14xf32>
    %443 = vector.shape_cast %442 : vector<14xf32> to vector<14x1xf32>
    %cst_237 = arith.constant 3.200000e+01 : f32
    %444 = vector.broadcast %cst_237 : f32 to vector<14x1xf32>
    %445 = arith.divf %443, %444 : vector<14x1xf32>
    %446 = vector.broadcast %438 : vector<14x1xf32> to vector<14x32xf32>
    %447 = arith.subf %432, %446 : vector<14x32xf32>
    %cst_238 = arith.constant 9.99999974E-6 : f32
    %448 = vector.broadcast %cst_238 : f32 to vector<14x1xf32>
    %449 = arith.addf %445, %448 : vector<14x1xf32>
    %450 = math.rsqrt %449 : vector<14x1xf32>
    %451 = vector.broadcast %450 : vector<14x1xf32> to vector<14x32xf32>
    %452 = arith.mulf %447, %451 : vector<14x32xf32>
    %453 = vector.broadcast %433 : vector<1x32xf32> to vector<14x32xf32>
    %454 = arith.mulf %452, %453 : vector<14x32xf32>
    %455 = vector.broadcast %434 : vector<1x32xf32> to vector<14x32xf32>
    %456 = arith.addf %454, %455 : vector<14x32xf32>
    %c1_239 = arith.constant 1 : index
    %c0_240 = arith.constant 0 : index
    %c0_241 = arith.constant 0 : index
    %c0_242 = arith.constant 0 : index
    %457 = vector.load %arg19[%c1_239, %c0_240, %c0_241, %c0_242] : memref<2x4x32x32xf32, #tpu.memory_space<vmem>>, vector<1x1x32x32xf32>
    %458 = vector.shape_cast %457 : vector<1x1x32x32xf32> to vector<32x32xf32>
    %cst_243 = arith.constant dense<0.000000e+00> : vector<14x32xf32>
    %459 = tpu.matmul %456, %458, %cst_243 {dimension_numbers = #tpu.dot_dimension_numbers<[1], [0], [0], [1], [0, 0, 1, 1], [], []>} : vector<14x32xf32>, vector<32x32xf32>, vector<14x32xf32> -> vector<14x32xf32>
    %460 = vector.extract_strided_slice %383 {offsets = [12, 0], sizes = [1, 32], strides = [1, 1]} : vector<18x32xf32> to vector<1x32xf32>
    %461 = vector.broadcast %460 : vector<1x32xf32> to vector<14x32xf32>
    %462 = arith.addf %459, %461 : vector<14x32xf32>
    %c1_244 = arith.constant 1 : index
    %c1_245 = arith.constant 1 : index
    %c0_246 = arith.constant 0 : index
    %c0_247 = arith.constant 0 : index
    %463 = vector.load %arg19[%c1_244, %c1_245, %c0_246, %c0_247] : memref<2x4x32x32xf32, #tpu.memory_space<vmem>>, vector<1x1x32x32xf32>
    %464 = vector.shape_cast %463 : vector<1x1x32x32xf32> to vector<32x32xf32>
    %cst_248 = arith.constant dense<0.000000e+00> : vector<14x32xf32>
    %465 = tpu.matmul %456, %464, %cst_248 {dimension_numbers = #tpu.dot_dimension_numbers<[1], [0], [0], [1], [0, 0, 1, 1], [], []>} : vector<14x32xf32>, vector<32x32xf32>, vector<14x32xf32> -> vector<14x32xf32>
    %466 = vector.extract_strided_slice %383 {offsets = [13, 0], sizes = [1, 32], strides = [1, 1]} : vector<18x32xf32> to vector<1x32xf32>
    %467 = vector.broadcast %466 : vector<1x32xf32> to vector<14x32xf32>
    %468 = arith.addf %465, %467 : vector<14x32xf32>
    %c1_249 = arith.constant 1 : index
    %c2_250 = arith.constant 2 : index
    %c0_251 = arith.constant 0 : index
    %c0_252 = arith.constant 0 : index
    %469 = vector.load %arg19[%c1_249, %c2_250, %c0_251, %c0_252] : memref<2x4x32x32xf32, #tpu.memory_space<vmem>>, vector<1x1x32x32xf32>
    %470 = vector.shape_cast %469 : vector<1x1x32x32xf32> to vector<32x32xf32>
    %cst_253 = arith.constant dense<0.000000e+00> : vector<14x32xf32>
    %471 = tpu.matmul %456, %470, %cst_253 {dimension_numbers = #tpu.dot_dimension_numbers<[1], [0], [0], [1], [0, 0, 1, 1], [], []>} : vector<14x32xf32>, vector<32x32xf32>, vector<14x32xf32> -> vector<14x32xf32>
    %472 = vector.extract_strided_slice %383 {offsets = [14, 0], sizes = [1, 32], strides = [1, 1]} : vector<18x32xf32> to vector<1x32xf32>
    %473 = vector.broadcast %472 : vector<1x32xf32> to vector<14x32xf32>
    %474 = arith.addf %471, %473 : vector<14x32xf32>
    %cst_254 = arith.constant dense<0.000000e+00> : vector<56x32xf32>
    %475 = tpu.matmul %72, %468, %cst_254 {dimension_numbers = #tpu.dot_dimension_numbers<[1], [0], [0], [1], [0, 0, 1, 1], [], []>} : vector<56x14xf32>, vector<14x32xf32>, vector<56x32xf32> -> vector<56x32xf32>
    %476 = arith.mulf %475, %73 : vector<56x32xf32>
    %cst_255 = arith.constant dense<0.000000e+00> : vector<56x32xf32>
    %477 = tpu.matmul %72, %474, %cst_255 {dimension_numbers = #tpu.dot_dimension_numbers<[1], [0], [0], [1], [0, 0, 1, 1], [], []>} : vector<56x14xf32>, vector<14x32xf32>, vector<56x32xf32> -> vector<56x32xf32>
    %478 = arith.mulf %477, %73 : vector<56x32xf32>
    %cst_256 = arith.constant 0.353553385 : f32
    %479 = vector.broadcast %cst_256 : f32 to vector<14x32xf32>
    %480 = arith.mulf %462, %479 : vector<14x32xf32>
    %cst_257 = arith.constant dense<0.000000e+00> : vector<14x56xf32>
    %481 = tpu.matmul %480, %476, %cst_257 {dimension_numbers = #tpu.dot_dimension_numbers<[1], [1], [0], [0], [0, 0, 1, 0], [], []>} : vector<14x32xf32>, vector<56x32xf32>, vector<14x56xf32> -> vector<14x56xf32>
    %482 = arith.addf %481, %75 : vector<14x56xf32>
    %cst_258 = arith.constant dense<0xFF800000> : vector<14xf32>
    %483 = vector.multi_reduction <maximumf>, %482, %cst_258 [1] : vector<14x56xf32> to vector<14xf32>
    %484 = vector.shape_cast %483 : vector<14xf32> to vector<14x1xf32>
    %485 = vector.broadcast %484 : vector<14x1xf32> to vector<14x56xf32>
    %486 = arith.subf %482, %485 : vector<14x56xf32>
    %487 = math.exp %486 : vector<14x56xf32>
    %cst_259 = arith.constant dense<0.000000e+00> : vector<14x56xf32>
    %488 = tpu.matmul %487, %74, %cst_259 {dimension_numbers = #tpu.dot_dimension_numbers<[1], [0], [0], [1], [0, 0, 1, 1], [], []>} : vector<14x56xf32>, vector<56x56xf32>, vector<14x56xf32> -> vector<14x56xf32>
    %489 = tpu.reciprocal %488 {approx = true} : vector<14x56xf32> -> vector<14x56xf32>
    %490 = arith.mulf %487, %489 : vector<14x56xf32>
    %cst_260 = arith.constant dense<0.000000e+00> : vector<14x32xf32>
    %491 = tpu.matmul %490, %478, %cst_260 {dimension_numbers = #tpu.dot_dimension_numbers<[1], [0], [0], [1], [0, 0, 1, 1], [], []>} : vector<14x56xf32>, vector<56x32xf32>, vector<14x32xf32> -> vector<14x32xf32>
    %c1_261 = arith.constant 1 : index
    %c3_262 = arith.constant 3 : index
    %c0_263 = arith.constant 0 : index
    %c0_264 = arith.constant 0 : index
    %492 = vector.load %arg19[%c1_261, %c3_262, %c0_263, %c0_264] : memref<2x4x32x32xf32, #tpu.memory_space<vmem>>, vector<1x1x32x32xf32>
    %493 = vector.shape_cast %492 : vector<1x1x32x32xf32> to vector<32x32xf32>
    %cst_265 = arith.constant dense<0.000000e+00> : vector<14x32xf32>
    %494 = tpu.matmul %491, %493, %cst_265 {dimension_numbers = #tpu.dot_dimension_numbers<[1], [0], [0], [1], [0, 0, 1, 1], [], []>} : vector<14x32xf32>, vector<32x32xf32>, vector<14x32xf32> -> vector<14x32xf32>
    %495 = arith.addf %432, %494 : vector<14x32xf32>
    %496 = vector.extract_strided_slice %383 {offsets = [15, 0], sizes = [1, 32], strides = [1, 1]} : vector<18x32xf32> to vector<1x32xf32>
    %497 = vector.broadcast %496 : vector<1x32xf32> to vector<14x32xf32>
    %498 = arith.addf %495, %497 : vector<14x32xf32>
    %499 = vector.extract_strided_slice %383 {offsets = [4, 0], sizes = [1, 32], strides = [1, 1]} : vector<18x32xf32> to vector<1x32xf32>
    %500 = vector.extract_strided_slice %383 {offsets = [5, 0], sizes = [1, 32], strides = [1, 1]} : vector<18x32xf32> to vector<1x32xf32>
    %cst_266 = arith.constant dense<0.000000e+00> : vector<14xf32>
    %501 = vector.multi_reduction <add>, %498, %cst_266 [1] : vector<14x32xf32> to vector<14xf32>
    %502 = vector.shape_cast %501 : vector<14xf32> to vector<14x1xf32>
    %cst_267 = arith.constant 3.200000e+01 : f32
    %503 = vector.broadcast %cst_267 : f32 to vector<14x1xf32>
    %504 = arith.divf %502, %503 : vector<14x1xf32>
    %505 = vector.broadcast %504 : vector<14x1xf32> to vector<14x32xf32>
    %506 = arith.subf %498, %505 : vector<14x32xf32>
    %507 = arith.mulf %506, %506 : vector<14x32xf32>
    %cst_268 = arith.constant dense<0.000000e+00> : vector<14xf32>
    %508 = vector.multi_reduction <add>, %507, %cst_268 [1] : vector<14x32xf32> to vector<14xf32>
    %509 = vector.shape_cast %508 : vector<14xf32> to vector<14x1xf32>
    %cst_269 = arith.constant 3.200000e+01 : f32
    %510 = vector.broadcast %cst_269 : f32 to vector<14x1xf32>
    %511 = arith.divf %509, %510 : vector<14x1xf32>
    %512 = vector.broadcast %504 : vector<14x1xf32> to vector<14x32xf32>
    %513 = arith.subf %498, %512 : vector<14x32xf32>
    %cst_270 = arith.constant 9.99999974E-6 : f32
    %514 = vector.broadcast %cst_270 : f32 to vector<14x1xf32>
    %515 = arith.addf %511, %514 : vector<14x1xf32>
    %516 = math.rsqrt %515 : vector<14x1xf32>
    %517 = vector.broadcast %516 : vector<14x1xf32> to vector<14x32xf32>
    %518 = arith.mulf %513, %517 : vector<14x32xf32>
    %519 = vector.broadcast %499 : vector<1x32xf32> to vector<14x32xf32>
    %520 = arith.mulf %518, %519 : vector<14x32xf32>
    %521 = vector.broadcast %500 : vector<1x32xf32> to vector<14x32xf32>
    %522 = arith.addf %520, %521 : vector<14x32xf32>
    %c1_271 = arith.constant 1 : index
    %c0_272 = arith.constant 0 : index
    %c0_273 = arith.constant 0 : index
    %c0_274 = arith.constant 0 : index
    %523 = vector.load %arg20[%c1_271, %c0_272, %c0_273, %c0_274] : memref<2x2x32x32xf32, #tpu.memory_space<vmem>>, vector<1x1x32x32xf32>
    %524 = vector.shape_cast %523 : vector<1x1x32x32xf32> to vector<32x32xf32>
    %cst_275 = arith.constant dense<0.000000e+00> : vector<14x32xf32>
    %525 = tpu.matmul %522, %524, %cst_275 {dimension_numbers = #tpu.dot_dimension_numbers<[1], [0], [0], [1], [0, 0, 1, 1], [], []>} : vector<14x32xf32>, vector<32x32xf32>, vector<14x32xf32> -> vector<14x32xf32>
    %526 = vector.extract_strided_slice %387 {offsets = [2, 0], sizes = [1, 32], strides = [1, 1]} : vector<5x32xf32> to vector<1x32xf32>
    %527 = vector.broadcast %526 : vector<1x32xf32> to vector<14x32xf32>
    %528 = arith.addf %525, %527 : vector<14x32xf32>
    %c1_276 = arith.constant 1 : index
    %c1_277 = arith.constant 1 : index
    %c0_278 = arith.constant 0 : index
    %c0_279 = arith.constant 0 : index
    %529 = vector.load %arg20[%c1_276, %c1_277, %c0_278, %c0_279] : memref<2x2x32x32xf32, #tpu.memory_space<vmem>>, vector<1x1x32x32xf32>
    %530 = vector.shape_cast %529 : vector<1x1x32x32xf32> to vector<32x32xf32>
    %cst_280 = arith.constant dense<0.000000e+00> : vector<14x32xf32>
    %531 = tpu.matmul %522, %530, %cst_280 {dimension_numbers = #tpu.dot_dimension_numbers<[1], [0], [0], [1], [0, 0, 1, 1], [], []>} : vector<14x32xf32>, vector<32x32xf32>, vector<14x32xf32> -> vector<14x32xf32>
    %532 = vector.extract_strided_slice %387 {offsets = [3, 0], sizes = [1, 32], strides = [1, 1]} : vector<5x32xf32> to vector<1x32xf32>
    %533 = vector.broadcast %532 : vector<1x32xf32> to vector<14x32xf32>
    %534 = arith.addf %531, %533 : vector<14x32xf32>
    %535 = arith.negf %534 : vector<14x32xf32>
    %536 = math.exp %535 : vector<14x32xf32>
    %cst_281 = arith.constant 1.000000e+00 : f32
    %537 = vector.broadcast %cst_281 : f32 to vector<14x32xf32>
    %538 = arith.addf %537, %536 : vector<14x32xf32>
    %539 = arith.divf %537, %538 : vector<14x32xf32>
    %540 = arith.mulf %528, %539 : vector<14x32xf32>
    %c1_282 = arith.constant 1 : index
    %c0_283 = arith.constant 0 : index
    %c0_284 = arith.constant 0 : index
    %541 = vector.load %arg24[%c1_282, %c0_283, %c0_284] : memref<2x3x32xf32, #tpu.memory_space<vmem>>, vector<1x3x32xf32>
    %542 = vector.shape_cast %541 : vector<1x3x32xf32> to vector<3x32xf32>
    %c0_285 = arith.constant 0 : index
    %c0_286 = arith.constant 0 : index
    %c0_287 = arith.constant 0 : index
    %543 = vector.load %arg16[%c0_285, %c0_286, %c0_287] : memref<3x14x14xf32, #tpu.memory_space<vmem>>, vector<1x14x14xf32>
    %544 = vector.shape_cast %543 : vector<1x14x14xf32> to vector<14x14xf32>
    %cst_288 = arith.constant dense<0.000000e+00> : vector<14x32xf32>
    %545 = tpu.matmul %544, %540, %cst_288 {dimension_numbers = #tpu.dot_dimension_numbers<[1], [0], [0], [1], [0, 0, 1, 1], [], []>} : vector<14x14xf32>, vector<14x32xf32>, vector<14x32xf32> -> vector<14x32xf32>
    %546 = vector.extract_strided_slice %542 {offsets = [0, 0], sizes = [1, 32], strides = [1, 1]} : vector<3x32xf32> to vector<1x32xf32>
    %547 = vector.broadcast %546 : vector<1x32xf32> to vector<14x32xf32>
    %548 = arith.mulf %545, %547 : vector<14x32xf32>
    %c1_289 = arith.constant 1 : index
    %c0_290 = arith.constant 0 : index
    %c0_291 = arith.constant 0 : index
    %549 = vector.load %arg16[%c1_289, %c0_290, %c0_291] : memref<3x14x14xf32, #tpu.memory_space<vmem>>, vector<1x14x14xf32>
    %550 = vector.shape_cast %549 : vector<1x14x14xf32> to vector<14x14xf32>
    %cst_292 = arith.constant dense<0.000000e+00> : vector<14x32xf32>
    %551 = tpu.matmul %550, %540, %cst_292 {dimension_numbers = #tpu.dot_dimension_numbers<[1], [0], [0], [1], [0, 0, 1, 1], [], []>} : vector<14x14xf32>, vector<14x32xf32>, vector<14x32xf32> -> vector<14x32xf32>
    %552 = vector.extract_strided_slice %542 {offsets = [1, 0], sizes = [1, 32], strides = [1, 1]} : vector<3x32xf32> to vector<1x32xf32>
    %553 = vector.broadcast %552 : vector<1x32xf32> to vector<14x32xf32>
    %554 = arith.mulf %551, %553 : vector<14x32xf32>
    %555 = arith.addf %548, %554 : vector<14x32xf32>
    %c2_293 = arith.constant 2 : index
    %c0_294 = arith.constant 0 : index
    %c0_295 = arith.constant 0 : index
    %556 = vector.load %arg16[%c2_293, %c0_294, %c0_295] : memref<3x14x14xf32, #tpu.memory_space<vmem>>, vector<1x14x14xf32>
    %557 = vector.shape_cast %556 : vector<1x14x14xf32> to vector<14x14xf32>
    %cst_296 = arith.constant dense<0.000000e+00> : vector<14x32xf32>
    %558 = tpu.matmul %557, %540, %cst_296 {dimension_numbers = #tpu.dot_dimension_numbers<[1], [0], [0], [1], [0, 0, 1, 1], [], []>} : vector<14x14xf32>, vector<14x32xf32>, vector<14x32xf32> -> vector<14x32xf32>
    %559 = vector.extract_strided_slice %542 {offsets = [2, 0], sizes = [1, 32], strides = [1, 1]} : vector<3x32xf32> to vector<1x32xf32>
    %560 = vector.broadcast %559 : vector<1x32xf32> to vector<14x32xf32>
    %561 = arith.mulf %558, %560 : vector<14x32xf32>
    %562 = arith.addf %555, %561 : vector<14x32xf32>
    %563 = vector.extract_strided_slice %387 {offsets = [4, 0], sizes = [1, 32], strides = [1, 1]} : vector<5x32xf32> to vector<1x32xf32>
    %564 = vector.broadcast %563 : vector<1x32xf32> to vector<14x32xf32>
    %565 = arith.addf %562, %564 : vector<14x32xf32>
    %566 = vector.extract_strided_slice %387 {offsets = [0, 0], sizes = [1, 32], strides = [1, 1]} : vector<5x32xf32> to vector<1x32xf32>
    %567 = vector.extract_strided_slice %387 {offsets = [1, 0], sizes = [1, 32], strides = [1, 1]} : vector<5x32xf32> to vector<1x32xf32>
    %cst_297 = arith.constant dense<0.000000e+00> : vector<14xf32>
    %568 = vector.multi_reduction <add>, %565, %cst_297 [1] : vector<14x32xf32> to vector<14xf32>
    %569 = vector.shape_cast %568 : vector<14xf32> to vector<14x1xf32>
    %cst_298 = arith.constant 3.200000e+01 : f32
    %570 = vector.broadcast %cst_298 : f32 to vector<14x1xf32>
    %571 = arith.divf %569, %570 : vector<14x1xf32>
    %572 = vector.broadcast %571 : vector<14x1xf32> to vector<14x32xf32>
    %573 = arith.subf %565, %572 : vector<14x32xf32>
    %574 = arith.mulf %573, %573 : vector<14x32xf32>
    %cst_299 = arith.constant dense<0.000000e+00> : vector<14xf32>
    %575 = vector.multi_reduction <add>, %574, %cst_299 [1] : vector<14x32xf32> to vector<14xf32>
    %576 = vector.shape_cast %575 : vector<14xf32> to vector<14x1xf32>
    %cst_300 = arith.constant 3.200000e+01 : f32
    %577 = vector.broadcast %cst_300 : f32 to vector<14x1xf32>
    %578 = arith.divf %576, %577 : vector<14x1xf32>
    %579 = vector.broadcast %571 : vector<14x1xf32> to vector<14x32xf32>
    %580 = arith.subf %565, %579 : vector<14x32xf32>
    %cst_301 = arith.constant 9.99999974E-6 : f32
    %581 = vector.broadcast %cst_301 : f32 to vector<14x1xf32>
    %582 = arith.addf %578, %581 : vector<14x1xf32>
    %583 = math.rsqrt %582 : vector<14x1xf32>
    %584 = vector.broadcast %583 : vector<14x1xf32> to vector<14x32xf32>
    %585 = arith.mulf %580, %584 : vector<14x32xf32>
    %586 = vector.broadcast %566 : vector<1x32xf32> to vector<14x32xf32>
    %587 = arith.mulf %585, %586 : vector<14x32xf32>
    %588 = vector.broadcast %567 : vector<1x32xf32> to vector<14x32xf32>
    %589 = arith.addf %587, %588 : vector<14x32xf32>
    %590 = arith.negf %589 : vector<14x32xf32>
    %591 = math.exp %590 : vector<14x32xf32>
    %cst_302 = arith.constant 1.000000e+00 : f32
    %592 = vector.broadcast %cst_302 : f32 to vector<14x32xf32>
    %593 = arith.addf %592, %591 : vector<14x32xf32>
    %594 = arith.divf %592, %593 : vector<14x32xf32>
    %595 = arith.mulf %589, %594 : vector<14x32xf32>
    %c1_303 = arith.constant 1 : index
    %c0_304 = arith.constant 0 : index
    %c0_305 = arith.constant 0 : index
    %596 = vector.load %arg21[%c1_303, %c0_304, %c0_305] : memref<2x32x32xf32, #tpu.memory_space<vmem>>, vector<1x32x32xf32>
    %597 = vector.shape_cast %596 : vector<1x32x32xf32> to vector<32x32xf32>
    %cst_306 = arith.constant dense<0.000000e+00> : vector<14x32xf32>
    %598 = tpu.matmul %595, %597, %cst_306 {dimension_numbers = #tpu.dot_dimension_numbers<[1], [0], [0], [1], [0, 0, 1, 1], [], []>} : vector<14x32xf32>, vector<32x32xf32>, vector<14x32xf32> -> vector<14x32xf32>
    %599 = arith.addf %498, %598 : vector<14x32xf32>
    %600 = vector.extract_strided_slice %383 {offsets = [16, 0], sizes = [1, 32], strides = [1, 1]} : vector<18x32xf32> to vector<1x32xf32>
    %601 = vector.broadcast %600 : vector<1x32xf32> to vector<14x32xf32>
    %602 = arith.addf %599, %601 : vector<14x32xf32>
    %603 = vector.extract_strided_slice %383 {offsets = [6, 0], sizes = [1, 32], strides = [1, 1]} : vector<18x32xf32> to vector<1x32xf32>
    %604 = vector.extract_strided_slice %383 {offsets = [7, 0], sizes = [1, 32], strides = [1, 1]} : vector<18x32xf32> to vector<1x32xf32>
    %cst_307 = arith.constant dense<0.000000e+00> : vector<14xf32>
    %605 = vector.multi_reduction <add>, %602, %cst_307 [1] : vector<14x32xf32> to vector<14xf32>
    %606 = vector.shape_cast %605 : vector<14xf32> to vector<14x1xf32>
    %cst_308 = arith.constant 3.200000e+01 : f32
    %607 = vector.broadcast %cst_308 : f32 to vector<14x1xf32>
    %608 = arith.divf %606, %607 : vector<14x1xf32>
    %609 = vector.broadcast %608 : vector<14x1xf32> to vector<14x32xf32>
    %610 = arith.subf %602, %609 : vector<14x32xf32>
    %611 = arith.mulf %610, %610 : vector<14x32xf32>
    %cst_309 = arith.constant dense<0.000000e+00> : vector<14xf32>
    %612 = vector.multi_reduction <add>, %611, %cst_309 [1] : vector<14x32xf32> to vector<14xf32>
    %613 = vector.shape_cast %612 : vector<14xf32> to vector<14x1xf32>
    %cst_310 = arith.constant 3.200000e+01 : f32
    %614 = vector.broadcast %cst_310 : f32 to vector<14x1xf32>
    %615 = arith.divf %613, %614 : vector<14x1xf32>
    %616 = vector.broadcast %608 : vector<14x1xf32> to vector<14x32xf32>
    %617 = arith.subf %602, %616 : vector<14x32xf32>
    %cst_311 = arith.constant 9.99999974E-6 : f32
    %618 = vector.broadcast %cst_311 : f32 to vector<14x1xf32>
    %619 = arith.addf %615, %618 : vector<14x1xf32>
    %620 = math.rsqrt %619 : vector<14x1xf32>
    %621 = vector.broadcast %620 : vector<14x1xf32> to vector<14x32xf32>
    %622 = arith.mulf %617, %621 : vector<14x32xf32>
    %623 = vector.broadcast %603 : vector<1x32xf32> to vector<14x32xf32>
    %624 = arith.mulf %622, %623 : vector<14x32xf32>
    %625 = vector.broadcast %604 : vector<1x32xf32> to vector<14x32xf32>
    %626 = arith.addf %624, %625 : vector<14x32xf32>
    %c1_312 = arith.constant 1 : index
    %c1_313 = arith.constant 1 : index
    %c0_314 = arith.constant 0 : index
    %c0_315 = arith.constant 0 : index
    %627 = vector.load %arg17[%c1_312, %c1_313, %c0_314, %c0_315] : memref<2x2x32x64xf32, #tpu.memory_space<vmem>>, vector<1x1x32x64xf32>
    %628 = vector.shape_cast %627 : vector<1x1x32x64xf32> to vector<32x64xf32>
    %cst_316 = arith.constant dense<0.000000e+00> : vector<14x64xf32>
    %629 = tpu.matmul %626, %628, %cst_316 {dimension_numbers = #tpu.dot_dimension_numbers<[1], [0], [0], [1], [0, 0, 1, 1], [], []>} : vector<14x32xf32>, vector<32x64xf32>, vector<14x64xf32> -> vector<14x64xf32>
    %630 = vector.extract_strided_slice %385 {offsets = [1, 0], sizes = [1, 64], strides = [1, 1]} : vector<2x64xf32> to vector<1x64xf32>
    %631 = vector.broadcast %630 : vector<1x64xf32> to vector<14x64xf32>
    %632 = arith.addf %629, %631 : vector<14x64xf32>
    %633 = arith.negf %632 : vector<14x64xf32>
    %634 = math.exp %633 : vector<14x64xf32>
    %cst_317 = arith.constant 1.000000e+00 : f32
    %635 = vector.broadcast %cst_317 : f32 to vector<14x64xf32>
    %636 = arith.addf %635, %634 : vector<14x64xf32>
    %637 = arith.divf %635, %636 : vector<14x64xf32>
    %638 = arith.mulf %632, %637 : vector<14x64xf32>
    %c1_318 = arith.constant 1 : index
    %c1_319 = arith.constant 1 : index
    %c0_320 = arith.constant 0 : index
    %c0_321 = arith.constant 0 : index
    %639 = vector.load %arg18[%c1_318, %c1_319, %c0_320, %c0_321] : memref<2x2x64x32xf32, #tpu.memory_space<vmem>>, vector<1x1x64x32xf32>
    %640 = vector.shape_cast %639 : vector<1x1x64x32xf32> to vector<64x32xf32>
    %cst_322 = arith.constant dense<0.000000e+00> : vector<14x32xf32>
    %641 = tpu.matmul %638, %640, %cst_322 {dimension_numbers = #tpu.dot_dimension_numbers<[1], [0], [0], [1], [0, 0, 1, 1], [], []>} : vector<14x64xf32>, vector<64x32xf32>, vector<14x32xf32> -> vector<14x32xf32>
    %642 = vector.extract_strided_slice %383 {offsets = [11, 0], sizes = [1, 32], strides = [1, 1]} : vector<18x32xf32> to vector<1x32xf32>
    %643 = vector.broadcast %642 : vector<1x32xf32> to vector<14x32xf32>
    %644 = arith.addf %641, %643 : vector<14x32xf32>
    %cst_323 = arith.constant 5.000000e-01 : f32
    %645 = vector.broadcast %cst_323 : f32 to vector<14x32xf32>
    %646 = arith.mulf %645, %644 : vector<14x32xf32>
    %647 = arith.addf %602, %646 : vector<14x32xf32>
    %648 = vector.extract_strided_slice %383 {offsets = [8, 0], sizes = [1, 32], strides = [1, 1]} : vector<18x32xf32> to vector<1x32xf32>
    %649 = vector.extract_strided_slice %383 {offsets = [9, 0], sizes = [1, 32], strides = [1, 1]} : vector<18x32xf32> to vector<1x32xf32>
    %cst_324 = arith.constant dense<0.000000e+00> : vector<14xf32>
    %650 = vector.multi_reduction <add>, %647, %cst_324 [1] : vector<14x32xf32> to vector<14xf32>
    %651 = vector.shape_cast %650 : vector<14xf32> to vector<14x1xf32>
    %cst_325 = arith.constant 3.200000e+01 : f32
    %652 = vector.broadcast %cst_325 : f32 to vector<14x1xf32>
    %653 = arith.divf %651, %652 : vector<14x1xf32>
    %654 = vector.broadcast %653 : vector<14x1xf32> to vector<14x32xf32>
    %655 = arith.subf %647, %654 : vector<14x32xf32>
    %656 = arith.mulf %655, %655 : vector<14x32xf32>
    %cst_326 = arith.constant dense<0.000000e+00> : vector<14xf32>
    %657 = vector.multi_reduction <add>, %656, %cst_326 [1] : vector<14x32xf32> to vector<14xf32>
    %658 = vector.shape_cast %657 : vector<14xf32> to vector<14x1xf32>
    %cst_327 = arith.constant 3.200000e+01 : f32
    %659 = vector.broadcast %cst_327 : f32 to vector<14x1xf32>
    %660 = arith.divf %658, %659 : vector<14x1xf32>
    %661 = vector.broadcast %653 : vector<14x1xf32> to vector<14x32xf32>
    %662 = arith.subf %647, %661 : vector<14x32xf32>
    %cst_328 = arith.constant 9.99999974E-6 : f32
    %663 = vector.broadcast %cst_328 : f32 to vector<14x1xf32>
    %664 = arith.addf %660, %663 : vector<14x1xf32>
    %665 = math.rsqrt %664 : vector<14x1xf32>
    %666 = vector.broadcast %665 : vector<14x1xf32> to vector<14x32xf32>
    %667 = arith.mulf %662, %666 : vector<14x32xf32>
    %668 = vector.broadcast %648 : vector<1x32xf32> to vector<14x32xf32>
    %669 = arith.mulf %667, %668 : vector<14x32xf32>
    %670 = vector.broadcast %649 : vector<1x32xf32> to vector<14x32xf32>
    %671 = arith.addf %669, %670 : vector<14x32xf32>
    %c0_329 = arith.constant 0 : index
    %c0_330 = arith.constant 0 : index
    %672 = vector.load %arg29[%c0_329, %c0_330] : memref<14x32xf32, #tpu.memory_space<vmem>>, vector<14x32xf32>
    tpu.vector_store %arg29[%c0_329, %c0_330], %671 {strides = array<i32>} : memref<14x32xf32, #tpu.memory_space<vmem>>, vector<14x32xf32>,
    return
  }
}

</mosaic_0001>

<bundles_post_ra>
// kernel: tile.14
= control target key start
LH: loop header
LB: loop body
LE: loop exit
PB: predicated region body
PF: predicated region fallthrough
CT: control target
= control target key end

     0   :  { %s13_s8 = smov 3  ;;  %s44_s9 = smov 96   ;;  %vm4_vm0 = vcmask 261120   ;;  %vm10_vm1 = vcmask 1048320   ;;  %vm17_vm2 = vcmask 785920   ;;  %vm24_vm3 = vcmask 523520   ;;  %s75_s0 = inlined_call_operand.vmem [shape: f32[7,32], index: 0, kind: input, shape index: {}]   ;;  %s76_s1 = inlined_call_operand.vmem [shape: f32[1,224], index: 1, kind: output, shape index: {}]  }
   0x1   :  { %v37_v0 = vld [vmem:[%s75_s0 + $0x3] sm:$0x1]   ;;  %s20_s10 = smov 3  ;;  %v38_v1 = vld [vmem:[%s75_s0 + $0x2] ss:$4 sm:%s13_s8]   ;;  %s2_s15 = smov 3 }
   0x2   :  { %8 = vrot.lane.b32.xlu0 %v37_v0, %s44_s9  ;;  %v39_v2 = vld [vmem:[%s75_s0 + $0x1] ss:$4 sm:%s20_s10]   ;;  %s45_s16 = smov 32  }
   0x3   :  { %22 = vrot.lane.b32.xlu1 %v39_v2, %s45_s16  ;;  %v3_v3 = vld [vmem:[%s75_s0] ss:$4 sm:%s2_s15]   ;;  %s46_s0 = smov 64  }
   0x4   :  { %5 = vst.msk [vmem:[#allocation0] ss:$8 sm:$0x3] %vm4_vm0, %v3_v3  }
   0x6   :  { %15 = vrot.lane.b32.xlu0 %v38_v1, %s46_s0 }
  0x74   :  { %v9_v4 = vpop.permute.xlu0 %8  }
  0x75   :  { %11 = vst.msk [vmem:[#allocation0] sm:$0x1] %vm10_vm1, %v9_v4   ;;  %v23_v5 = vpop.permute.xlu1 %22  }
  0x78   :  { %v16_v6 = vpop.permute.xlu0 %15  }
  0x79   :  { %18 = vst.msk [vmem:[#allocation0] ss:$8 sm:$0x3] %vm17_vm2, %v16_v6  }
  0x7a   :  { %25 = vst.msk [vmem:[#allocation0] ss:$8 sm:$0x3] %vm24_vm3, %v23_v5  }
  0x81   :  { %v29_v7 = vld [vmem:[#allocation0] sm:$0x1]  ;;  %v33_v8 = vld [vmem:[#allocation0 + $0x8] sm:$0x1] }
  0x82   :  { %31 = vst [vmem:[%s76_s1] sm:$0x1] %v29_v7  ;;  %40 = vst [vmem:[%s76_s1 + $0x1] sm:$0x1] %v33_v8 }

// kernel: tile.18
= control target key start
LH: loop header
LB: loop body
LE: loop exit
PB: predicated region body
PF: predicated region fallthrough
CT: control target
= control target key end

     0   :  { %s22_s0 = inlined_call_operand.vmem [shape: f32[32], index: 0, kind: input, shape index: {}]   ;;  %s23_s1 = inlined_call_operand.vmem [shape: f32[3,32], index: 1, kind: output, shape index: {}]  }
   0x1   :  { %v4_v0 = vld [vmem:[%s22_s0] ss:$0 sm:$0xff] }
   0x2   :  { %5 = vst [vmem:[%s23_s1] sm:$0xf] %v4_v0 }

// kernel: tile.19
= control target key start
LH: loop header
LB: loop body
LE: loop exit
PB: predicated region body
PF: predicated region fallthrough
CT: control target
= control target key end

     0   :  { %vm7_vm0 = vcmask 261120   ;;  %s30_s8 = smov 32   ;;  %vm13_vm1 = vcmask 785920   ;;  %vm19_vm2 = vcmask 523520   ;;  %s47_s0 = inlined_call_operand.vmem [shape: f32[3,32], index: 0, kind: input, shape index: {}]   ;;  %s48_s1 = inlined_call_operand.vmem [shape: f32[1,96], index: 1, kind: output, shape index: {}]  }
   0x1   :  { %v4_v0 = vld [vmem:[%s47_s0] sm:$0xf]  ;;  %s29_s0 = smov 64  }
   0x2   :  { %5 = vst [vmem:[#allocation1] sm:$0xf] %v4_v0 }
   0x9   :  { %v10_v1 = vld [vmem:[#allocation1 + $0x2] sm:$0x1]   ;;  %v6_v2 = vld [vmem:[#allocation1] sm:$0x1]   ;;  %v16_v3 = vld [vmem:[#allocation1 + $0x1] sm:$0x1]  }
   0xa   :  { %11 = vrot.lane.b32.xlu0 %v10_v1, %s29_s0  ;;  %8 = vst.msk [vmem:[#allocation0] sm:$0x1] %vm7_vm0, %v6_v2  }
   0xe   :  { %17 = vrot.lane.b32.xlu0 %v16_v3, %s30_s8 }
  0x7c   :  { %v12_v4 = vpop.permute.xlu0 %11  }
  0x7d   :  { %14 = vst.msk [vmem:[#allocation0] sm:$0x1] %vm13_vm1, %v12_v4  }
  0x80   :  { %v18_v5 = vpop.permute.xlu0 %17  }
  0x81   :  { %20 = vst.msk [vmem:[#allocation0] sm:$0x1] %vm19_vm2, %v18_v5  }
  0x88   :  { %v24_v6 = vld [vmem:[#allocation0] sm:$0x1] }
  0x89   :  { %26 = vst [vmem:[%s48_s1] sm:$0x1] %v24_v6 }

// kernel: encoder_forward.1
= control target key start
LH: loop header
LB: loop body
LE: loop exit
PB: predicated region body
PF: predicated region fallthrough
CT: control target
= control target key end

     0   :  { %s8684_s6 = smov 1   ;;  %vm138_vm0 = vcmask 523264   ;;  %s8685_s10 = smov 5   ;;  %v8686_v54 = vmov 0.0   ;;  %s10040_s0 = inlined_call_operand.smem [shape: u32[30], index: -1, kind: input, shape index: {}] }
   0x1   :  { %s1_s5 = sld [smem:[%s10040_s0]]   ;;  %s8688_s14 = smov 7  }
   0x2   :  { %s8728_s9 = sld [smem:[%s10040_s0 + %s8684_s6]]   ;;  %s8689_s18 = smov 3  }
   0x3   :  { %s8789_s13 = sld [smem:[%s10040_s0 + %s8685_s10]]   ;;  %s8690_s22 = smov 6  }
   0x4   :  { %s8887_s17 = sld [smem:[%s10040_s0 + %s8688_s14]]   ;;  %s8691_s26 = smov 4  }
   0x5   :  { %s8973_s21 = sld [smem:[%s10040_s0 + %s8689_s18]]   ;;  %s8693_s30 = smov 9  }
   0x6   :  { %s6388_s25 = sld [smem:[%s10040_s0 + %s8690_s22]]   ;;  %s8694_s4 = smov 11  }
   0x7   :  { %v122_v0 = vld [vmem:[%s1_s5] sm:$0xff]  ;;  %v123_v1 = vld [vmem:[%s1_s5 + $0x8] sm:$0xff]  ;;  %v124_v2 = vld [vmem:[%s1_s5 + $0x10] sm:$0xff]  ;;  %s9134_s29 = sld [smem:[%s10040_s0 + %s8691_s26]]   ;;  %s8695_s8 = smov 8  }
   0x8   :  { %v7804_v3 = vpack.c.bf16 %v123_v1, %v122_v0  ;;  %v125_v4 = vld [vmem:[%s1_s5 + $0x18] sm:$0xff]  ;;  %v126_v6 = vld [vmem:[%s1_s5 + $0x20] sm:$0xff]  ;;  %v127_v7 = vld [vmem:[%s1_s5 + $0x28] sm:$0xff]  ;;  %s9215_s3 = sld [smem:[%s10040_s0 + %s8693_s30]]   ;;  %s8696_s12 = smov 10  }
   0x9   :  { %v7808_v5 = vpack.c.bf16 %v125_v4, %v124_v2  ;;  %v130_v8 = vld [vmem:[%s8728_s9] sm:$0xff]  ;;  %v7812_v9 = vpack.c.bf16 %v127_v7, %v126_v6  ;;  %v128_v10 = vld [vmem:[%s1_s5 + $0x30] sm:$0xff]  ;;  %v129_v11 = vld [vmem:[%s1_s5 + $0x38] sm:$0xff]  ;;  %s6393_s7 = sld [smem:[%s10040_s0 + %s8694_s4]]   ;;  %s8697_s16 = smov 12  }
   0xa   :  { %7805 = vmatprep.subr.bf16.mxu0 %v7804_v3  ;;  %7157 = vmatprep.mubr.msk.f32.mxu0 %vm138_vm0, %v130_v8  ;;  %v7816_v12 = vpack.c.bf16 %v129_v11, %v128_v10  ;;  %v131_v13 = vld [vmem:[%s8728_s9 + $0x8] sm:$0xff]  ;;  %v132_v14 = vld [vmem:[%s8728_s9 + $0x10] sm:$0xff]  ;;  %v133_v15 = vld [vmem:[%s8728_s9 + $0x18] sm:$0xff]  ;;  %s6390_s11 = sld [smem:[%s10040_s0 + %s8695_s8]]   ;;  %s8698_s20 = smov 17  }
   0xb   :  { %7807 = vmatpush3.bf16.msra.mxu0 %v7804_v3  ;;  %7185 = vmatprep.mubr.msk.f32.mxu1 %vm138_vm0, %v130_v8  ;;  %v134_v16 = vld [vmem:[%s8728_s9 + $0x20] sm:$0xff]  ;;  %v135_v17 = vld [vmem:[%s8728_s9 + $0x28] sm:$0xff]  ;;  %v136_v18 = vld [vmem:[%s8728_s9 + $0x30] sm:$0xff]  ;;  %s6392_s15 = sld [smem:[%s10040_s0 + %s8696_s12]]   ;;  %s8699_s24 = smov 25  }
   0xc   :  { %7809 = vmatprep.subr.bf16.mxu0 %v7808_v5  ;;  %v137_v19 = vld [vmem:[%s8728_s9 + $0x38] sm:$0xff]  ;;  %v482_v48 = vld [vmem:[%s8789_s13 + $0x8] sm:$0xff]  ;;  %v481_v51 = vld [vmem:[%s8789_s13] sm:$0xff]  ;;  %s6394_s19 = sld [smem:[%s10040_s0 + %s8697_s16]]   ;;  %s8700_s28 = smov 18  }
   0xd   :  { %v484_v49 = vld [vmem:[%s8789_s13 + $0x18] sm:$0xff]  ;;  %v483_v52 = vld [vmem:[%s8789_s13 + $0x10] sm:$0xff]  ;;  %v6441_v55 = vld [vmem:[%s8789_s13 + $0x28] sm:$0xff]  ;;  %s9266_s23 = sld [smem:[%s10040_s0 + %s8698_s20]]   ;;  %s8701_s2 = smov 26  }
   0xe   :  { %v7836_v50 = vpack.c.bf16 %v484_v49, %v482_v48  ;;  %v7838_v53 = vpack.c.bf16 %v483_v52, %v481_v51  ;;  %v6443_v56 = vld [vmem:[%s8789_s13 + $0x38] sm:$0xff]  ;;  %s9275_s27 = sld [smem:[%s10040_s0 + %s8699_s24]]   ;;  %s8702_s6 = smov 19  }
   0xf   :  { %7811 = vmatpush3.bf16.msra.mxu0 %v7808_v5  ;;  %v7840_v57 = vpack.c.bf16 %v6443_v56, %v6441_v55  ;;  %s9289_s1 = sld [smem:[%s10040_s0 + %s8700_s28]]   ;;  %s8704_s10 = smov 13  }
  0x10   :  { %7813 = vmatprep.subr.bf16.mxu0 %v7812_v9  ;;  %s9302_s5 = sld [smem:[%s10040_s0 + %s8701_s2]]   ;;  %s8705_s14 = smov 14  }
  0x11   :  { %s9333_s9 = sld [smem:[%s10040_s0 + %s8702_s6]]   ;;  %s8706_s18 = smov 15  }
  0x12   :  { %s8707_s22 = smov 2   ;;  %s8708_s28 = smov 20  }
  0x13   :  { %7815 = vmatpush3.bf16.msra.mxu0 %v7812_v9  ;;  %s9507_s26 = sld [smem:[%s10040_s0 + %s8707_s22]]   ;;  %s8710_s8 = smov 27  }
  0x14   :  { %7817 = vmatprep.subr.bf16.mxu0 %v7816_v12  ;;  %s9565_s2 = sld [smem:[%s10040_s0 + %s8708_s28]]  }
  0x15   :  { %s9595_s12 = sld [smem:[%s10040_s0 + %s8710_s8]]  }
  0x17   :  { %7819 = vmatpush3.bf16.msra.mxu0 %v7816_v12 }
  0x18   :  { %7837 = vmatprep.subr.bf16.mxu0 %v7836_v50 }
  0x1a   :  { %7158 = vmatmul.mubr.msk.f32.vlgmr.msra.gmra.mrb[0].mxu0 %vm138_vm0, %v131_v13 }
  0x1b   :  { %7160 = vmatprep.mubr.msk.f32.mxu0 %vm138_vm0, %v132_v14  ;;  %7839 = vmatpush1.bf16.msra.mxu0 %v7838_v53 }
  0x1e   :  { %7161 = vmatmul.mubr.msk.f32.gmra.mrb[2].mxu0 %vm138_vm0, %v133_v15 }
  0x1f   :  { %7163 = vmatprep.mubr.msk.f32.mxu0 %vm138_vm0, %v134_v16 }
  0x22   :  { %7164 = vmatmul.mubr.msk.f32.gmra.mrb[4].mxu0 %vm138_vm0, %v135_v17 }
  0x23   :  { %7166 = vmatprep.mubr.msk.f32.mxu0 %vm138_vm0, %v136_v18 }
  0x26   :  { %7167 = vmatmul.mubr.msk.f32.gmra.mrb[6].mxu0 %vm138_vm0, %v137_v19 }
  0x27   :  { %574 = vmatprep.mubr.f32.mxu0 %v8686_v54 }
  0xed   :  { %v7159_v20 = vpop.f32.mrb[0].mxu0 }
  0xee   :  { %v8747_v21 = vsub.f32 %v123_v1, %v7159_v20  ;;  %v229_v22 = vpop.f32.mrb[1].mxu0 }
  0xef   :  { %v8749_v23 = vsub.f32 %v122_v0, %v229_v22 }
  0xf0   :  { %v277_v24 = vmul.f32 %v8747_v21, %v8747_v21 }
  0xf1   :  { %v276_v25 = vmul.f32 %v8749_v23, %v8749_v23  ;;  %v7162_v26 = vpop.f32.mrb[2].mxu0 }
  0xf2   :  { %v8755_v27 = vsub.f32 %v125_v4, %v7162_v26  ;;  %v239_v28 = vpop.f32.mrb[3].mxu0 }
  0xf3   :  { %v8757_v29 = vsub.f32 %v124_v2, %v239_v28  ;;  %v7820_v30 = vpack.c.bf16 %v277_v24, %v276_v25 }
  0xf4   :  { %v279_v31 = vmul.f32 %v8755_v27, %v8755_v27 }
  0xf5   :  { %v278_v32 = vmul.f32 %v8757_v29, %v8757_v29  ;;  %v7165_v33 = vpop.f32.mrb[4].mxu0  ;;  %7821 = vmatprep.subr.bf16.mxu1 %v7820_v30 }
  0xf6   :  { %v8763_v34 = vsub.f32 %v127_v7, %v7165_v33  ;;  %v249_v35 = vpop.f32.mrb[5].mxu0  ;;  %7823 = vmatpush3.bf16.msra.mxu1 %v7820_v30 }
  0xf7   :  { %v8765_v36 = vsub.f32 %v126_v6, %v249_v35  ;;  %v7824_v37 = vpack.c.bf16 %v279_v31, %v278_v32 }
  0xf8   :  { %v281_v38 = vmul.f32 %v8763_v34, %v8763_v34 }
  0xf9   :  { %v280_v39 = vmul.f32 %v8765_v36, %v8765_v36  ;;  %v7168_v40 = vpop.f32.mrb[6].mxu0  ;;  %7825 = vmatprep.subr.bf16.mxu1 %v7824_v37 }
  0xfa   :  { %v8771_v41 = vsub.f32 %v129_v11, %v7168_v40  ;;  %v259_v42 = vpop.f32.mrb[7].mxu0  ;;  %7827 = vmatpush3.bf16.msra.mxu1 %v7824_v37 }
  0xfb   :  { %v8773_v43 = vsub.f32 %v128_v10, %v259_v42  ;;  %v7828_v44 = vpack.c.bf16 %v281_v38, %v280_v39 }
  0xfc   :  { %v283_v45 = vmul.f32 %v8771_v41, %v8771_v41 }
  0xfd   :  { %v282_v46 = vmul.f32 %v8773_v43, %v8773_v43  ;;  %7829 = vmatprep.subr.bf16.mxu1 %v7828_v44 }
  0xfe   :  { %7831 = vmatpush3.bf16.msra.mxu1 %v7828_v44 }
  0xff   :  { %v7832_v47 = vpack.c.bf16 %v283_v45, %v282_v46 }
 0x101   :  { %7833 = vmatprep.subr.bf16.mxu1 %v7832_v47 }
 0x102   :  { %7835 = vmatpush3.bf16.msra.mxu1 %v7832_v47 }
 0x103   :  { %8440 = vmatprep.subr.bf16.mxu1 %v7836_v50 }
 0x105   :  { %7186 = vmatmul.mubr.msk.f32.vlgmr.msra.gmra.mrb[0].mxu1 %vm138_vm0, %v131_v13 }
 0x106   :  { %7188 = vmatprep.mubr.msk.f32.mxu1 %vm138_vm0, %v132_v14  ;;  %8441 = vmatpush1.bf16.msra.mxu1 %v7838_v53 }
 0x107   :  { %7841 = vmatprep.subr.bf16.mxu1 %v7840_v57 }
 0x109   :  { %7189 = vmatmul.mubr.msk.f32.gmra.mrb[2].mxu1 %vm138_vm0, %v133_v15 }
 0x10a   :  { %7191 = vmatprep.mubr.msk.f32.mxu1 %vm138_vm0, %v134_v16 }
 0x10d   :  { %7192 = vmatmul.mubr.msk.f32.gmra.mrb[4].mxu1 %vm138_vm0, %v135_v17 }
 0x10e   :  { %7194 = vmatprep.mubr.msk.f32.mxu1 %vm138_vm0, %v136_v18 }
 0x111   :  { %7195 = vmatmul.mubr.msk.f32.gmra.mrb[6].mxu1 %vm138_vm0, %v137_v19 }
 0x112   :  { %610 = vmatprep.mubr.f32.mxu1 %v8686_v54 }
 0x1d8   :  { %v7187_v58 = vpop.f32.mrb[0].mxu1 }
 0x1d9   :  { %v390_v59 = vmul.f32 1.032258, %v7187_v58  ;;  %v350_v60 = vpop.f32.mrb[1].mxu1 }
 0x1da   :  { %v389_v61 = vmul.f32 1.032258, %v350_v60 }
 0x1db   :  { %8495 = vrsqrt.f32 %v390_v59  ;;  %vm406_vm1 = vcmp.eq.f32.partialorder %v390_v59, inf  ;;  %vm408_vm2 = vcmp.eq.f32.partialorder %v390_v59, 0.0  ;;  %v409_v13 = vand.u32 2147483648, %v390_v59 }
 0x1dc   :  { %8497 = vrsqrt.f32 %v389_v61  ;;  %v7190_v62 = vpop.f32.mrb[2].mxu1  ;;  %vm399_vm3 = vcmp.eq.f32.partialorder %v389_v61, inf  ;;  %v402_v16 = vand.u32 2147483648, %v389_v61  ;;  %vm401_vm4 = vcmp.eq.f32.partialorder %v389_v61, 0.0 }
 0x1dd   :  { %v392_v63 = vmul.f32 1.032258, %v7190_v62  ;;  %v360_v0 = vpop.f32.mrb[3].mxu1 }
 0x1de   :  { %v391_v1 = vmul.f32 1.032258, %v360_v0 }
 0x1df   :  { %8499 = vrsqrt.f32 %v392_v63  ;;  %vm420_vm5 = vcmp.eq.f32.partialorder %v392_v63, inf  ;;  %v423_v37 = vand.u32 2147483648, %v392_v63  ;;  %vm422_vm8 = vcmp.eq.f32.partialorder %v392_v63, 0.0 }
 0x1e0   :  { %8501 = vrsqrt.f32 %v391_v1  ;;  %v7193_v2 = vpop.f32.mrb[4].mxu1  ;;  %vm413_vm6 = vcmp.eq.f32.partialorder %v391_v1, inf  ;;  %v416_v30 = vand.u32 2147483648, %v391_v1  ;;  %vm415_vm7 = vcmp.eq.f32.partialorder %v391_v1, 0.0 }
 0x1e1   :  { %v8799_v3 = vmul.f32 1.032258, %v7193_v2  ;;  %v370_v4 = vpop.f32.mrb[5].mxu1 }
 0x1e2   :  { %v393_v5 = vmul.f32 1.032258, %v370_v4 }
 0x1e3   :  { %8503 = vrsqrt.f32 %v8799_v3  ;;  %vm434_vm10 = vcmp.eq.f32.partialorder %v8799_v3, inf  ;;  %v437_v60 = vand.u32 2147483648, %v8799_v3 }
 0x1e4   :  { %8505 = vrsqrt.f32 %v393_v5  ;;  %v7196_v6 = vpop.f32.mrb[6].mxu1  ;;  %vm427_vm9 = vcmp.eq.f32.partialorder %v393_v5, inf  ;;  %v430_v47 = vand.u32 2147483648, %v393_v5  ;;  %vm429_vm11 = vcmp.eq.f32.partialorder %v393_v5, 0.0 }
 0x1e5   :  { %v8496_v7 = vpop.eup %8495  ;;  %v8802_v8 = vmul.f32 1.032258, %v7196_v6  ;;  %v380_v9 = vpop.f32.mrb[7].mxu1 }
 0x1e6   :  { %v8498_v10 = vpop.eup %8497  ;;  %v405_v11 = vmul.f32 %v8496_v7, %v390_v59  ;;  %v395_v12 = vmul.f32 1.032258, %v380_v9  ;;  %v6440_v9 = vld [vmem:[%s8789_s13 + $0x20] sm:$0xff] }
 0x1e7   :  { %v398_v14 = vmul.f32 %v8498_v10, %v389_v61  ;;  %8507 = vrsqrt.f32 %v8802_v8  ;;  %vm448_vm12 = vcmp.eq.f32.partialorder %v8802_v8, inf  ;;  %v451_v50 = vand.u32 2147483648, %v8802_v8  ;;  %v6442_v10 = vld [vmem:[%s8789_s13 + $0x30] sm:$0xff] }
 0x1e8   :  { %v407_v15 = vsel %vm406_vm1, %v390_v59, %v405_v11  ;;  %8509 = vrsqrt.f32 %v395_v12  ;;  %vm450_vm13 = vcmp.eq.f32.partialorder %v8802_v8, 0.0  ;;  %vm441_vm14 = vcmp.eq.f32.partialorder %v395_v12, inf  ;;  %v6465_v11 = vld [vmem:[%s8789_s13 + $0x48] sm:$0xff] }
 0x1e9   :  { %v8500_v17 = vpop.eup %8499  ;;  %v400_v18 = vsel %vm399_vm3, %v389_v61, %v398_v14  ;;  %v410_v19 = vsel %vm408_vm2, %v409_v13, %v407_v15  ;;  %v444_v56 = vand.u32 2147483648, %v395_v12  ;;  %vm443_vm15 = vcmp.eq.f32.partialorder %v395_v12, 0.0 }
 0x1ea   :  { %v8502_v20 = vpop.eup %8501  ;;  %v403_v22 = vsel %vm401_vm4, %v402_v16, %v400_v18  ;;  %v419_v24 = vmul.f32 %v8500_v17, %v392_v63  ;;  %v454_v28 = vadd.f32 1e-05, %v410_v19  ;;  %vm485_vm1 = vcmask 130048  }
 0x1eb   :  { %v453_v25 = vadd.f32 1e-05, %v403_v22  ;;  %v412_v26 = vmul.f32 %v8502_v20, %v391_v1  ;;  %vm436_vm2 = vcmp.eq.f32.partialorder %v8799_v3, 0.0  ;;  %v7842_v16 = vpack.c.bf16 %v6442_v10, %v6440_v9  ;;  %v6464_v20 = vld [vmem:[%s8789_s13 + $0x40] sm:$0xff]  ;;  %v1231_v10 = vld [vmem:[%s8887_s17 + $0xa8] sm:$0xff] }
 0x1ec   :  { %v421_v32 = vsel %vm420_vm5, %v392_v63, %v419_v24  ;;  %v1230_v9 = vld [vmem:[%s8887_s17 + $0xa0] sm:$0xff]  ;;  %vm1238_vm3 = vcmask 785408   ;;  %vm1453_vm4 = vcmask 244736   ;;  %vm1460_vm5 = vcmask 1045504  }
 0x1ed   :  { %v8504_v31 = vpop.eup %8503  ;;  %8511 = vrcp.f32 %v453_v25  ;;  %v414_v33 = vsel %vm413_vm6, %v391_v1, %v412_v26  ;;  %v424_v42 = vsel %vm422_vm8, %v423_v37, %v421_v32  ;;  %v1212_v26 = vld [vmem:[%s8887_s17 + $0x10] sm:$0xff]  ;;  %v1215_v32 = vld [vmem:[%s8887_s17 + $0x28] sm:$0xff]  ;;  %v1217_v37 = vld [vmem:[%s8887_s17 + $0x38] sm:$0xff]  ;;  %vm8692_vm6 = vmmov 1  }
 0x1ee   :  { %v8506_v35 = vpop.eup %8505  ;;  %v417_v38 = vsel %vm415_vm7, %v416_v30, %v414_v33  ;;  %8513 = vrcp.f32 %v454_v28  ;;  %v433_v45 = vmul.f32 %v8504_v31, %v8799_v3  ;;  %v456_v52 = vadd.f32 1e-05, %v424_v42  ;;  %v1213_v28 = vld [vmem:[%s8887_s17 + $0x18] sm:$0xff]  ;;  %v1214_v31 = vld [vmem:[%s8887_s17 + $0x20] sm:$0xff]  ;;  %vm9138_vm7 = vmpackc.low %vm1460_vm5, %vm8692_vm6 }
 0x1ef   :  { %v426_v39 = vmul.f32 %v8506_v35, %v393_v5  ;;  %v455_v40 = vadd.f32 1e-05, %v417_v38  ;;  %v7900_v30 = vpack.c.bf16 %v1213_v28, %v1212_v26  ;;  %v7903_v33 = vpack.c.bf16 %v1215_v32, %v1214_v31  ;;  %v1216_v35 = vld [vmem:[%s8887_s17 + $0x30] sm:$0xff] }
 0x1f0   :  { %v435_v57 = vsel %vm434_vm10, %v8799_v3, %v433_v45  ;;  %v7906_v38 = vpack.c.bf16 %v1217_v37, %v1216_v35  ;;  %v1221_v45 = vld [vmem:[%s8887_s17 + $0x58] sm:$0xff]  ;;  %vm1948_vm8 = vcmask 261120   ;;  %vm8703_vm10 = vmmov 0  }
 0x1f1   :  { %v8508_v44 = vpop.eup %8507  ;;  %v428_v46 = vsel %vm427_vm9, %v393_v5, %v426_v39  ;;  %8515 = vrcp.f32 %v455_v40  ;;  %v438_v4 = vsel %vm436_vm2, %v437_v60, %v435_v57  ;;  %v1218_v39 = vld [vmem:[%s8887_s17 + $0x40] sm:$0xff]  ;;  %v1219_v40 = vld [vmem:[%s8887_s17 + $0x48] sm:$0xff]  ;;  %vm2061_vm9 = vcmask 259072  }
 0x1f2   :  { %v8510_v48 = vpop.eup %8509  ;;  %v447_v49 = vmul.f32 %v8508_v44, %v8802_v8  ;;  %v431_v53 = vsel %vm429_vm11, %v430_v47, %v428_v46  ;;  %8517 = vrcp.f32 %v456_v52  ;;  %v458_v3 = vadd.f32 1e-05, %v438_v4  ;;  %v1220_v44 = vld [vmem:[%s8887_s17 + $0x50] sm:$0xff]  ;;  %v1222_v47 = vld [vmem:[%s8887_s17 + $0x60] sm:$0xff] }
 0x1f3   :  { %v440_v51 = vmul.f32 %v8510_v48, %v395_v12  ;;  %v457_v62 = vadd.f32 1e-05, %v431_v53  ;;  %v7909_v42 = vpack.c.bf16 %v1219_v40, %v1218_v39  ;;  %v7912_v46 = vpack.c.bf16 %v1221_v45, %v1220_v44  ;;  %v1223_v48 = vld [vmem:[%s8887_s17 + $0x68] sm:$0xff]  ;;  %v1224_v52 = vld [vmem:[%s8887_s17 + $0x70] sm:$0xff]  ;;  %v1225_v53 = vld [vmem:[%s8887_s17 + $0x78] sm:$0xff] }
 0x1f4   :  { %v449_v55 = vsel %vm448_vm12, %v8802_v8, %v447_v49  ;;  %v1226_v60 = vld [vmem:[%s8887_s17 + $0x80] sm:$0xff]  ;;  %vm2593_vm11 = vcmask 113664   ;;  %vm9453_vm12 = vmpackc.low %vm1948_vm8, %vm1948_vm8 }
 0x1f5   :  { %v442_v58 = vsel %vm441_vm14, %v395_v12, %v440_v51  ;;  %v452_v59 = vsel %vm450_vm13, %v451_v50, %v449_v55  ;;  %v6467_v12 = vld [vmem:[%s8789_s13 + $0x58] sm:$0xff]  ;;  %v7915_v51 = vpack.c.bf16 %v1223_v48, %v1222_v47  ;;  %vm2943_vm13 = vcmask 455680  }
 0x1f6   :  { %v445_v61 = vsel %vm443_vm15, %v444_v56, %v442_v58  ;;  %v460_v1 = vadd.f32 1e-05, %v452_v59  ;;  %v7918_v59 = vpack.c.bf16 %v1225_v53, %v1224_v52  ;;  %vm2939_vm14 = vcmask 457728  }
 0x1f7   :  { %v8512_v63 = vpop.eup %8511  ;;  %v459_v0 = vadd.f32 1e-05, %v445_v61  ;;  %v1227_v61 = vld [vmem:[%s8887_s17 + $0x88] sm:$0xff] }
 0x1f8   :  { %v8818_v2 = vmul.f32 %v8512_v63, %v8749_v23  ;;  %v8514_v5 = vpop.eup %8513 }
 0x1f9   :  { %8519 = vrcp.f32 %v459_v0  ;;  %v464_v6 = vmul.f32 %v8514_v5, %v8747_v21  ;;  %v7921_v0 = vpack.c.bf16 %v1227_v61, %v1226_v60  ;;  %v6436_v60 = vld [vmem:[%s8973_s21 + $0x20] sm:$0xff] }
 0x1fa   :  { %6428 = vmatmul.mubr.msk.f32.vlgmr.msra.gmra.mrb[8].mxu0 %vm485_vm1, %v8818_v2  ;;  %8521 = vrcp.f32 %v457_v62 }
 0x1fb   :  { %580 = vmatprep.mubr.f32.mxu0 %v8686_v54  ;;  %8523 = vrcp.f32 %v460_v1  ;;  %v8516_v7 = vpop.eup %8515  ;;  %v1228_v1 = vld [vmem:[%s8887_s17 + $0x90] sm:$0xff] }
 0x1fc   :  { %8525 = vrcp.f32 %v458_v3  ;;  %v466_v23 = vmul.f32 %v8516_v7, %v8757_v29  ;;  %v8518_v8 = vpop.eup %8517  ;;  %v7876_v29 = vpack.c.bf16 %v6467_v12, %v6465_v11 }
 0x1fd   :  { %v468_v14 = vmul.f32 %v8518_v8, %v8755_v27  ;;  %v6466_v27 = vld [vmem:[%s8789_s13 + $0x50] sm:$0xff]  ;;  %s9379_s13 = sld [smem:[%s10040_s0 + %s8704_s10]]   ;;  %s8715_s10 = smov 28  }
 0x1fe   :  { %6429 = vmatmul.mubr.msk.f32.gmra.mrb[10].mxu0 %vm485_vm1, %v464_v6 }
 0x1ff   :  { %586 = vmatprep.mubr.f32.mxu0 %v8686_v54 }
 0x202   :  { %6430 = vmatmul.mubr.msk.f32.gmra.mrb[12].mxu0 %vm485_vm1, %v466_v23 }
 0x203   :  { %v8520_v13 = vpop.eup %8519  ;;  %592 = vmatprep.mubr.f32.mxu0 %v8686_v54 }
 0x204   :  { %v8522_v21 = vpop.eup %8521  ;;  %v474_v15 = vmul.f32 %v8520_v13, %v8773_v43  ;;  %v7878_v43 = vpack.c.bf16 %v6466_v27, %v6464_v20 }
 0x205   :  { %v8524_v17 = vpop.eup %8523  ;;  %v470_v18 = vmul.f32 %v8522_v21, %v8765_v36  ;;  %v1210_v36 = vld [vmem:[%s8887_s17] sm:$0xff] }
 0x206   :  { %6431 = vmatmul.mubr.msk.f32.gmra.mrb[14].mxu0 %vm485_vm1, %v468_v14  ;;  %6434 = vmatmul.mubr.msk.f32.vlgmr.msra.gmra.mrb[8].mxu1 %vm485_vm1, %v474_v15  ;;  %v476_v19 = vmul.f32 %v8524_v17, %v8771_v41  ;;  %v8526_v22 = vpop.eup %8525  ;;  %v1211_v41 = vld [vmem:[%s8887_s17 + $0x8] sm:$0xff]  ;;  %v1232_v17 = vld [vmem:[%s8887_s17 + $0xb0] sm:$0xff] }
 0x207   :  { %598 = vmatprep.mubr.f32.mxu0 %v8686_v54  ;;  %616 = vmatprep.mubr.f32.mxu1 %v8686_v54  ;;  %v472_v24 = vmul.f32 %v8526_v22, %v8763_v34  ;;  %v8687_v34 = vmov 0.0|0.0   ;;  %v7897_v25 = vpack.c.bf16 %v1211_v41, %v1210_v36 }
 0x208   :  { %7843 = vmatpush1.bf16.msra.mxu1 %v7842_v16  ;;  %v7927_v16 = vpack.c.bf16 %v1231_v10, %v1230_v9 }
 0x209   :  { %7877 = vmatprep.subr.bf16.mxu1 %v7876_v29  ;;  %v1233_v29 = vld [vmem:[%s8887_s17 + $0xb8] sm:$0xff] }
 0x20a   :  { %6432 = vmatmul.mubr.msk.f32.gmra.mrb[16].mxu0 %vm485_vm1, %v470_v18  ;;  %6435 = vmatmul.mubr.msk.f32.gmra.mrb[10].mxu1 %vm485_vm1, %v476_v19 }
 0x20b   :  { %604 = vmatprep.mubr.f32.mxu0 %v8686_v54  ;;  %697 = vmatprep.mubr.f32.mxu1 %v8686_v54 }
 0x20e   :  { %6433 = vmatmul.mubr.msk.f32.gmra.mrb[18].mxu0 %vm485_vm1, %v472_v24  ;;  %6444 = vmatmul.mubr.msk.f32.vlgmr.msra.gmra.mrb[12].mxu1 %vm485_vm1, %v8818_v2 }
 0x20f   :  { %703 = vmatprep.mubr.f32.mxu1 %v8686_v54  ;;  %7879 = vmatpush1.bf16.msra.mxu1 %v7878_v43 }
 0x210   :  { %822 = vmatprep.mubr.f32.mxu0 %v8686_v54  ;;  %7896 = vmatprep.subr.bf16.mxu1 %v8687_v34 }
 0x212   :  { %6445 = vmatmul.mubr.msk.f32.gmra.mrb[14].mxu1 %vm485_vm1, %v464_v6 }
 0x213   :  { %709 = vmatprep.mubr.f32.mxu1 %v8686_v54 }
 0x216   :  { %6446 = vmatmul.mubr.msk.f32.gmra.mrb[16].mxu1 %vm485_vm1, %v466_v23 }
 0x217   :  { %715 = vmatprep.mubr.f32.mxu1 %v8686_v54 }
 0x21a   :  { %6447 = vmatmul.mubr.msk.f32.gmra.mrb[18].mxu1 %vm485_vm1, %v468_v14 }
 0x21b   :  { %721 = vmatprep.mubr.f32.mxu1 %v8686_v54 }
 0x21e   :  { %6448 = vmatmul.mubr.msk.f32.gmra.mrb[20].mxu1 %vm485_vm1, %v470_v18 }
 0x21f   :  { %727 = vmatprep.mubr.f32.mxu1 %v8686_v54 }
 0x222   :  { %6449 = vmatmul.mubr.msk.f32.gmra.mrb[22].mxu1 %vm485_vm1, %v472_v24 }
 0x223   :  { %733 = vmatprep.mubr.f32.mxu1 %v8686_v54 }
 0x226   :  { %6450 = vmatmul.mubr.msk.f32.gmra.mrb[24].mxu1 %vm485_vm1, %v474_v15 }
 0x227   :  { %739 = vmatprep.mubr.f32.mxu1 %v8686_v54 }
 0x22a   :  { %6451 = vmatmul.mubr.msk.f32.gmra.mrb[26].mxu1 %vm485_vm1, %v476_v19 }
 0x22b   :  { %1022 = vmatprep.mubr.f32.mxu1 %v8686_v54 }
 0x22e   :  { %6468 = vmatmul.mubr.msk.f32.vlgmr.msra.gmra.mrb[28].mxu1 %vm485_vm1, %v8818_v2  ;;  %v1229_v2 = vld [vmem:[%s8887_s17 + $0x98] sm:$0xff] }
 0x22f   :  { %1028 = vmatprep.mubr.f32.mxu1 %v8686_v54  ;;  %7898 = vmatpush1.bf16.msra.mxu1 %v7897_v25  ;;  %v7924_v8 = vpack.c.bf16 %v1229_v2, %v1228_v1  ;;  %v6437_v2 = vld [vmem:[%s8973_s21 + $0x28] sm:$0xff] }
 0x230   :  { %7899 = vmatprep.subr.bf16.mxu1 %v8687_v34 }
 0x232   :  { %6469 = vmatmul.mubr.msk.f32.gmra.mrb[30].mxu1 %vm485_vm1, %v464_v6 }
 0x233   :  { %1034 = vmatprep.mubr.f32.mxu1 %v8686_v54  ;;  %7901 = vmatpush1.bf16.msra.mxu1 %v7900_v30 }
 0x234   :  { %7902 = vmatprep.subr.bf16.mxu1 %v8687_v34 }
 0x236   :  { %6470 = vmatmul.mubr.msk.f32.gmra.mrb[32].mxu1 %vm485_vm1, %v466_v23 }
 0x237   :  { %1040 = vmatprep.mubr.f32.mxu1 %v8686_v54  ;;  %7904 = vmatpush1.bf16.msra.mxu1 %v7903_v33 }
 0x238   :  { %7905 = vmatprep.subr.bf16.mxu1 %v8687_v34 }
 0x23a   :  { %6471 = vmatmul.mubr.msk.f32.gmra.mrb[34].mxu1 %vm485_vm1, %v468_v14 }
 0x23b   :  { %1046 = vmatprep.mubr.f32.mxu1 %v8686_v54  ;;  %7907 = vmatpush1.bf16.msra.mxu1 %v7906_v38 }
 0x23c   :  { %7908 = vmatprep.subr.bf16.mxu1 %v8687_v34 }
 0x23e   :  { %6472 = vmatmul.mubr.msk.f32.gmra.mrb[36].mxu1 %vm485_vm1, %v470_v18 }
 0x23f   :  { %1052 = vmatprep.mubr.f32.mxu1 %v8686_v54  ;;  %7910 = vmatpush1.bf16.msra.mxu1 %v7909_v42 }
 0x240   :  { %7911 = vmatprep.subr.bf16.mxu1 %v8687_v34 }
 0x242   :  { %6473 = vmatmul.mubr.msk.f32.gmra.mrb[38].mxu1 %vm485_vm1, %v472_v24  ;;  %v7930_v24 = vpack.c.bf16 %v1233_v29, %v1232_v17  ;;  %v6486_v29 = vld [vmem:[%s8887_s17 + $0xe0] sm:$0xff] }
 0x243   :  { %1058 = vmatprep.mubr.f32.mxu1 %v8686_v54  ;;  %7913 = vmatpush1.bf16.msra.mxu1 %v7912_v46 }
 0x244   :  { %7914 = vmatprep.subr.bf16.mxu1 %v8687_v34 }
 0x246   :  { %6474 = vmatmul.mubr.msk.f32.gmra.mrb[40].mxu1 %vm485_vm1, %v474_v15 }
 0x247   :  { %1064 = vmatprep.mubr.f32.mxu1 %v8686_v54  ;;  %7916 = vmatpush1.bf16.msra.mxu1 %v7915_v51 }
 0x248   :  { %7917 = vmatprep.subr.bf16.mxu1 %v8687_v34 }
 0x24a   :  { %6475 = vmatmul.mubr.msk.f32.gmra.mrb[42].mxu1 %vm485_vm1, %v476_v19 }
 0x24b   :  { %7919 = vmatpush1.bf16.msra.mxu1 %v7918_v59 }
 0x24c   :  { %7920 = vmatprep.subr.bf16.mxu1 %v8687_v34 }
 0x24f   :  { %7922 = vmatpush1.bf16.msra.mxu1 %v7921_v0 }
 0x250   :  { %7923 = vmatprep.subr.bf16.mxu1 %v8687_v34 }
 0x253   :  { %7925 = vmatpush1.bf16.msra.mxu1 %v7924_v8 }
 0x254   :  { %7926 = vmatprep.subr.bf16.mxu1 %v8687_v34 }
 0x257   :  { %7928 = vmatpush1.bf16.msra.mxu1 %v7927_v16  ;;  %v480_v16 = vld [vmem:[%s8973_s21 + $0x18] sm:$0x3f] }
 0x258   :  { %7929 = vmatprep.subr.bf16.mxu1 %v8687_v34 }
 0x25b   :  { %7931 = vmatpush1.bf16.msra.mxu1 %v7930_v24 }
 0x25c   :  { %7932 = vmatprep.subr.bf16.mxu1 %v8687_v34 }
 0x2cd   :  { %v8908_v49 = vpop.f32.mrb[8].mxu0 }
 0x2ce   :  { %v8910_v50 = vpop.f32.mrb[9].mxu0 }
 0x2d1   :  { %v8915_v55 = vpop.f32.mrb[10].mxu0 }
 0x2d2   :  { %v7862_v56 = vpack.c.bf16 %v8915_v55, %v8908_v49  ;;  %v8919_v57 = vpop.f32.mrb[11].mxu0  ;;  %v6438_v49 = vld [vmem:[%s8973_s21 + $0x30] sm:$0xff] }
 0x2d3   :  { %v7860_v58 = vpack.c.bf16 %v8919_v57, %v8910_v50 }
 0x2d5   :  { %v8926_v62 = vpop.f32.mrb[12].mxu0 }
 0x2d6   :  { %v8928_v63 = vpop.f32.mrb[13].mxu0 }
 0x2d9   :  { %v8933_v4 = vpop.f32.mrb[14].mxu0  ;;  %v8935_v5 = vpop.f32.mrb[8].mxu1 }
 0x2da   :  { %v7866_v3 = vpack.c.bf16 %v8933_v4, %v8926_v62  ;;  %v8939_v6 = vpop.f32.mrb[15].mxu0  ;;  %v8941_v7 = vpop.f32.mrb[9].mxu1 }
 0x2db   :  { %v7864_v23 = vpack.c.bf16 %v8939_v6, %v8928_v63  ;;  %v6439_v63 = vld [vmem:[%s8973_s21 + $0x38] sm:$0x3f]  ;;  %v477_v6 = vld [vmem:[%s8973_s21] sm:$0xff] }
 0x2dd   :  { %v8948_v11 = vpop.f32.mrb[16].mxu0  ;;  %v8950_v12 = vpop.f32.mrb[10].mxu1 }
 0x2de   :  { %v7874_v13 = vpack.c.bf16 %v8950_v12, %v8935_v5  ;;  %v8954_v21 = vpop.f32.mrb[17].mxu0  ;;  %v8956_v14 = vpop.f32.mrb[11].mxu1 }
 0x2df   :  { %v7872_v15 = vpack.c.bf16 %v8956_v14, %v8941_v7  ;;  %v478_v7 = vld [vmem:[%s8973_s21 + $0x8] sm:$0xff] }
 0x2e1   :  { %v8963_v18 = vpop.f32.mrb[18].mxu0  ;;  %v699_v19 = vpop.f32.mrb[12].mxu1 }
 0x2e2   :  { %v7870_v20 = vpack.c.bf16 %v8963_v18, %v8948_v11  ;;  %v608_v27 = vpop.f32.mrb[19].mxu0  ;;  %v701_v22 = vpop.f32.mrb[13].mxu1  ;;  %v6487_v18 = vld [vmem:[%s8887_s17 + $0xe8] sm:$0xff] }
 0x2e3   :  { %v7868_v43 = vpack.c.bf16 %v608_v27, %v8954_v21  ;;  %v6488_v27 = vld [vmem:[%s8887_s17 + $0xf0] sm:$0xff] }
 0x2e5   :  { %v705_v36 = vpop.f32.mrb[14].mxu1 }
 0x2e6   :  { %v7846_v41 = vpack.c.bf16 %v705_v36, %v699_v19  ;;  %v707_v25 = vpop.f32.mrb[15].mxu1  ;;  %v6460_v19 = vld [vmem:[%s8973_s21 + $0x40] sm:$0xff] }
 0x2e7   :  { %v7844_v26 = vpack.c.bf16 %v707_v25, %v701_v22  ;;  %v6489_v22 = vld [vmem:[%s8887_s17 + $0xf8] sm:$0xff]  ;;  %v6490_v36 = vld [vmem:[%s8887_s17 + $0x100] sm:$0xff]  ;;  %v6462_v25 = vld [vmem:[%s8973_s21 + $0x50] sm:$0xff] }
 0x2e8   :  { %v7942_v24 = vpack.c.bf16 %v6489_v22, %v6488_v27 }
 0x2e9   :  { %v711_v28 = vpop.f32.mrb[16].mxu1  ;;  %7845 = vmatprep.subr.bf16.mxu0 %v7844_v26 }
 0x2ea   :  { %v713_v30 = vpop.f32.mrb[17].mxu1  ;;  %7847 = vmatpush1.bf16.msra.mxu0 %v7846_v41  ;;  %v6491_v41 = vld [vmem:[%s8887_s17 + $0x108] sm:$0xff] }
 0x2eb   :  { %v7945_v26 = vpack.c.bf16 %v6491_v41, %v6490_v36 }
 0x2ed   :  { %v717_v31 = vpop.f32.mrb[18].mxu1 }
 0x2ee   :  { %v7850_v32 = vpack.c.bf16 %v717_v31, %v711_v28  ;;  %v719_v33 = vpop.f32.mrb[19].mxu1  ;;  %v6492_v28 = vld [vmem:[%s8887_s17 + $0x110] sm:$0xff]  ;;  %v6463_v31 = vld [vmem:[%s8973_s21 + $0x58] sm:$0x3f] }
 0x2ef   :  { %v7848_v35 = vpack.c.bf16 %v719_v33, %v713_v30  ;;  %v6493_v30 = vld [vmem:[%s8887_s17 + $0x118] sm:$0xff]  ;;  %v6494_v33 = vld [vmem:[%s8887_s17 + $0x120] sm:$0xff] }
 0x2f1   :  { %v723_v37 = vpop.f32.mrb[20].mxu1  ;;  %7849 = vmatprep.subr.bf16.mxu0 %v7848_v35  ;;  %v6495_v35 = vld [vmem:[%s8887_s17 + $0x128] sm:$0xff] }
 0x2f2   :  { %v725_v38 = vpop.f32.mrb[21].mxu1  ;;  %7851 = vmatpush1.bf16.msra.mxu0 %v7850_v32  ;;  %v7948_v32 = vpack.c.bf16 %v6493_v30, %v6492_v28 }
 0x2f5   :  { %v729_v39 = vpop.f32.mrb[22].mxu1 }
 0x2f6   :  { %v7854_v40 = vpack.c.bf16 %v729_v39, %v723_v37  ;;  %v731_v42 = vpop.f32.mrb[23].mxu1  ;;  %v7951_v37 = vpack.c.bf16 %v6495_v35, %v6494_v33  ;;  %v6497_v39 = vld [vmem:[%s8887_s17 + $0x138] sm:$0xff] }
 0x2f7   :  { %v7852_v44 = vpack.c.bf16 %v731_v42, %v725_v38  ;;  %v6496_v38 = vld [vmem:[%s8887_s17 + $0x130] sm:$0xff]  ;;  %v6498_v42 = vld [vmem:[%s8887_s17 + $0x140] sm:$0xff] }
 0x2f9   :  { %v735_v45 = vpop.f32.mrb[24].mxu1  ;;  %7853 = vmatprep.subr.bf16.mxu0 %v7852_v44  ;;  %v6499_v44 = vld [vmem:[%s8887_s17 + $0x148] sm:$0xff] }
 0x2fa   :  { %v737_v46 = vpop.f32.mrb[25].mxu1  ;;  %7855 = vmatpush1.bf16.msra.mxu0 %v7854_v40  ;;  %v7954_v40 = vpack.c.bf16 %v6497_v39, %v6496_v38 }
 0x2fd   :  { %v741_v47 = vpop.f32.mrb[26].mxu1 }
 0x2fe   :  { %v7858_v48 = vpack.c.bf16 %v741_v47, %v735_v45  ;;  %v743_v51 = vpop.f32.mrb[27].mxu1  ;;  %v7957_v45 = vpack.c.bf16 %v6499_v44, %v6498_v42  ;;  %v6501_v47 = vld [vmem:[%s8887_s17 + $0x158] sm:$0xff] }
 0x2ff   :  { %v7856_v52 = vpack.c.bf16 %v743_v51, %v737_v46  ;;  %v6500_v46 = vld [vmem:[%s8887_s17 + $0x150] sm:$0xff]  ;;  %v6502_v51 = vld [vmem:[%s8887_s17 + $0x160] sm:$0xff] }
 0x301   :  { %7857 = vmatprep.subr.bf16.mxu0 %v7856_v52  ;;  %v1024_v53 = vpop.f32.mrb[28].mxu1  ;;  %v6503_v52 = vld [vmem:[%s8887_s17 + $0x168] sm:$0xff] }
 0x302   :  { %7859 = vmatpush1.bf16.msra.mxu0 %v7858_v48  ;;  %v1026_v59 = vpop.f32.mrb[29].mxu1  ;;  %v7960_v48 = vpack.c.bf16 %v6501_v47, %v6500_v46 }
 0x303   :  { %7861 = vmatprep.subr.bf16.mxu0 %v7860_v58 }
 0x305   :  { %6452 = vmatmul.mubr.msk.f32.vlgmr.msra.gmra.mrb[20].mxu0 %vm138_vm0, %v6436_v60  ;;  %v1030_v61 = vpop.f32.mrb[30].mxu1  ;;  %v6505_v60 = vld [vmem:[%s8887_s17 + $0x178] sm:$0xff] }
 0x306   :  { %v7882_v0 = vpack.c.bf16 %v1030_v61, %v1024_v53  ;;  %7863 = vmatpush1.bf16.msra.mxu0 %v7862_v56  ;;  %v1032_v1 = vpop.f32.mrb[31].mxu1  ;;  %828 = vmatprep.mubr.f32.mxu0 %v8686_v54  ;;  %v7963_v53 = vpack.c.bf16 %v6503_v52, %v6502_v51 }
 0x307   :  { %v7880_v8 = vpack.c.bf16 %v1032_v1, %v1026_v59  ;;  %7865 = vmatprep.subr.bf16.mxu0 %v7864_v23  ;;  %v6504_v59 = vld [vmem:[%s8887_s17 + $0x170] sm:$0xff]  ;;  %v6507_v1 = vld [vmem:[%s8887_s17 + $0x188] sm:$0xff] }
 0x308   :  { %v7966_v61 = vpack.c.bf16 %v6505_v60, %v6504_v59 }
 0x309   :  { %6453 = vmatmul.mubr.msk.f32.gmra.mrb[22].mxu0 %vm138_vm0, %v6437_v2  ;;  %v1036_v50 = vpop.f32.mrb[32].mxu1 }
 0x30a   :  { %7867 = vmatpush1.bf16.msra.mxu0 %v7866_v3  ;;  %v1038_v57 = vpop.f32.mrb[33].mxu1  ;;  %834 = vmatprep.mubr.f32.mxu0 %v8686_v54 }
 0x30b   :  { %7869 = vmatprep.subr.bf16.mxu0 %v7868_v43  ;;  %v6461_v43 = vld [vmem:[%s8973_s21 + $0x48] sm:$0xff] }
 0x30d   :  { %6454 = vmatmul.mubr.msk.f32.gmra.mrb[24].mxu0 %vm138_vm0, %v6438_v49  ;;  %v1042_v55 = vpop.f32.mrb[34].mxu1  ;;  %v1234_v49 = vld [vmem:[%s8887_s17 + $0xc0] sm:$0xff] }
 0x30e   :  { %v7886_v56 = vpack.c.bf16 %v1042_v55, %v1036_v50  ;;  %7871 = vmatpush1.bf16.msra.mxu0 %v7870_v20  ;;  %v1044_v58 = vpop.f32.mrb[35].mxu1  ;;  %840 = vmatprep.mubr.f32.mxu0 %v8686_v54  ;;  %v7939_v20 = vpack.c.bf16 %v6487_v18, %v6486_v29  ;;  %v6509_v50 = vld [vmem:[%s8887_s17 + $0x198] sm:$0xff]  ;;  %v1235_v55 = vld [vmem:[%s8887_s17 + $0xc8] sm:$0xff] }
 0x30f   :  { %v7884_v62 = vpack.c.bf16 %v1044_v58, %v1038_v57  ;;  %7873 = vmatprep.subr.bf16.mxu0 %v7872_v15  ;;  %v7933_v58 = vpack.c.bf16 %v1235_v55, %v1234_v49 }
 0x311   :  { %6455 = vmatmul.mubr.msk.f32.gmra.mrb[26].mxu0 %vm138_vm0, %v6439_v63  ;;  %v1048_v4 = vpop.f32.mrb[36].mxu1  ;;  %v6511_v63 = vld [vmem:[%s8887_s17 + $0x1a8] sm:$0xff]  ;;  %7934 = vmatpush1.bf16.msra.mxu1 %v7933_v58  ;;  %v6485_v58 = vld [vmem:[%s9134_s29 + $0x18] sm:$0x3f] }
 0x312   :  { %7875 = vmatpush1.bf16.msra.mxu0 %v7874_v13  ;;  %v1050_v3 = vpop.f32.mrb[37].mxu1  ;;  %923 = vmatprep.mubr.f32.mxu0 %v8686_v54  ;;  %v479_v13 = vld [vmem:[%s8973_s21 + $0x10] sm:$0xff]  ;;  %s9496_s21 = sld [smem:[%s10040_s0 + %s8706_s18]]  }
 0x313   :  { %7881 = vmatprep.subr.bf16.mxu0 %v7880_v8  ;;  %v6508_v8 = vld [vmem:[%s8887_s17 + $0x190] sm:$0xff]  ;;  %7935 = vmatprep.subr.bf16.mxu1 %v8687_v34 }
 0x314   :  { %v7972_v57 = vpack.c.bf16 %v6509_v50, %v6508_v8 }
 0x315   :  { %6456 = vmatmul.mubr.msk.f32.vlgmr.msra.gmra.mrb[20].mxu0 %vm138_vm0, %v477_v6  ;;  %v1054_v23 = vpop.f32.mrb[38].mxu1  ;;  %v6512_v6 = vld [vmem:[%s8887_s17 + $0x1b0] sm:$0xff] }
 0x316   :  { %v7890_v9 = vpack.c.bf16 %v1054_v23, %v1048_v4  ;;  %v1056_v10 = vpop.f32.mrb[39].mxu1  ;;  %7883 = vmatpush1.bf16.msra.mxu0 %v7882_v0  ;;  %929 = vmatprep.mubr.f32.mxu0 %v8686_v54  ;;  %v6506_v0 = vld [vmem:[%s8887_s17 + $0x180] sm:$0xff]  ;;  %v1236_v4 = vld [vmem:[%s8887_s17 + $0xd0] sm:$0xff] }
 0x317   :  { %v7888_v11 = vpack.c.bf16 %v1056_v10, %v1050_v3  ;;  %7885 = vmatprep.subr.bf16.mxu0 %v7884_v62  ;;  %v7969_v2 = vpack.c.bf16 %v6507_v1, %v6506_v0  ;;  %v1237_v3 = vld [vmem:[%s8887_s17 + $0xd8] sm:$0xff] }
 0x318   :  { %v7936_v23 = vpack.c.bf16 %v1237_v3, %v1236_v4  ;;  %v6527_v4 = vld [vmem:[%s8887_s17 + $0x1c8] sm:$0xff] }
 0x319   :  { %6457 = vmatmul.mubr.msk.f32.gmra.mrb[22].mxu0 %vm138_vm0, %v478_v7  ;;  %v1060_v5 = vpop.f32.mrb[40].mxu1  ;;  %v1182_v7 = vlaneseq  ;;  %v1209_v3 = vld [vmem:[%s9134_s29 + $0x8] sm:$0x3f] }
 0x31a   :  { %v1062_v12 = vpop.f32.mrb[41].mxu1  ;;  %7887 = vmatpush1.bf16.msra.mxu0 %v7886_v56  ;;  %935 = vmatprep.mubr.f32.mxu0 %v8686_v54  ;;  %v6510_v56 = vld [vmem:[%s8887_s17 + $0x1a0] sm:$0xff] }
 0x31b   :  { %7889 = vmatprep.subr.bf16.mxu0 %v7888_v11  ;;  %v7975_v62 = vpack.c.bf16 %v6511_v63, %v6510_v56  ;;  %7937 = vmatpush1.bf16.msra.mxu1 %v7936_v23  ;;  %v9081_v11 = vshrl.u32 %v1182_v7, 7  ;;  %v1208_v63 = vld [vmem:[%s9134_s29] sm:$0xff]  ;;  %v6528_v23 = vld [vmem:[%s8887_s17 + $0x1d0] sm:$0xff] }
 0x31c   :  { %v6530_v7 = vld [vmem:[%s8887_s17 + $0x1e0] sm:$0xff] }
 0x31d   :  { %6458 = vmatmul.mubr.msk.f32.gmra.mrb[24].mxu0 %vm138_vm0, %v479_v13  ;;  %v1066_v21 = vpop.f32.mrb[42].mxu1  ;;  %v9087_v13 = vsub.s32 1, %v9081_v11 }
 0x31e   :  { %v7894_v14 = vpack.c.bf16 %v1066_v21, %v1060_v5  ;;  %v1068_v15 = vpop.f32.mrb[43].mxu1  ;;  %7891 = vmatpush1.bf16.msra.mxu0 %v7890_v9  ;;  %941 = vmatprep.mubr.f32.mxu0 %v8686_v54  ;;  %v6513_v9 = vld [vmem:[%s8887_s17 + $0x1b8] sm:$0xff]  ;;  %v9084_v5 = vsub.s32 0, %v9081_v11 }
 0x31f   :  { %v7892_v17 = vpack.c.bf16 %v1068_v15, %v1062_v12  ;;  %v7978_v10 = vpack.c.bf16 %v6513_v9, %v6512_v6  ;;  %v1180_v12 = vld [vmem:[%s6388_s25] sm:$0x3]  ;;  %v6529_v9 = vld [vmem:[%s8887_s17 + $0x1d8] sm:$0xff]  ;;  %s8713_s25 = smov 22  }
 0x320   :  { %v1185_v21 = vrot.slane %v1180_v12, %v9084_v5  ;;  %s6404_s30 = sld [smem:[%s10040_s0 + %s8713_s25]]  }
 0x321   :  { %6459 = vmatmul.mubr.msk.f32.gmra.mrb[26].mxu0 %vm138_vm0, %v480_v16  ;;  %7893 = vmatprep.subr.bf16.mxu0 %v7892_v17 }
 0x322   :  { %7895 = vmatpush1.bf16.msra.mxu0 %v7894_v14  ;;  %1147 = vmatprep.mubr.f32.mxu0 %v8686_v54  ;;  %v1189_v14 = vrot.slane %v1180_v12, %v9087_v13  ;;  %v6531_v12 = vld [vmem:[%s8887_s17 + $0x1e8] sm:$0xff] }
 0x323   :  { %7938 = vmatprep.subr.bf16.mxu0 %v8687_v34 }
 0x325   :  { %6476 = vmatmul.mubr.msk.f32.vlgmr.msra.gmra.mrb[20].mxu0 %vm138_vm0, %v6460_v19 }
 0x326   :  { %1153 = vmatprep.mubr.f32.mxu0 %v8686_v54  ;;  %7940 = vmatpush1.bf16.msra.mxu0 %v7939_v20 }
 0x327   :  { %7941 = vmatprep.subr.bf16.mxu0 %v8687_v34 }
 0x329   :  { %6477 = vmatmul.mubr.msk.f32.gmra.mrb[22].mxu0 %vm138_vm0, %v6461_v43 }
 0x32a   :  { %1159 = vmatprep.mubr.f32.mxu0 %v8686_v54  ;;  %7943 = vmatpush1.bf16.msra.mxu0 %v7942_v24 }
 0x32b   :  { %7944 = vmatprep.subr.bf16.mxu0 %v8687_v34 }
 0x32d   :  { %6478 = vmatmul.mubr.msk.f32.gmra.mrb[24].mxu0 %vm138_vm0, %v6462_v25 }
 0x32e   :  { %1165 = vmatprep.mubr.f32.mxu0 %v8686_v54  ;;  %7946 = vmatpush1.bf16.msra.mxu0 %v7945_v26 }
 0x32f   :  { %7947 = vmatprep.subr.bf16.mxu0 %v8687_v34 }
 0x331   :  { %6479 = vmatmul.mubr.msk.f32.gmra.mrb[26].mxu0 %vm138_vm0, %v6463_v31 }
 0x332   :  { %7949 = vmatpush1.bf16.msra.mxu0 %v7948_v32 }
 0x333   :  { %7950 = vmatprep.subr.bf16.mxu0 %v8687_v34 }
 0x336   :  { %7952 = vmatpush1.bf16.msra.mxu0 %v7951_v37 }
 0x337   :  { %7953 = vmatprep.subr.bf16.mxu0 %v8687_v34 }
 0x33a   :  { %7955 = vmatpush1.bf16.msra.mxu0 %v7954_v40  ;;  %v6484_v40 = vld [vmem:[%s9134_s29 + $0x10] sm:$0xff] }
 0x33b   :  { %7956 = vmatprep.subr.bf16.mxu0 %v8687_v34 }
 0x33e   :  { %7958 = vmatpush1.bf16.msra.mxu0 %v7957_v45 }
 0x33f   :  { %7959 = vmatprep.subr.bf16.mxu0 %v8687_v34 }
 0x342   :  { %7961 = vmatpush1.bf16.msra.mxu0 %v7960_v48 }
 0x343   :  { %7962 = vmatprep.subr.bf16.mxu0 %v8687_v34 }
 0x346   :  { %7964 = vmatpush1.bf16.msra.mxu0 %v7963_v53 }
 0x347   :  { %7965 = vmatprep.subr.bf16.mxu0 %v8687_v34 }
 0x34a   :  { %7967 = vmatpush1.bf16.msra.mxu0 %v7966_v61 }
 0x34b   :  { %7968 = vmatprep.subr.bf16.mxu0 %v8687_v34 }
 0x34e   :  { %7970 = vmatpush1.bf16.msra.mxu0 %v7969_v2 }
 0x34f   :  { %7971 = vmatprep.subr.bf16.mxu0 %v8687_v34 }
 0x352   :  { %7973 = vmatpush1.bf16.msra.mxu0 %v7972_v57 }
 0x353   :  { %7974 = vmatprep.subr.bf16.mxu0 %v8687_v34 }
 0x356   :  { %7976 = vmatpush1.bf16.msra.mxu0 %v7975_v62  ;;  %v6526_v62 = vld [vmem:[%s8887_s17 + $0x1c0] sm:$0xff] }
 0x357   :  { %7977 = vmatprep.subr.bf16.mxu0 %v8687_v34  ;;  %v8001_v6 = vpack.c.bf16 %v6527_v4, %v6526_v62 }
 0x35a   :  { %7979 = vmatpush1.bf16.msra.mxu0 %v7978_v10  ;;  %v8004_v10 = vpack.c.bf16 %v6529_v9, %v6528_v23 }
 0x3f8   :  { %v1149_v15 = vpop.f32.mrb[20].mxu0 }
 0x3f9   :  { %v1192_v16 = vadd.f32 %v1185_v21, %v1149_v15  ;;  %v1151_v17 = vpop.f32.mrb[21].mxu0  ;;  %v6533_v15 = vld [vmem:[%s8887_s17 + $0x1f8] sm:$0xff] }
 0x3fa   :  { %v1193_v29 = vadd.f32 %v1189_v14, %v1151_v17  ;;  %v6534_v17 = vld [vmem:[%s8887_s17 + $0x200] sm:$0xff] }
 0x3fb   :  { %v9093_v20 = vmax.f32 %v1192_v16, 0.0 }
 0x3fc   :  { %v9091_v18 = vmax.f32 %v1193_v29, 0.0  ;;  %v1155_v19 = vpop.f32.mrb[22].mxu0  ;;  %v6535_v29 = vld [vmem:[%s8887_s17 + $0x208] sm:$0xff] }
 0x3fd   :  { %v1194_v27 = vadd.f32 %v1185_v21, %v1155_v19  ;;  %v1157_v22 = vpop.f32.mrb[23].mxu0  ;;  %v6536_v19 = vld [vmem:[%s8887_s17 + $0x210] sm:$0xff] }
 0x3fe   :  { %v1195_v43 = vadd.f32 %v1189_v14, %v1157_v22  ;;  %6480 = vmatprep.mubr.msk.f32.mxu1 %vm1238_vm3, %v9091_v18  ;;  %6514 = vmatprep.mubr.msk.f32.mxu0 %vm1238_vm3, %v9091_v18 }
 0x3ff   :  { %1316 = vmatmul.mubr.f32.vlgmr.msra.gmra.mrb[44].mxu1 %v9093_v20  ;;  %1433 = vmatmul.mubr.f32.vlgmr.msra.gmra.mrb[28].mxu0 %v9093_v20  ;;  %v9103_v41 = vmax.f32 %v1194_v27, 0.0  ;;  %v6537_v27 = vld [vmem:[%s8887_s17 + $0x218] sm:$0xff] }
 0x400   :  { %v9101_v24 = vmax.f32 %v1195_v43, 0.0  ;;  %v1161_v36 = vpop.f32.mrb[24].mxu0  ;;  %v8016_v22 = vpack.c.bf16 %v6537_v27, %v6536_v19  ;;  %v6538_v43 = vld [vmem:[%s8887_s17 + $0x220] sm:$0xff]  ;;  %v1938_v19 = vld [vmem:[%s6393_s7 + $0x8] sm:$0xff] }
 0x401   :  { %v1196_v25 = vadd.f32 %v1185_v21, %v1161_v36  ;;  %v1163_v26 = vpop.f32.mrb[25].mxu0  ;;  %v6539_v36 = vld [vmem:[%s8887_s17 + $0x228] sm:$0xff] }
 0x402   :  { %v1197_v28 = vadd.f32 %v1189_v14, %v1163_v26  ;;  %6481 = vmatprep.mubr.msk.f32.mxu1 %vm1238_vm3, %v9101_v24  ;;  %6515 = vmatprep.mubr.msk.f32.mxu0 %vm1238_vm3, %v9101_v24  ;;  %v6540_v26 = vld [vmem:[%s8887_s17 + $0x230] sm:$0xff] }
 0x403   :  { %1321 = vmatmul.mubr.f32.gmra.mrb[46].mxu1 %v9103_v41  ;;  %1438 = vmatmul.mubr.f32.gmra.mrb[30].mxu0 %v9103_v41  ;;  %v9113_v32 = vmax.f32 %v1196_v25, 0.0  ;;  %v8019_v25 = vpack.c.bf16 %v6539_v36, %v6538_v43 }
 0x404   :  { %v9111_v30 = vmax.f32 %v1197_v28, 0.0  ;;  %v1167_v31 = vpop.f32.mrb[26].mxu0  ;;  %v6541_v28 = vld [vmem:[%s8887_s17 + $0x238] sm:$0xff] }
 0x405   :  { %v1198_v33 = vadd.f32 %v1185_v21, %v1167_v31  ;;  %v1169_v35 = vpop.f32.mrb[27].mxu0  ;;  %v8007_v21 = vpack.c.bf16 %v6531_v12, %v6530_v7  ;;  %v8022_v31 = vpack.c.bf16 %v6541_v28, %v6540_v26 }
 0x406   :  { %v1199_v37 = vadd.f32 %v1189_v14, %v1169_v35  ;;  %6482 = vmatprep.mubr.msk.f32.mxu1 %vm1238_vm3, %v9111_v30  ;;  %6516 = vmatprep.mubr.msk.f32.mxu0 %vm1238_vm3, %v9111_v30  ;;  %v6532_v14 = vld [vmem:[%s8887_s17 + $0x1f0] sm:$0xff]  ;;  %v6543_v35 = vld [vmem:[%s8887_s17 + $0x248] sm:$0xff] }
 0x407   :  { %1326 = vmatmul.mubr.f32.gmra.mrb[48].mxu1 %v9113_v32  ;;  %1443 = vmatmul.mubr.f32.gmra.mrb[32].mxu0 %v9113_v32  ;;  %v9123_v39 = vmax.f32 %v1198_v33, 0.0  ;;  %v8010_v16 = vpack.c.bf16 %v6533_v15, %v6532_v14  ;;  %v6542_v33 = vld [vmem:[%s8887_s17 + $0x240] sm:$0xff]  ;;  %v6525_v15 = vld [vmem:[%s9134_s29 + $0x28] sm:$0x3f] }
 0x408   :  { %v9121_v38 = vmax.f32 %v1199_v37, 0.0  ;;  %v8025_v37 = vpack.c.bf16 %v6543_v35, %v6542_v33  ;;  %v1939_v33 = vld [vmem:[%s6393_s7 + $0x10] sm:$0xff]  ;;  %v1940_v35 = vld [vmem:[%s6393_s7 + $0x18] sm:$0xff] }
 0x40a   :  { %6483 = vmatprep.mubr.msk.f32.mxu1 %vm1238_vm3, %v9121_v38  ;;  %6517 = vmatprep.mubr.msk.f32.mxu0 %vm1238_vm3, %v9121_v38 }
 0x40b   :  { %1331 = vmatmul.mubr.f32.gmra.mrb[50].mxu1 %v9123_v39  ;;  %1448 = vmatmul.mubr.f32.gmra.mrb[34].mxu0 %v9123_v39 }
 0x40c   :  { %7205 = vmatprep.mubr.msk.f32.mxu1 %vm1453_vm4, %v6484_v40  ;;  %v6544_v40 = vld [vmem:[%s8887_s17 + $0x250] sm:$0xff] }
 0x4d2   :  { %v1317_v42 = vpop.f32.mrb[44].mxu1  ;;  %v1434_v44 = vpop.f32.mrb[28].mxu0 }
 0x4d3   :  { %v1319_v45 = vpop.f32.mrb[45].mxu1  ;;  %v1436_v46 = vpop.f32.mrb[29].mxu0 }
 0x4d4   :  { %v6546_v45 = vld [vmem:[%s8887_s17 + $0x260] sm:$0xff]  ;;  %v6547_v46 = vld [vmem:[%s8887_s17 + $0x268] sm:$0xff] }
 0x4d6   :  { %v1322_v47 = vpop.f32.mrb[46].mxu1  ;;  %v1439_v48 = vpop.f32.mrb[30].mxu0 }
 0x4d7   :  { %v7990_v51 = vpack.c.bf16 %v1322_v47, %v1317_v42  ;;  %v7980_v52 = vpack.c.bf16 %v1439_v48, %v1434_v44  ;;  %v1324_v53 = vpop.f32.mrb[47].mxu1  ;;  %v1441_v59 = vpop.f32.mrb[31].mxu0  ;;  %v6545_v42 = vld [vmem:[%s8887_s17 + $0x258] sm:$0xff]  ;;  %v8031_v47 = vpack.c.bf16 %v6547_v46, %v6546_v45  ;;  %v6548_v48 = vld [vmem:[%s8887_s17 + $0x270] sm:$0xff] }
 0x4d8   :  { %v8028_v44 = vpack.c.bf16 %v6545_v42, %v6544_v40  ;;  %v6550_v53 = vld [vmem:[%s8887_s17 + $0x280] sm:$0xff]  ;;  %v6551_v59 = vld [vmem:[%s8887_s17 + $0x288] sm:$0xff] }
 0x4d9   :  { %7981 = vmatprep.subr.bf16.mxu1 %v7980_v52  ;;  %v6562_v40 = vld [vmem:[%s6392_s15] ss:$0 sm:$0xff]  ;;  %s6410_s15 = sld [smem:[%s10040_s0 + %s8715_s10]]  }
 0x4da   :  { %v1327_v60 = vpop.f32.mrb[48].mxu1  ;;  %v1444_v61 = vpop.f32.mrb[32].mxu0  ;;  %7983 = vmatpush3.bf16.msra.mxu1 %v7980_v52 }
 0x4db   :  { %v1329_v0 = vpop.f32.mrb[49].mxu1  ;;  %v1446_v1 = vpop.f32.mrb[33].mxu0 }
 0x4dc   :  { %v6553_v0 = vld [vmem:[%s8887_s17 + $0x298] sm:$0xff] }
 0x4de   :  { %v1332_v2 = vpop.f32.mrb[50].mxu1  ;;  %v1449_v8 = vpop.f32.mrb[34].mxu0 }
 0x4df   :  { %v7994_v57 = vpack.c.bf16 %v1332_v2, %v1327_v60  ;;  %v7984_v49 = vpack.c.bf16 %v1449_v8, %v1444_v61  ;;  %v1334_v55 = vpop.f32.mrb[51].mxu1  ;;  %v1451_v56 = vpop.f32.mrb[35].mxu0  ;;  %v8037_v60 = vpack.c.bf16 %v6551_v59, %v6550_v53  ;;  %v6552_v61 = vld [vmem:[%s8887_s17 + $0x290] sm:$0xff]  ;;  %v6524_v2 = vld [vmem:[%s9134_s29 + $0x20] sm:$0xff]  ;;  %v1842_v8 = vld [vmem:[%s9215_s3 + $0x28] sm:$0xff] }
 0x4e0   :  { %v8040_v1 = vpack.c.bf16 %v6553_v0, %v6552_v61  ;;  %v1844_v55 = vld [vmem:[%s9215_s3 + $0x38] sm:$0xff] }
 0x4e1   :  { %7986 = vmatprep.subr.msk.bf16.mxu1 %vm9138_vm7, %v7984_v49 }
 0x4e2   :  { %7989 = vmatpush3.bf16.msk.msra.mxu1 %vm9138_vm7, %v7984_v49  ;;  %v1843_v49 = vld [vmem:[%s9215_s3 + $0x30] sm:$0xff] }
 0x4e3   :  { %7991 = vmatprep.subr.bf16.mxu1 %v7990_v51  ;;  %v8064_v56 = vpack.c.bf16 %v1844_v55, %v1843_v49  ;;  %v2100_v49 = vld [vmem:[%s9266_s23 + $0x10] sm:$0xff]  ;;  %v2101_v55 = vld [vmem:[%s9266_s23 + $0x18] sm:$0xff] }
 0x4e5   :  { %7206 = vmatmul.mubr.msk.f32.vlgmr.msra.gmra.mrb[52].mxu1 %vm1453_vm4, %v6485_v58  ;;  %v1845_v58 = vld [vmem:[%s9215_s3 + $0x40] sm:$0xff] }
 0x4e6   :  { %7993 = vmatpush3.bf16.msra.mxu1 %v7990_v51  ;;  %7216 = vmatprep.mubr.msk.f32.mxu1 %vm1453_vm4, %v1208_v63  ;;  %v6549_v51 = vld [vmem:[%s8887_s17 + $0x278] sm:$0xff]  ;;  %v1846_v63 = vld [vmem:[%s9215_s3 + $0x48] sm:$0xff]  ;;  %s9441_s17 = sld [smem:[%s10040_s0 + %s8705_s14]]   ;;  %s8711_s14 = smov 24  }
 0x4e7   :  { %7996 = vmatprep.subr.msk.bf16.mxu1 %vm9138_vm7, %v7994_v57  ;;  %v8034_v52 = vpack.c.bf16 %v6549_v51, %v6548_v48  ;;  %v8068_v62 = vpack.c.bf16 %v1846_v63, %v1845_v58  ;;  %s9627_s18 = sld [smem:[%s10040_s0 + %s8711_s14]]  }
 0x4ea   :  { %7999 = vmatpush3.bf16.msk.msra.mxu1 %vm9138_vm7, %v7994_v57 }
 0x4eb   :  { %8000 = vmatprep.subr.bf16.mxu1 %v8687_v34 }
 0x4ed   :  { %7217 = vmatmul.mubr.msk.f32.vlgmr.msra.gmra.mrb[52].mxu1 %vm1453_vm4, %v1209_v3 }
 0x4ee   :  { %8002 = vmatpush1.bf16.msra.mxu1 %v8001_v6  ;;  %6554 = vmatprep.mubr.msk.f32.mxu1 %vm1238_vm3, %v9091_v18  ;;  %v8013_v18 = vpack.c.bf16 %v6535_v29, %v6534_v17  ;;  %v1848_v17 = vld [vmem:[%s9215_s3 + $0x58] sm:$0xff] }
 0x4ef   :  { %8003 = vmatprep.subr.bf16.mxu1 %v8687_v34 }
 0x4f2   :  { %8005 = vmatpush1.bf16.msra.mxu1 %v8004_v10 }
 0x4f3   :  { %8006 = vmatprep.subr.bf16.mxu1 %v8687_v34 }
 0x4f6   :  { %8008 = vmatpush1.bf16.msra.mxu1 %v8007_v21 }
 0x4f7   :  { %8009 = vmatprep.subr.bf16.mxu1 %v8687_v34 }
 0x4fa   :  { %8011 = vmatpush1.bf16.msra.mxu1 %v8010_v16  ;;  %v1847_v16 = vld [vmem:[%s9215_s3 + $0x50] sm:$0xff] }
 0x4fb   :  { %8012 = vmatprep.subr.bf16.mxu1 %v8687_v34  ;;  %v8072_v29 = vpack.c.bf16 %v1848_v17, %v1847_v16 }
 0x4fe   :  { %8014 = vmatpush1.bf16.msra.mxu1 %v8013_v18  ;;  %v1937_v18 = vld [vmem:[%s6393_s7] sm:$0xff] }
 0x4ff   :  { %8015 = vmatprep.subr.bf16.mxu1 %v8687_v34  ;;  %v8076_v27 = vpack.c.bf16 %v1938_v19, %v1937_v18  ;;  %v2201_v18 = vld [vmem:[%s9289_s1] sm:$0xff]  ;;  %v2202_v19 = vld [vmem:[%s9289_s1 + $0x8] sm:$0xff] }
 0x502   :  { %8017 = vmatpush1.bf16.msra.mxu1 %v8016_v22  ;;  %v6561_v22 = vld [vmem:[%s6390_s11] ss:$0 sm:$0xff] }
 0x503   :  { %8018 = vmatprep.subr.bf16.mxu1 %v8687_v34 }
 0x506   :  { %8020 = vmatpush1.bf16.msra.mxu1 %v8019_v25 }
 0x507   :  { %8021 = vmatprep.subr.bf16.mxu1 %v8687_v34 }
 0x50a   :  { %8023 = vmatpush1.bf16.msra.mxu1 %v8022_v31 }
 0x50b   :  { %8024 = vmatprep.subr.bf16.mxu1 %v8687_v34 }
 0x50e   :  { %8026 = vmatpush1.bf16.msra.mxu1 %v8025_v37  ;;  %v8080_v37 = vpack.c.bf16 %v1940_v35, %v1939_v33  ;;  %v2208_v33 = vld [vmem:[%s9289_s1 + $0x38] sm:$0xff] }
 0x50f   :  { %8027 = vmatprep.subr.bf16.mxu1 %v8687_v34 }
 0x512   :  { %8029 = vmatpush1.bf16.msra.mxu1 %v8028_v44 }
 0x513   :  { %8030 = vmatprep.subr.bf16.mxu1 %v8687_v34 }
 0x516   :  { %8032 = vmatpush1.bf16.msra.mxu1 %v8031_v47  ;;  %v6565_v47 = vld [vmem:[%s6394_s19] ss:$0 sm:$0xff]  ;;  %s8712_s19 = smov 21  }
 0x517   :  { %8033 = vmatprep.subr.bf16.mxu1 %v8687_v34  ;;  %s9642_s24 = sld [smem:[%s10040_s0 + %s8712_s19]]  }
 0x51a   :  { %8035 = vmatpush1.bf16.msra.mxu1 %v8034_v52 }
 0x51b   :  { %8036 = vmatprep.subr.bf16.mxu1 %v8687_v34 }
 0x51e   :  { %8038 = vmatpush1.bf16.msra.mxu1 %v8037_v60 }
 0x51f   :  { %8039 = vmatprep.subr.bf16.mxu1 %v8687_v34 }
 0x522   :  { %8041 = vmatpush1.bf16.msra.mxu1 %v8040_v1 }
 0x525   :  { %1720 = vmatmul.mubr.f32.vlgmr.msra.gmra.mrb[54].mxu1 %v9093_v20  ;;  %v1837_v20 = vld [vmem:[%s9215_s3] sm:$0xff] }
 0x526   :  { %6555 = vmatprep.mubr.msk.f32.mxu1 %vm1238_vm3, %v9101_v24  ;;  %v1838_v24 = vld [vmem:[%s9215_s3 + $0x8] sm:$0xff] }
 0x529   :  { %1725 = vmatmul.mubr.f32.gmra.mrb[56].mxu1 %v9103_v41  ;;  %v1839_v41 = vld [vmem:[%s9215_s3 + $0x10] sm:$0xff] }
 0x52a   :  { %6556 = vmatprep.mubr.msk.f32.mxu1 %vm1238_vm3, %v9111_v30  ;;  %v8052_v30 = vpack.c.bf16 %v1838_v24, %v1837_v20 }
 0x52c   :  { %8053 = vmatprep.subr.bf16.mxu0 %v8052_v30 }
 0x52d   :  { %1730 = vmatmul.mubr.f32.gmra.mrb[58].mxu1 %v9113_v32  ;;  %v1840_v32 = vld [vmem:[%s9215_s3 + $0x18] sm:$0xff]  ;;  %8055 = vmatpush3.bf16.msra.mxu0 %v8052_v30 }
 0x52e   :  { %6557 = vmatprep.mubr.msk.f32.mxu1 %vm1238_vm3, %v9121_v38  ;;  %v8056_v38 = vpack.c.bf16 %v1840_v32, %v1839_v41 }
 0x530   :  { %8057 = vmatprep.subr.bf16.mxu0 %v8056_v38 }
 0x531   :  { %1735 = vmatmul.mubr.f32.gmra.mrb[60].mxu1 %v9123_v39  ;;  %v1841_v39 = vld [vmem:[%s9215_s3 + $0x20] sm:$0xff]  ;;  %8059 = vmatpush3.bf16.msra.mxu0 %v8056_v38  ;;  %s8709_s3 = smov 16  }
 0x532   :  { %7227 = vmatprep.mubr.msk.f32.mxu1 %vm1453_vm4, %v6524_v2  ;;  %v8060_v57 = vpack.c.bf16 %v1842_v8, %v1841_v39  ;;  %v2098_v39 = vld [vmem:[%s9266_s23] sm:$0xff]  ;;  %v2099_v8 = vld [vmem:[%s9266_s23 + $0x8] sm:$0xff]  ;;  %s9586_s7 = sld [smem:[%s10040_s0 + %s8709_s3]]   ;;  %s8714_s3 = smov 23  }
 0x533   :  { %s6405_s8 = sld [smem:[%s10040_s0 + %s8714_s3]]  }
 0x534   :  { %8061 = vmatprep.subr.bf16.mxu0 %v8060_v57 }
 0x535   :  { %8063 = vmatpush3.bf16.msra.mxu0 %v8060_v57  ;;  %v8084_v57 = vpack.c.bf16 %v2099_v8, %v2098_v39 }
 0x536   :  { %8065 = vmatprep.subr.bf16.mxu0 %v8064_v56 }
 0x539   :  { %8067 = vmatpush3.bf16.msra.mxu0 %v8064_v56  ;;  %v8088_v56 = vpack.c.bf16 %v2101_v55, %v2100_v49 }
 0x53a   :  { %8069 = vmatprep.subr.bf16.mxu0 %v8068_v62 }
 0x53d   :  { %8071 = vmatpush3.bf16.msra.mxu0 %v8068_v62 }
 0x53e   :  { %8073 = vmatprep.subr.bf16.mxu0 %v8072_v29 }
 0x541   :  { %8075 = vmatpush3.bf16.msra.mxu0 %v8072_v29 }
 0x542   :  { %8077 = vmatprep.subr.bf16.mxu0 %v8076_v27 }
 0x5f8   :  { %v1721_v4 = vpop.f32.mrb[54].mxu1 }
 0x5f9   :  { %v1723_v3 = vpop.f32.mrb[55].mxu1 }
 0x5fc   :  { %v1726_v6 = vpop.f32.mrb[56].mxu1 }
 0x5fd   :  { %v8042_v23 = vpack.c.bf16 %v1726_v6, %v1721_v4  ;;  %v1728_v9 = vpop.f32.mrb[57].mxu1 }
 0x5ff   :  { %8043 = vmatprep.subr.bf16.mxu1 %v8042_v23 }
 0x600   :  { %v1731_v10 = vpop.f32.mrb[58].mxu1  ;;  %8045 = vmatpush3.bf16.msra.mxu1 %v8042_v23  ;;  %v9278_v23 = vld [vmem:[%s9275_s27] sm:$0xff] }
 0x601   :  { %v1733_v7 = vpop.f32.mrb[59].mxu1  ;;  %v2089_v9 = vrot.slane %v9278_v23, %v9084_v5 }
 0x604   :  { %v1736_v12 = vpop.f32.mrb[60].mxu1 }
 0x605   :  { %v8046_v21 = vpack.c.bf16 %v1736_v12, %v1731_v10  ;;  %v1738_v14 = vpop.f32.mrb[61].mxu1  ;;  %v2095_v12 = vrot.slane %v9278_v23, %v9087_v13 }
 0x607   :  { %8048 = vmatprep.subr.msk.bf16.mxu1 %vm9138_vm7, %v8046_v21 }
 0x608   :  { %8051 = vmatpush3.bf16.msk.msra.mxu1 %vm9138_vm7, %v8046_v21 }
 0x60b   :  { %7228 = vmatmul.mubr.msk.f32.vlgmr.msra.gmra.mrb[52].mxu1 %vm1453_vm4, %v6525_v15 }
 0x6de   :  { %v7229_v43 = vpop.f32.mrb[52].mxu1 }
 0x6df   :  { %v1834_v36 = vadd.f32 %v7229_v43, %v6561_v22  ;;  %v1815_v25 = vpop.f32.mrb[53].mxu1  ;;  %v2204_v43 = vld [vmem:[%s9289_s1 + $0x18] sm:$0xff] }
 0x6e0   :  { %v1833_v26 = vadd.f32 %v6561_v22, %v1815_v25  ;;  %v2203_v22 = vld [vmem:[%s9289_s1 + $0x10] sm:$0xff]  ;;  %v2205_v25 = vld [vmem:[%s9289_s1 + $0x20] sm:$0xff] }
 0x6e1   :  { %v1836_v31 = vmax.f32 %v1834_v36, 0.0  ;;  %v8096_v36 = vpack.c.bf16 %v2204_v43, %v2203_v22  ;;  %v6585_v43 = vld [vmem:[%s9333_s9 + $0x58] sm:$0xff] }
 0x6e2   :  { %v1835_v28 = vmax.f32 %v1833_v26, 0.0  ;;  %v2206_v26 = vld [vmem:[%s9289_s1 + $0x28] sm:$0xff] }
 0x6e4   :  { %7254 = vmatprep.mubr.msk.f32.mxu0 %vm1238_vm3, %v1835_v28  ;;  %v8100_v28 = vpack.c.bf16 %v2206_v26, %v2205_v25  ;;  %v6576_v25 = vld [vmem:[%s9333_s9 + $0x20] sm:$0xff]  ;;  %v6577_v26 = vld [vmem:[%s9333_s9 + $0x28] sm:$0xff] }
 0x6e5   :  { %7255 = vmatmul.mubr.msk.f32.vlgmr.msra.gmra.mrb[36].mxu0 %vm1238_vm3, %v1836_v31  ;;  %v2207_v31 = vld [vmem:[%s9289_s1 + $0x30] sm:$0xff] }
 0x6e6   :  { %8079 = vmatpush3.bf16.msra.mxu0 %v8076_v27  ;;  %v8092_v27 = vpack.c.bf16 %v2202_v19, %v2201_v18  ;;  %v8104_v35 = vpack.c.bf16 %v2208_v33, %v2207_v31  ;;  %v2338_v18 = vld [vmem:[%s9333_s9 + $0x10] sm:$0xff]  ;;  %v2339_v19 = vld [vmem:[%s9333_s9 + $0x18] sm:$0xff] }
 0x6e7   :  { %8081 = vmatprep.subr.bf16.mxu0 %v8080_v37  ;;  %v8112_v22 = vpack.c.bf16 %v2339_v19, %v2338_v18  ;;  %v2035_v18 = vld [vmem:[%s9379_s13 + $0x28] sm:$0xff]  ;;  %v2036_v19 = vld [vmem:[%s9379_s13 + $0x30] sm:$0xff] }
 0x6ea   :  { %8083 = vmatpush3.bf16.msra.mxu0 %v8080_v37  ;;  %v2056_v37 = vld [vmem:[%s9302_s5] sm:$0x3] }
 0x6eb   :  { %8085 = vmatprep.subr.bf16.mxu0 %v8084_v57 }
 0x7b8   :  { %v7256_v42 = vpop.f32.mrb[36].mxu0 }
 0x7b9   :  { %v1928_v44 = vpop.f32.mrb[37].mxu0  ;;  %v1934_v46 = vadd.f32 %v7256_v42, %v6562_v40 }
 0x7ba   :  { %v1929_v45 = vadd.f32 %v6562_v40, %v1928_v44  ;;  %v2105_v40 = vrot.slane %v2056_v37, %v9084_v5 }
 0x7bc   :  { %7265 = vmatprep.mubr.msk.f32.mxu0 %vm1948_vm8, %v1929_v45 }
 0x7bd   :  { %7266 = vmatmul.mubr.msk.f32.vlgmr.msra.gmra.mrb[38].mxu0 %vm1948_vm8, %v1934_v46 }
 0x7be   :  { %8087 = vmatpush3.bf16.msra.mxu0 %v8084_v57 }
 0x7bf   :  { %8089 = vmatprep.subr.bf16.mxu0 %v8088_v56 }
 0x7c2   :  { %8091 = vmatpush3.bf16.msra.mxu0 %v8088_v56 }
 0x7c3   :  { %8093 = vmatprep.subr.bf16.mxu0 %v8092_v27 }
 0x890   :  { %v7267_v48 = vpop.f32.mrb[38].mxu0 }
 0x891   :  { %v2021_v51 = vpop.f32.mrb[39].mxu0  ;;  %v9253_v53 = vadd.f32 %v7267_v48, %v6565_v47 }
 0x892   :  { %v9251_v52 = vadd.f32 %v6565_v47, %v2021_v51 }
 0x893   :  { %v2062_v60 = vsel %vm2061_vm9, %v9253_v53, 0.0 }
 0x894   :  { %v2058_v59 = vsel %vm1948_vm8, %v9251_v52, 0.0 }
 0x895   :  { %2059 = vadd.xlane.f32.xlu0 %v2058_v59 }
 0x899   :  { %2063 = vadd.xlane.f32.xlu0 %v2062_v60 }
 0x922   :  { %v2060_v61 = vpop.xlane.xlu0 %2059 }
 0x923   :  { %v2066_v0 = vmul.f32 0.03125, %v2060_v61 }
 0x925   :  { %v2068_v1 = vsub.f32 %v9251_v52, %v2066_v0 }
 0x926   :  { %v2064_v2 = vpop.xlane.xlu0 %2063 }
 0x927   :  { %v2067_v20 = vmul.f32 0.03125, %v2064_v2  ;;  %v2070_v24 = vmul.f32 %v2068_v1, %v2068_v1 }
 0x929   :  { %v2069_v41 = vsub.f32 %v9253_v53, %v2067_v20  ;;  %v2072_v30 = vsel %vm1948_vm8, %v2070_v24, 0.0  ;;  %v9309_v24 = vsub.s32 2, %v9081_v11 }
 0x92a   :  { %2073 = vadd.xlane.f32.xlu1 %v2072_v30 }
 0x92b   :  { %v2071_v32 = vmul.f32 %v2069_v41, %v2069_v41 }
 0x92d   :  { %v2075_v38 = vsel %vm2061_vm9, %v2071_v32, 0.0 }
 0x92e   :  { %2076 = vadd.xlane.f32.xlu1 %v2075_v38 }
 0x9b7   :  { %v2074_v58 = vpop.xlane.xlu1 %2073 }
 0x9b8   :  { %v2078_v63 = vmul.f32 0.03125, %v2074_v58 }
 0x9ba   :  { %v2080_v62 = vadd.f32 1e-05, %v2078_v63 }
 0x9bb   :  { %v2077_v4 = vpop.xlane.xlu1 %2076 }
 0x9bc   :  { %8527 = vrsqrt.f32 %v2080_v62  ;;  %v2079_v3 = vmul.f32 0.03125, %v2077_v4 }
 0x9be   :  { %v2081_v6 = vadd.f32 1e-05, %v2079_v3 }
 0x9c0   :  { %8529 = vrsqrt.f32 %v2081_v6 }
 0x9c6   :  { %v8528_v10 = vpop.eup %8527 }
 0x9c7   :  { %v2084_v7 = vmul.f32 %v8528_v10, %v2068_v1 }
 0x9c9   :  { %v2090_v21 = vmul.f32 %v2089_v9, %v2084_v7 }
 0x9ca   :  { %v8530_v14 = vpop.eup %8529 }
 0x9cb   :  { %v2085_v15 = vmul.f32 %v8530_v14, %v2069_v41  ;;  %v2096_v16 = vadd.f32 %v2095_v12, %v2090_v21  ;;  %v9312_v41 = vld [vmem:[%s9275_s27 + $0x8] sm:$0xff]  ;;  %v2336_v21 = vld [vmem:[%s9333_s9] sm:$0xff] }
 0x9cc   :  { %v2212_v30 = vrot.slane %v9312_v41, %v9309_v24  ;;  %v2337_v14 = vld [vmem:[%s9333_s9 + $0x8] sm:$0xff] }
 0x9cd   :  { %v2091_v17 = vmul.f32 %v2089_v9, %v2085_v15  ;;  %7276 = vmatprep.mubr.msk.f32.mxu0 %vm1948_vm8, %v2096_v16  ;;  %v8108_v15 = vpack.c.bf16 %v2337_v14, %v2336_v21  ;;  %v6582_v16 = vld [vmem:[%s9333_s9 + $0x40] sm:$0xff] }
 0x9cf   :  { %v2097_v29 = vadd.f32 %v2095_v12, %v2091_v17  ;;  %v6583_v17 = vld [vmem:[%s9333_s9 + $0x48] sm:$0xff] }
 0x9d1   :  { %7277 = vmatmul.mubr.msk.f32.vlgmr.msra.gmra.mrb[40].mxu0 %vm1948_vm8, %v2097_v29  ;;  %v8124_v29 = vpack.c.bf16 %v6583_v17, %v6582_v16  ;;  %v2032_v16 = vld [vmem:[%s9379_s13 + $0x10] sm:$0xff]  ;;  %v2033_v17 = vld [vmem:[%s9379_s13 + $0x18] sm:$0xff] }
 0x9d2   :  { %8095 = vmatpush3.bf16.msra.mxu0 %v8092_v27  ;;  %v6584_v27 = vld [vmem:[%s9333_s9 + $0x50] sm:$0xff] }
 0x9d3   :  { %8097 = vmatprep.subr.bf16.mxu0 %v8096_v36  ;;  %8125 = vmatprep.subr.bf16.mxu1 %v8124_v29 }
 0x9d4   :  { %8127 = vmatpush3.bf16.msra.mxu1 %v8124_v29  ;;  %v2034_v29 = vld [vmem:[%s9379_s13 + $0x20] sm:$0xff] }
 0x9d6   :  { %8099 = vmatpush3.bf16.msra.mxu0 %v8096_v36  ;;  %v8128_v36 = vpack.c.bf16 %v6585_v43, %v6584_v27 }
 0x9d7   :  { %8101 = vmatprep.subr.bf16.mxu0 %v8100_v28 }
 0x9d8   :  { %8129 = vmatprep.subr.bf16.mxu1 %v8128_v36 }
 0x9d9   :  { %8131 = vmatpush3.bf16.msra.mxu1 %v8128_v36 }
 0x9da   :  { %8103 = vmatpush3.bf16.msra.mxu0 %v8100_v28  ;;  %v8116_v28 = vpack.c.bf16 %v6577_v26, %v6576_v25  ;;  %8136 = vmatprep.subr.bf16.mxu1 %v8687_v34  ;;  %v9444_v25 = vld [vmem:[%s9441_s17] sm:$0xff]  ;;  %v9447_v26 = vld [vmem:[%s9441_s17 + $0x8] sm:$0xff] }
 0x9db   :  { %8105 = vmatprep.subr.bf16.mxu0 %v8104_v35 }
 0x9de   :  { %8107 = vmatpush3.bf16.msra.mxu0 %v8104_v35 }
 0x9df   :  { %8109 = vmatprep.subr.bf16.mxu0 %v8108_v15 }
 0xaa4   :  { %v7278_v42 = vpop.f32.mrb[40].mxu0 }
 0xaa5   :  { %v2184_v44 = vadd.f32 %v7278_v42, %v2105_v40  ;;  %v2178_v45 = vpop.f32.mrb[41].mxu0 }
 0xaa6   :  { %v2179_v46 = vadd.f32 %v2178_v45, %v2105_v40  ;;  %v2327_v45 = vrot.slane %v9278_v23, %v9309_v24 }
 0xaa7   :  { %v6571_v47 = vmul.f32 -1.442695, %v2184_v44 }
 0xaa8   :  { %v6570_v48 = vmul.f32 -1.442695, %v2179_v46 }
 0xaa9   :  { %8531 = vpow2.f32 %v6571_v47 }
 0xaaa   :  { %8533 = vpow2.f32 %v6570_v48 }
 0xab3   :  { %v8532_v51 = vpop.eup %8531 }
 0xab4   :  { %v8534_v59 = vpop.eup %8533  ;;  %v2194_v60 = vadd.f32 1.0, %v8532_v51 }
 0xab5   :  { %v2193_v61 = vadd.f32 1.0, %v8534_v59 }
 0xab6   :  { %8535 = vrcp.f32 %v2194_v60 }
 0xab7   :  { %8537 = vrcp.f32 %v2193_v61 }
 0xac0   :  { %v8536_v0 = vpop.eup %8535 }
 0xac1   :  { %v8538_v1 = vpop.eup %8537  ;;  %v2200_v20 = vmul.f32 %v8536_v0, %v2184_v44  ;;  %v9347_v44 = vsub.s32 3, %v9081_v11  ;;  %v6578_v0 = vld [vmem:[%s9333_s9 + $0x30] sm:$0xff] }
 0xac2   :  { %v2199_v2 = vmul.f32 %v8538_v1, %v2179_v46  ;;  %v6579_v1 = vld [vmem:[%s9333_s9 + $0x38] sm:$0xff] }
 0xac3   :  { %v2333_v59 = vrot.slane %v9278_v23, %v9347_v44 }
 0xac4   :  { %7295 = vmatprep.mubr.msk.f32.mxu0 %vm138_vm0, %v2199_v2 }
 0xac5   :  { %7296 = vmatmul.mubr.msk.f32.vlgmr.msra.gmra.mrb[42].mxu0 %vm138_vm0, %v2200_v20 }
 0xac6   :  { %8111 = vmatpush3.bf16.msra.mxu0 %v8108_v15  ;;  %v2031_v15 = vld [vmem:[%s9379_s13 + $0x8] sm:$0xff] }
 0xac7   :  { %8113 = vmatprep.subr.bf16.mxu0 %v8112_v22 }
 0xaca   :  { %8115 = vmatpush3.bf16.msra.mxu0 %v8112_v22 }
 0xacb   :  { %8117 = vmatprep.subr.bf16.mxu0 %v8116_v28 }
 0xb98   :  { %v7297_v32 = vpop.f32.mrb[42].mxu0 }
 0xb99   :  { %v2291_v38 = vadd.f32 %v7297_v32, %v2212_v30  ;;  %v2285_v39 = vpop.f32.mrb[43].mxu0  ;;  %v9367_v32 = vsub.s32 4, %v9081_v11 }
 0xb9a   :  { %v2286_v8 = vadd.f32 %v2285_v39, %v2212_v30  ;;  %v8120_v30 = vpack.c.bf16 %v6579_v1, %v6578_v0 }
 0xb9b   :  { %v2295_v57 = vmul.f32 0.5, %v2291_v38  ;;  %v9370_v38 = vsub.s32 6, %v9081_v11  ;;  %v2343_v39 = vrot.slane %v9312_v41, %v9367_v32 }
 0xb9c   :  { %v2294_v49 = vmul.f32 0.5, %v2286_v8 }
 0xb9d   :  { %v9317_v55 = vadd.f32 %v2295_v57, %v9253_v53  ;;  %v2517_v8 = vrot.slane %v9312_v41, %v9370_v38 }
 0xb9e   :  { %v9320_v56 = vadd.f32 %v2294_v49, %v9251_v52 }
 0xb9f   :  { %v2301_v58 = vsel %vm2061_vm9, %v9317_v55, 0.0 }
 0xba0   :  { %2302 = vadd.xlane.f32.xlu1 %v2301_v58  ;;  %v2298_v63 = vsel %vm1948_vm8, %v9320_v56, 0.0 }
 0xba1   :  { %2299 = vadd.xlane.f32.xlu0 %v2298_v63 }
 0xc2d   :  { %v2303_v62 = vpop.xlane.xlu1 %2302 }
 0xc2e   :  { %v2305_v4 = vmul.f32 0.03125, %v2303_v62  ;;  %v2300_v3 = vpop.xlane.xlu0 %2299 }
 0xc2f   :  { %v2304_v6 = vmul.f32 0.03125, %v2300_v3  ;;  %v9384_v3 = vsub.s32 5, %v9081_v11 }
 0xc30   :  { %v2307_v9 = vsub.f32 %v9317_v55, %v2305_v4 }
 0xc31   :  { %v2306_v53 = vsub.f32 %v9320_v56, %v2304_v6 }
 0xc32   :  { %v2309_v10 = vmul.f32 %v2307_v9, %v2307_v9 }
 0xc33   :  { %v2308_v7 = vmul.f32 %v2306_v53, %v2306_v53 }
 0xc34   :  { %v2313_v52 = vsel %vm2061_vm9, %v2309_v10, 0.0 }
 0xc35   :  { %2314 = vadd.xlane.f32.xlu1 %v2313_v52  ;;  %v2310_v12 = vsel %vm1948_vm8, %v2308_v7, 0.0  ;;  %v2030_v7 = vld [vmem:[%s9379_s13] sm:$0xff] }
 0xc36   :  { %2311 = vadd.xlane.f32.xlu0 %v2310_v12 }
 0xcc2   :  { %v2315_v31 = vpop.xlane.xlu1 %2314 }
 0xcc3   :  { %v2317_v33 = vmul.f32 0.03125, %v2315_v31  ;;  %v2312_v35 = vpop.xlane.xlu0 %2311 }
 0xcc4   :  { %v2316_v37 = vmul.f32 0.03125, %v2312_v35 }
 0xcc5   :  { %v2319_v40 = vadd.f32 1e-05, %v2317_v33 }
 0xcc6   :  { %v2318_v42 = vadd.f32 1e-05, %v2316_v37 }
 0xcc7   :  { %8539 = vrsqrt.f32 %v2319_v40 }
 0xcc8   :  { %8541 = vrsqrt.f32 %v2318_v42 }
 0xcd1   :  { %v8540_v46 = vpop.eup %8539 }
 0xcd2   :  { %v8542_v47 = vpop.eup %8541  ;;  %v2323_v48 = vmul.f32 %v8540_v46, %v2307_v9  ;;  %v9460_v46 = vld [vmem:[%s9441_s17 + $0x10] sm:$0xff] }
 0xcd3   :  { %v2322_v51 = vmul.f32 %v8542_v47, %v2306_v53  ;;  %v2433_v53 = vrot.slane %v9312_v41, %v9384_v3  ;;  %v9465_v47 = vld [vmem:[%s9441_s17 + $0x18] sm:$0xff] }
 0xcd4   :  { %v2329_v60 = vmul.f32 %v2327_v45, %v2323_v48 }
 0xcd5   :  { %v2328_v61 = vmul.f32 %v2327_v45, %v2322_v51 }
 0xcd6   :  { %v2335_v20 = vadd.f32 %v2333_v59, %v2329_v60 }
 0xcd7   :  { %v2334_v2 = vadd.f32 %v2333_v59, %v2328_v61 }
 0xcd9   :  { %7306 = vmatprep.mubr.msk.f32.mxu0 %vm1948_vm8, %v2334_v2  ;;  %7328 = vmatprep.mubr.msk.f32.mxu1 %vm1948_vm8, %v2334_v2 }
 0xcda   :  { %7307 = vmatmul.mubr.msk.f32.vlgmr.msra.gmra.mrb[44].mxu0 %vm1948_vm8, %v2335_v20  ;;  %7329 = vmatmul.mubr.msk.f32.vlgmr.msra.gmra.mrb[62].mxu1 %vm1948_vm8, %v2335_v20 }
 0xcdb   :  { %8119 = vmatpush3.bf16.msra.mxu0 %v8116_v28  ;;  %7317 = vmatprep.mubr.msk.f32.mxu0 %vm1948_vm8, %v2334_v2  ;;  %v9472_v2 = vld [vmem:[%s9441_s17 + $0x20] sm:$0xff] }
 0xcdc   :  { %8121 = vmatprep.subr.bf16.mxu0 %v8120_v30  ;;  %7360 = vmatprep.mubr.msk.f32.mxu1 %vm8703_vm10, %v8686_v54 }
 0xcdf   :  { %8123 = vmatpush3.bf16.msra.mxu0 %v8120_v30 }
 0xce0   :  { %8132 = vmatprep.subr.bf16.mxu0 %v8687_v34 }
 0xce2   :  { %7318 = vmatmul.mubr.msk.f32.vlgmr.msra.gmra.mrb[46].mxu0 %vm1948_vm8, %v2335_v20  ;;  %v9477_v20 = vld [vmem:[%s9441_s17 + $0x28] sm:$0xff] }
 0xce3   :  { %7335 = vmatprep.mubr.msk.f32.mxu0 %vm8703_vm10, %v8686_v54 }
 0xdad   :  { %v7308_v57 = vpop.f32.mrb[44].mxu0  ;;  %v7330_v49 = vpop.f32.mrb[62].mxu1 }
 0xdae   :  { %v9381_v58 = vadd.f32 %v7308_v57, %v2343_v39  ;;  %v2590_v63 = vadd.f32 %v7330_v49, %v2517_v8  ;;  %v2416_v62 = vpop.f32.mrb[45].mxu0  ;;  %v2584_v4 = vpop.f32.mrb[63].mxu1  ;;  %v9482_v49 = vld [vmem:[%s9441_s17 + $0x30] sm:$0xff] }
 0xdaf   :  { %v2585_v6 = vadd.f32 %v2584_v4, %v2517_v8  ;;  %v2417_v27 = vadd.f32 %v2416_v62, %v2343_v39 }
 0xdb1   :  { %v8137_v9 = vpack.c.bf16 %v2590_v63, %v2585_v6  ;;  %v2835_v22 = vmul.f32 0.35355338, %v2417_v27  ;;  %v2048_v27 = vld [vmem:[%s9496_s21 + $0x20] sm:$0xff] }
 0xdb3   :  { %8139 = vmatpush3.bf16.msk.msra.mxu1 %vm9138_vm7, %v8137_v9  ;;  %v2836_v9 = vmul.f32 0.35355338, %v9381_v58  ;;  %v2052_v58 = vld [vmem:[%s9507_s26 + $0x8] sm:$0x3f] }
 0xdb5   :  { %v7319_v10 = vpop.f32.mrb[46].mxu0 }
 0xdb6   :  { %v2506_v52 = vadd.f32 %v7319_v10, %v2433_v53  ;;  %v2500_v12 = vpop.f32.mrb[47].mxu0  ;;  %7361 = vmatmul.mubr.msk.f32.vlgmr.msra.gmra.mrb[64].mxu1 %vm2593_vm11, %v2030_v7  ;;  %v2045_v10 = vld [vmem:[%s9496_s21 + $0x8] sm:$0xff] }
 0xdb7   :  { %v2501_v21 = vadd.f32 %v2500_v12, %v2433_v53  ;;  %7363 = vmatprep.mubr.msk.f32.mxu1 %vm8703_vm10, %v8686_v54  ;;  %v2044_v53 = vld [vmem:[%s9496_s21] sm:$0xff] }
 0xdb9   :  { %v8133_v14 = vpack.c.bf16 %v2506_v52, %v2501_v21  ;;  %v2051_v52 = vld [vmem:[%s9507_s26] sm:$0xff] }
 0xdba   :  { %7364 = vmatmul.mubr.msk.f32.gmra.mrb[66].mxu1 %vm2593_vm11, %v2031_v15 }
 0xdbb   :  { %8135 = vmatpush3.bf16.msk.msra.mxu0 %vm9138_vm7, %v8133_v14  ;;  %7366 = vmatprep.mubr.msk.f32.mxu1 %vm8703_vm10, %v8686_v54 }
 0xdbe   :  { %7336 = vmatmul.mubr.msk.f32.vlgmr.msra.gmra.mrb[48].mxu0 %vm2593_vm11, %v2030_v7  ;;  %7367 = vmatmul.mubr.msk.f32.gmra.mrb[68].mxu1 %vm2593_vm11, %v2032_v16  ;;  %v9500_v7 = vpack.c.bf16 %v2045_v10, %v2044_v53 }
 0xdbf   :  { %7338 = vmatprep.mubr.msk.f32.mxu0 %vm8703_vm10, %v8686_v54  ;;  %7369 = vmatprep.mubr.msk.f32.mxu1 %vm8703_vm10, %v8686_v54 }
 0xdc0   :  { %8159 = vmatprep.subr.bf16.mxu1 %v9500_v7 }
 0xdc1   :  { %8161 = vmatpush3.bf16.msra.mxu1 %v9500_v7 }
 0xdc2   :  { %7339 = vmatmul.mubr.msk.f32.gmra.mrb[50].mxu0 %vm2593_vm11, %v2031_v15  ;;  %7370 = vmatmul.mubr.msk.f32.gmra.mrb[70].mxu1 %vm2593_vm11, %v2033_v17 }
 0xdc3   :  { %7341 = vmatprep.mubr.msk.f32.mxu0 %vm8703_vm10, %v8686_v54  ;;  %7372 = vmatprep.mubr.msk.f32.mxu1 %vm8703_vm10, %v8686_v54 }
 0xdc6   :  { %7342 = vmatmul.mubr.msk.f32.gmra.mrb[52].mxu0 %vm2593_vm11, %v2032_v16  ;;  %7373 = vmatmul.mubr.msk.f32.gmra.mrb[72].mxu1 %vm2593_vm11, %v2034_v29 }
 0xdc7   :  { %7344 = vmatprep.mubr.msk.f32.mxu0 %vm8703_vm10, %v8686_v54  ;;  %7375 = vmatprep.mubr.msk.f32.mxu1 %vm8703_vm10, %v8686_v54 }
 0xdca   :  { %7345 = vmatmul.mubr.msk.f32.gmra.mrb[54].mxu0 %vm2593_vm11, %v2033_v17  ;;  %7376 = vmatmul.mubr.msk.f32.gmra.mrb[74].mxu1 %vm2593_vm11, %v2035_v18 }
 0xdcb   :  { %7347 = vmatprep.mubr.msk.f32.mxu0 %vm8703_vm10, %v8686_v54  ;;  %7378 = vmatprep.mubr.msk.f32.mxu1 %vm8703_vm10, %v8686_v54 }
 0xdce   :  { %7348 = vmatmul.mubr.msk.f32.gmra.mrb[56].mxu0 %vm2593_vm11, %v2034_v29  ;;  %7379 = vmatmul.mubr.msk.f32.gmra.mrb[76].mxu1 %vm2593_vm11, %v2036_v19  ;;  %v2046_v29 = vld [vmem:[%s9496_s21 + $0x10] sm:$0xff] }
 0xdcf   :  { %7350 = vmatprep.mubr.msk.f32.mxu0 %vm8703_vm10, %v8686_v54 }
 0xdd2   :  { %7351 = vmatmul.mubr.msk.f32.gmra.mrb[58].mxu0 %vm2593_vm11, %v2035_v18  ;;  %v2047_v18 = vld [vmem:[%s9496_s21 + $0x18] sm:$0xff] }
 0xdd3   :  { %7353 = vmatprep.mubr.msk.f32.mxu0 %vm8703_vm10, %v8686_v54 }
 0xdd6   :  { %7354 = vmatmul.mubr.msk.f32.gmra.mrb[60].mxu0 %vm2593_vm11, %v2036_v19  ;;  %v9515_v19 = vpack.c.bf16 %v2047_v18, %v2046_v29 }
 0xdd7   :  { %7395 = vmatprep.mubr.msk.f32.mxu0 %vm1948_vm8, %v2835_v22  ;;  %v2049_v22 = vld [vmem:[%s9496_s21 + $0x28] sm:$0xff] }
 0xdd8   :  { %8163 = vmatprep.subr.bf16.mxu1 %v9515_v19 }
 0xdd9   :  { %8165 = vmatpush3.bf16.msra.mxu1 %v9515_v19 }
 0xe91   :  { %v2684_v43 = vpop.f32.mrb[48].mxu0 }
 0xe92   :  { %v7337_v36 = vpop.f32.mrb[49].mxu0  ;;  %v2718_v31 = vmul.f32 %v2684_v43, %v9444_v25  ;;  %v9519_v43 = vpack.c.bf16 %v2049_v22, %v2048_v27 }
 0xe93   :  { %v2050_v36 = vld [vmem:[%s9496_s21 + $0x30] sm:$0xff] }
 0xe94   :  { %8167 = vmatprep.subr.bf16.mxu1 %v9519_v43 }
 0xe95   :  { %v2689_v28 = vpop.f32.mrb[50].mxu0  ;;  %8169 = vmatpush3.bf16.msra.mxu1 %v9519_v43 }
 0xe96   :  { %v2719_v33 = vmul.f32 %v2689_v28, %v9447_v26  ;;  %v7340_v35 = vpop.f32.mrb[51].mxu0  ;;  %7410 = vmatprep.subr.mxu1 %v2050_v36  ;;  %v2794_v28 = vpop.f32.mrb[64].mxu1 }
 0xe98   :  { %v8140_v40 = vpack.c.bf16 %v2719_v33, %v2718_v31  ;;  %v2828_v31 = vmul.f32 %v2794_v28, %v9444_v25  ;;  %v7362_v33 = vpop.f32.mrb[65].mxu1 }
 0xe99   :  { %v2694_v42 = vpop.f32.mrb[52].mxu0  ;;  %7411 = vmatpush3.msra.mxu1 %v2050_v36  ;;  %v2799_v35 = vpop.f32.mrb[66].mxu1 }
 0xe9a   :  { %v7343_v45 = vpop.f32.mrb[53].mxu0  ;;  %8142 = vmatprep.subr.msk.bf16.mxu0 %vm9453_vm12, %v8140_v40  ;;  %v2720_v51 = vmul.f32 %v2694_v42, %v9460_v46  ;;  %v7365_v42 = vpop.f32.mrb[67].mxu1 }
 0xe9b   :  { %8145 = vmatpush3.bf16.xpose.msk.msra.mxu0 %vm9453_vm12, %v8140_v40  ;;  %v2829_v40 = vmul.f32 %v2799_v35, %v9447_v26  ;;  %v2804_v45 = vpop.f32.mrb[68].mxu1 }
 0xe9d   :  { %v2699_v48 = vpop.f32.mrb[54].mxu0 }
 0xe9e   :  { %v2721_v59 = vmul.f32 %v2699_v48, %v9465_v47  ;;  %v7346_v60 = vpop.f32.mrb[55].mxu0  ;;  %v8170_v48 = vpack.c.bf16 %v2829_v40, %v2828_v31  ;;  %v9544_v31 = vsub.s32 7, %v9081_v11 }
 0xea0   :  { %v8146_v61 = vpack.c.bf16 %v2721_v59, %v2720_v51  ;;  %v2830_v51 = vmul.f32 %v2804_v45, %v9460_v46  ;;  %v7368_v59 = vpop.f32.mrb[69].mxu1  ;;  %v3210_v33 = vrot.slane %v9312_v41, %v9544_v31 }
 0xea1   :  { %v2704_v0 = vpop.f32.mrb[56].mxu0  ;;  %v2809_v60 = vpop.f32.mrb[70].mxu1 }
 0xea2   :  { %v7349_v1 = vpop.f32.mrb[57].mxu0  ;;  %8148 = vmatprep.subr.msk.bf16.mxu0 %vm9453_vm12, %v8146_v61  ;;  %v2722_v39 = vmul.f32 %v2704_v0, %v9472_v2  ;;  %v7371_v0 = vpop.f32.mrb[71].mxu1 }
 0xea3   :  { %8151 = vmatpush3.bf16.xpose.msk.msra.mxu0 %vm9453_vm12, %v8146_v61  ;;  %v2831_v61 = vmul.f32 %v2809_v60, %v9465_v47  ;;  %v2814_v1 = vpop.f32.mrb[72].mxu1 }
 0xea4   :  { %v2832_v25 = vmul.f32 %v2814_v1, %v9472_v2 }
 0xea5   :  { %v2709_v30 = vpop.f32.mrb[58].mxu0 }
 0xea6   :  { %v2723_v8 = vmul.f32 %v2709_v30, %v9477_v20  ;;  %v7352_v57 = vpop.f32.mrb[59].mxu0  ;;  %v8174_v30 = vpack.c.bf16 %v2831_v61, %v2830_v51 }
 0xea8   :  { %v8152_v63 = vpack.c.bf16 %v2723_v8, %v2722_v39  ;;  %v7374_v39 = vpop.f32.mrb[73].mxu1 }
 0xea9   :  { %v2714_v62 = vpop.f32.mrb[60].mxu0  ;;  %v2819_v8 = vpop.f32.mrb[74].mxu1 }
 0xeaa   :  { %8154 = vmatprep.subr.msk.bf16.mxu0 %vm9453_vm12, %v8152_v63  ;;  %v2724_v4 = vmul.f32 %v2714_v62, %v9482_v49  ;;  %v7355_v6 = vpop.f32.mrb[61].mxu0  ;;  %v2833_v26 = vmul.f32 %v2819_v8, %v9477_v20  ;;  %v7377_v57 = vpop.f32.mrb[75].mxu1  ;;  %v3251_v8 = vld [vmem:[%s9565_s2] sm:$0xff] }
 0xeab   :  { %8157 = vmatpush3.bf16.xpose.msk.msra.mxu0 %vm9453_vm12, %v8152_v63  ;;  %v2824_v63 = vpop.f32.mrb[76].mxu1  ;;  %v6625_v57 = vld [vmem:[%s9565_s2 + $0x20] sm:$0xff] }
 0xeac   :  { %7393 = vmatprep.subr.msk.mxu0 %vm1948_vm8, %v2724_v4  ;;  %v8178_v46 = vpack.c.bf16 %v2833_v26, %v2832_v25  ;;  %v2834_v62 = vmul.f32 %v2824_v63, %v9482_v49  ;;  %v6617_v49 = vld [vmem:[%s9333_s9 + $0x60] sm:$0xff]  ;;  %v3252_v26 = vld [vmem:[%s9565_s2 + $0x8] sm:$0xff] }
 0xead   :  { %v8190_v63 = vpack.c.bf16 %v3252_v26, %v3251_v8 }
 0xeb3   :  { %7394 = vmatpush3.xpose.msk.msra.mxu0 %vm1948_vm8, %v2724_v4  ;;  %v7380_v4 = vpop.f32.mrb[77].mxu1 }
 0xeb4   :  { %8171 = vmatprep.subr.bf16.mxu0 %v8170_v48  ;;  %v3253_v4 = vld [vmem:[%s9565_s2 + $0x10] sm:$0xff] }
 0xeb6   :  { %7396 = vmatmul.mubr.msk.f32.vlgmr.msra.gmra.mrb[62].mxu0 %vm1948_vm8, %v2836_v9 }
 0xeb7   :  { %8173 = vmatpush3.bf16.msra.mxu0 %v8170_v48 }
 0xeb8   :  { %8175 = vmatprep.subr.bf16.mxu0 %v8174_v30 }
 0xebb   :  { %8177 = vmatpush3.bf16.msra.mxu0 %v8174_v30 }
 0xebc   :  { %8179 = vmatprep.subr.bf16.mxu0 %v8178_v46 }
 0xebf   :  { %8181 = vmatpush3.bf16.msra.mxu0 %v8178_v46  ;;  %v6626_v46 = vld [vmem:[%s9565_s2 + $0x28] sm:$0xff] }
 0xec0   :  { %7427 = vmatprep.subr.mxu0 %v2834_v62 }
 0xec3   :  { %7428 = vmatpush3.msra.mxu0 %v2834_v62  ;;  %v8198_v62 = vpack.c.bf16 %v6626_v46, %v6625_v57 }
 0xec5   :  { %8199 = vmatprep.subr.bf16.mxu0 %v8198_v62 }
 0xf89   :  { %v7397_v12 = vpop.f32.mrb[62].mxu0 }
 0xf8a   :  { %v2936_v21 = vadd.f32 %v7397_v12, %v2052_v58  ;;  %v2930_v14 = vpop.f32.mrb[63].mxu0  ;;  %v6619_v12 = vld [vmem:[%s9333_s9 + $0x70] sm:$0xff] }
 0xf8b   :  { %v2931_v15 = vadd.f32 %v2930_v14, %v2051_v52  ;;  %v6618_v52 = vld [vmem:[%s9333_s9 + $0x68] sm:$0xff] }
 0xf8c   :  { %v2944_v16 = vsel %vm2943_vm13, %v2936_v21, -inf  ;;  %v8182_v14 = vpack.c.bf16 %v6618_v52, %v6617_v49 }
 0xf8d   :  { %2945 = vmax.xlane.f32.xlu1 %v2944_v16  ;;  %v2940_v17 = vsel %vm2939_vm14, %v2931_v15, -inf  ;;  %v6620_v16 = vld [vmem:[%s9333_s9 + $0x78] sm:$0xff] }
 0xf8e   :  { %2941 = vmax.xlane.f32.xlu0 %v2940_v17  ;;  %v8186_v17 = vpack.c.bf16 %v6620_v16, %v6619_v12  ;;  %8183 = vmatprep.subr.bf16.mxu1 %v8182_v14 }
0x101a   :  { %v2946_v47 = vpop.xlane.xlu1 %2945 }
0x101b   :  { %v2948_v2 = vsub.f32 %v2936_v21, %v2946_v47  ;;  %v2942_v6 = vpop.xlane.xlu0 %2941  ;;  %v3254_v47 = vld [vmem:[%s9565_s2 + $0x18] sm:$0xff] }
0x101c   :  { %v2947_v9 = vsub.f32 %v2931_v15, %v2942_v6  ;;  %v8194_v6 = vpack.c.bf16 %v3254_v47, %v3253_v4  ;;  %v6642_v4 = vld [vmem:[%s9586_s7 + $0x28] sm:$0x3f]  ;;  %v6636_v47 = vld [vmem:[%s9586_s7 + $0x10] sm:$0xff] }
0x101d   :  { %v2951_v20 = vmul.f32 1.442695, %v2948_v2  ;;  %v6627_v2 = vld [vmem:[%s9565_s2 + $0x30] sm:$0xff] }
0x101e   :  { %v2949_v53 = vmul.f32 1.442695, %v2947_v9  ;;  %v6628_v9 = vld [vmem:[%s9565_s2 + $0x38] sm:$0xff] }
0x1020   :  { %8543 = vpow2.f32 %v2949_v53 }
0x1021   :  { %8545 = vpow2.f32 %v2951_v20  ;;  %v8202_v20 = vpack.c.bf16 %v6628_v9, %v6627_v2  ;;  %v6637_v2 = vld [vmem:[%s9586_s7 + $0x18] sm:$0x3f] }
0x102a   :  { %v8544_v10 = vpop.eup %8543 }
0x102b   :  { %v8546_v58 = vpop.eup %8545  ;;  %7412 = vmatprep.mubr.msk.f32.mxu1 %vm2939_vm14, %v8544_v10 }
0x102c   :  { %7413 = vmatmul.mubr.msk.f32.vlgmr.msra.gmra.mrb[78].mxu1 %vm2939_vm14, %v8546_v58 }
0x102d   :  { %8185 = vmatpush3.bf16.msra.mxu1 %v8182_v14  ;;  %v3242_v14 = vrot.slane %v9278_v23, %v9367_v32 }
0x102e   :  { %8187 = vmatprep.subr.bf16.mxu1 %v8186_v17 }
0x1031   :  { %8189 = vmatpush3.bf16.msra.mxu1 %v8186_v17 }
0x1032   :  { %8191 = vmatprep.subr.bf16.mxu1 %v8190_v63 }
0x10ff   :  { %v7414_v21 = vpop.f32.mrb[78].mxu1 }
0x1100   :  { %8547 = vrcp.f32 %v7414_v21  ;;  %v3025_v15 = vpop.f32.mrb[79].mxu1 }
0x1101   :  { %8549 = vrcp.f32 %v3025_v15 }
0x110a   :  { %v8548_v29 = vpop.eup %8547 }
0x110b   :  { %v8550_v18 = vpop.eup %8549  ;;  %v3037_v22 = vmul.f32 %v8548_v29, %v8546_v58  ;;  %v3248_v29 = vrot.slane %v9278_v23, %v9384_v3  ;;  %v3439_v23 = vld [vmem:[%s9586_s7] sm:$0xff] }
0x110c   :  { %v3036_v27 = vmul.f32 %v8550_v18, %v8544_v10 }
0x110e   :  { %7429 = vmatprep.mubr.msk.f32.mxu0 %vm2939_vm14, %v3036_v27 }
0x110f   :  { %7430 = vmatmul.mubr.msk.f32.vlgmr.msra.gmra.mrb[64].mxu0 %vm2939_vm14, %v3037_v22 }
0x1110   :  { %8201 = vmatpush3.bf16.msra.mxu0 %v8198_v62  ;;  %v3440_v62 = vld [vmem:[%s9586_s7 + $0x8] sm:$0x3f] }
0x1111   :  { %8203 = vmatprep.subr.bf16.mxu0 %v8202_v20 }
0x1114   :  { %8205 = vmatpush3.bf16.msra.mxu0 %v8202_v20 }
0x11e2   :  { %v7431_v36 = vpop.f32.mrb[64].mxu0 }
0x11e3   :  { %v3110_v28 = vpop.f32.mrb[65].mxu0 }
0x11e4   :  { %7440 = vmatprep.mubr.msk.f32.mxu1 %vm1948_vm8, %v3110_v28  ;;  %v6641_v28 = vld [vmem:[%s9586_s7 + $0x20] sm:$0xff] }
0x11e5   :  { %7441 = vmatmul.mubr.msk.f32.vlgmr.msra.gmra.mrb[80].mxu1 %vm1948_vm8, %v7431_v36 }
0x11e6   :  { %8193 = vmatpush3.bf16.msra.mxu1 %v8190_v63 }
0x11e7   :  { %8195 = vmatprep.subr.bf16.mxu1 %v8194_v6 }
0x11ea   :  { %8197 = vmatpush3.bf16.msra.mxu1 %v8194_v6  ;;  %v3438_v6 = vld [vmem:[%s9627_s18] sm:$0x7] }
0x12b8   :  { %v7442_v35 = vpop.f32.mrb[80].mxu1 }
0x12b9   :  { %v3206_v40 = vadd.f32 %v7442_v35, %v9317_v55  ;;  %v3196_v42 = vpop.f32.mrb[81].mxu1 }
0x12ba   :  { %v3205_v45 = vadd.f32 %v3196_v42, %v9320_v56 }
0x12bb   :  { %v9550_v48 = vadd.f32 %v3210_v33, %v3206_v40 }
0x12bc   :  { %v9552_v51 = vadd.f32 %v3210_v33, %v3205_v45  ;;  %v9598_v33 = vld [vmem:[%s9595_s12] sm:$0x1f] }
0x12bd   :  { %v3216_v59 = vsel %vm2061_vm9, %v9550_v48, 0.0  ;;  %v3348_v35 = vrot.slane %v9598_v33, %v9347_v44 }
0x12be   :  { %3217 = vadd.xlane.f32.xlu1 %v3216_v59  ;;  %v3213_v11 = vsel %vm1948_vm8, %v9552_v51, 0.0 }
0x12bf   :  { %3214 = vadd.xlane.f32.xlu0 %v3213_v11 }
0x134b   :  { %v3218_v60 = vpop.xlane.xlu1 %3217 }
0x134c   :  { %v3220_v41 = vmul.f32 0.03125, %v3218_v60  ;;  %v3215_v61 = vpop.xlane.xlu0 %3214 }
0x134d   :  { %v3219_v0 = vmul.f32 0.03125, %v3215_v61 }
0x134e   :  { %v3222_v55 = vsub.f32 %v9550_v48, %v3220_v41 }
0x134f   :  { %v3221_v56 = vsub.f32 %v9552_v51, %v3219_v0 }
0x1350   :  { %v3224_v1 = vmul.f32 %v3222_v55, %v3222_v55 }
0x1351   :  { %v3223_v30 = vmul.f32 %v3221_v56, %v3221_v56 }
0x1352   :  { %v3228_v25 = vsel %vm2061_vm9, %v3224_v1, 0.0 }
0x1353   :  { %3229 = vadd.xlane.f32.xlu1 %v3228_v25  ;;  %v3225_v39 = vsel %vm1948_vm8, %v3223_v30, 0.0  ;;  %v3258_v30 = vrot.slane %v9598_v33, %v9309_v24 }
0x1354   :  { %3226 = vadd.xlane.f32.xlu0 %v3225_v39 }
0x13e0   :  { %v3230_v53 = vpop.xlane.xlu1 %3229 }
0x13e1   :  { %v3232_v10 = vmul.f32 0.03125, %v3230_v53  ;;  %v3227_v58 = vpop.xlane.xlu0 %3226  ;;  %v3528_v53 = vrot.slane %v3438_v6, %v9084_v5 }
0x13e2   :  { %v3231_v49 = vmul.f32 0.03125, %v3227_v58  ;;  %v3618_v58 = vrot.slane %v3438_v6, %v9087_v13 }
0x13e3   :  { %v3234_v52 = vadd.f32 1e-05, %v3232_v10 }
0x13e4   :  { %v3233_v12 = vadd.f32 1e-05, %v3231_v49  ;;  %v3710_v49 = vrot.slane %v3438_v6, %v9309_v24 }
0x13e5   :  { %8551 = vrsqrt.f32 %v3234_v52 }
0x13e6   :  { %8553 = vrsqrt.f32 %v3233_v12 }
0x13ef   :  { %v8552_v16 = vpop.eup %8551 }
0x13f0   :  { %v8554_v17 = vpop.eup %8553  ;;  %v3238_v21 = vmul.f32 %v8552_v16, %v3222_v55 }
0x13f1   :  { %v3237_v15 = vmul.f32 %v8554_v17, %v3221_v56 }
0x13f2   :  { %v3244_v18 = vmul.f32 %v3242_v14, %v3238_v21 }
0x13f3   :  { %v3243_v27 = vmul.f32 %v3242_v14, %v3237_v15 }
0x13f4   :  { %v3250_v36 = vadd.f32 %v3248_v29, %v3244_v18 }
0x13f5   :  { %v3249_v22 = vadd.f32 %v3248_v29, %v3243_v27 }
0x13f7   :  { %7451 = vmatprep.mubr.msk.f32.mxu1 %vm1948_vm8, %v3249_v22  ;;  %7462 = vmatprep.mubr.msk.f32.mxu0 %vm1948_vm8, %v3249_v22  ;;  %v3718_v22 = vrot.slane %v9598_v33, %v9367_v32 }
0x13f8   :  { %7452 = vmatmul.mubr.msk.f32.vlgmr.msra.gmra.mrb[82].mxu1 %vm1948_vm8, %v3250_v36  ;;  %7463 = vmatmul.mubr.msk.f32.vlgmr.msra.gmra.mrb[66].mxu0 %vm1948_vm8, %v3250_v36 }
0x13f9   :  { %7469 = vmatprep.mubr.msk.f32.mxu1 %vm2593_vm11, %v3439_v23  ;;  %7483 = vmatprep.mubr.msk.f32.mxu0 %vm2593_vm11, %v6641_v28 }
0x14cb   :  { %v7453_v40 = vpop.f32.mrb[82].mxu1  ;;  %v7464_v42 = vpop.f32.mrb[66].mxu0 }
0x14cc   :  { %v3421_v45 = vadd.f32 %v7464_v42, %v3348_v35  ;;  %v3331_v59 = vpop.f32.mrb[83].mxu1  ;;  %v3415_v11 = vpop.f32.mrb[67].mxu0  ;;  %v3337_v25 = vadd.f32 %v7453_v40, %v3258_v30 }
0x14cd   :  { %v3416_v60 = vadd.f32 %v3415_v11, %v3348_v35  ;;  %v3332_v8 = vadd.f32 %v3331_v59, %v3258_v30 }
0x14ce   :  { %v6632_v41 = vmul.f32 -1.442695, %v3421_v45 }
0x14cf   :  { %v6631_v61 = vmul.f32 -1.442695, %v3416_v60 }
0x14d0   :  { %8555 = vpow2.f32 %v6632_v41 }
0x14d1   :  { %8557 = vpow2.f32 %v6631_v61 }
0x14da   :  { %v8556_v0 = vpop.eup %8555 }
0x14db   :  { %v8558_v55 = vpop.eup %8557  ;;  %v3431_v56 = vadd.f32 1.0, %v8556_v0 }
0x14dc   :  { %v3430_v1 = vadd.f32 1.0, %v8558_v55 }
0x14dd   :  { %8559 = vrcp.f32 %v3431_v56 }
0x14de   :  { %8561 = vrcp.f32 %v3430_v1 }
0x14e7   :  { %v8560_v39 = vpop.eup %8559 }
0x14e8   :  { %v8562_v26 = vpop.eup %8561  ;;  %v3437_v57 = vmul.f32 %v8560_v39, %v3337_v25  ;;  %v3773_v25 = vld [vmem:[%s9642_s24] sm:$0xff]  ;;  %v3774_v39 = vld [vmem:[%s9642_s24 + $0x8] sm:$0xff] }
0x14e9   :  { %v3436_v63 = vmul.f32 %v8562_v26, %v3332_v8  ;;  %v3775_v8 = vld [vmem:[%s9642_s24 + $0x10] sm:$0xff]  ;;  %v8224_v26 = vpack.c.bf16 %v3774_v39, %v3773_v25 }
0x14eb   :  { %v8206_v46 = vpack.c.bf16 %v3437_v57, %v3436_v63  ;;  %v3776_v57 = vld [vmem:[%s9642_s24 + $0x18] sm:$0xff] }
0x14ec   :  { %v8228_v63 = vpack.c.bf16 %v3776_v57, %v3775_v8  ;;  %v6651_v57 = vld [vmem:[%s9266_s23 + $0x28] sm:$0xff] }
0x14ed   :  { %8208 = vmatprep.subr.msk.bf16.mxu1 %vm9138_vm7, %v8206_v46  ;;  %8220 = vmatprep.subr.msk.bf16.mxu0 %vm9138_vm7, %v8206_v46 }
0x14ee   :  { %8211 = vmatpush3.bf16.msk.msra.mxu1 %vm9138_vm7, %v8206_v46  ;;  %8223 = vmatpush3.bf16.msk.msra.mxu0 %vm9138_vm7, %v8206_v46 }
0x14ef   :  { %8214 = vmatprep.subr.msk.bf16.mxu1 %vm9138_vm7, %v8206_v46 }
0x14f1   :  { %7470 = vmatmul.mubr.msk.f32.vlgmr.msra.gmra.mrb[84].mxu1 %vm2593_vm11, %v3440_v62  ;;  %7484 = vmatmul.mubr.msk.f32.vlgmr.msra.gmra.mrb[68].mxu0 %vm2593_vm11, %v6642_v4 }
0x14f2   :  { %8217 = vmatpush3.bf16.msk.msra.mxu1 %vm9138_vm7, %v8206_v46  ;;  %7476 = vmatprep.mubr.msk.f32.mxu1 %vm2593_vm11, %v6636_v47 }
0x14f3   :  { %8225 = vmatprep.subr.bf16.mxu1 %v8224_v26 }
0x14f5   :  { %7477 = vmatmul.mubr.msk.f32.vlgmr.msra.gmra.mrb[86].mxu1 %vm2593_vm11, %v6637_v2 }
0x14f6   :  { %8227 = vmatpush3.bf16.msra.mxu1 %v8224_v26  ;;  %v6650_v26 = vld [vmem:[%s9266_s23 + $0x20] sm:$0xff] }
0x14f7   :  { %8229 = vmatprep.subr.bf16.mxu1 %v8228_v63 }
0x14fa   :  { %8231 = vmatpush3.bf16.msra.mxu1 %v8228_v63  ;;  %v8232_v63 = vpack.c.bf16 %v6651_v57, %v6650_v26 }
0x14fc   :  { %8233 = vmatprep.subr.bf16.mxu0 %v8232_v63 }
0x14fd   :  { %8235 = vmatpush3.bf16.msra.mxu0 %v8232_v63 }
0x15c4   :  { %v7471_v9 = vpop.f32.mrb[84].mxu1  ;;  %v7485_v20 = vpop.f32.mrb[68].mxu0 }
0x15c5   :  { %v3516_v10 = vpop.f32.mrb[85].mxu1  ;;  %v3698_v52 = vpop.f32.mrb[69].mxu0  ;;  %v3530_v14 = vmul.f32 %v7471_v9, %v3528_v53  ;;  %v3712_v21 = vmul.f32 %v7485_v20, %v3710_v49  ;;  %v3750_v9 = vrot.slane %v9598_v33, %v9084_v5 }
0x15c6   :  { %v3529_v15 = vmul.f32 %v3528_v53, %v3516_v10  ;;  %v3711_v18 = vmul.f32 %v3710_v49, %v3698_v52 }
0x15c8   :  { %v7478_v12 = vpop.f32.mrb[86].mxu1 }
0x15c9   :  { %v3620_v16 = vmul.f32 %v7478_v12, %v3618_v58  ;;  %v3606_v17 = vpop.f32.mrb[87].mxu1 }
0x15ca   :  { %v3619_v29 = vmul.f32 %v3618_v58, %v3606_v17  ;;  %v3756_v58 = vrot.slane %v9598_v33, %v9087_v13 }
0x15cb   :  { %v3622_v27 = vadd.f32 %v3620_v16, %v3530_v14 }
0x15cc   :  { %v3621_v36 = vadd.f32 %v3619_v29, %v3529_v15 }
0x15cd   :  { %v3714_v23 = vadd.f32 %v3712_v21, %v3622_v27 }
0x15ce   :  { %v3713_v28 = vadd.f32 %v3711_v18, %v3621_v36 }
0x15cf   :  { %v3720_v35 = vadd.f32 %v3718_v22, %v3714_v23 }
0x15d0   :  { %v3719_v40 = vadd.f32 %v3718_v22, %v3713_v28  ;;  %v9655_v28 = vld [vmem:[%s9275_s27 + $0x10] sm:$0x3] }
0x15d1   :  { %v3724_v42 = vsel %vm2061_vm9, %v3720_v35, 0.0 }
0x15d2   :  { %3725 = vadd.xlane.f32.xlu1 %v3724_v42  ;;  %v3721_v45 = vsel %vm1948_vm8, %v3719_v40, 0.0 }
0x15d3   :  { %3722 = vadd.xlane.f32.xlu0 %v3721_v45 }
0x165f   :  { %v3726_v59 = vpop.xlane.xlu1 %3725 }
0x1660   :  { %v3728_v11 = vmul.f32 0.03125, %v3726_v59  ;;  %v3723_v60 = vpop.xlane.xlu0 %3722 }
0x1661   :  { %v3727_v41 = vmul.f32 0.03125, %v3723_v60 }
0x1662   :  { %v3730_v61 = vsub.f32 %v3720_v35, %v3728_v11  ;;  %v3863_v35 = vrot.slane %v9655_v28, %v9084_v5 }
0x1663   :  { %v3729_v0 = vsub.f32 %v3719_v40, %v3727_v41 }
0x1664   :  { %v3732_v55 = vmul.f32 %v3730_v61, %v3730_v61 }
0x1665   :  { %v3731_v56 = vmul.f32 %v3729_v0, %v3729_v0 }
0x1666   :  { %v3736_v1 = vsel %vm2061_vm9, %v3732_v55, 0.0 }
0x1667   :  { %3737 = vadd.xlane.f32.xlu1 %v3736_v1  ;;  %v3733_v30 = vsel %vm1948_vm8, %v3731_v56, 0.0 }
0x1668   :  { %3734 = vadd.xlane.f32.xlu0 %v3733_v30 }
0x16f4   :  { %v3738_v46 = vpop.xlane.xlu1 %3737 }
0x16f5   :  { %v3740_v62 = vmul.f32 0.03125, %v3738_v46  ;;  %v3735_v4 = vpop.xlane.xlu0 %3734  ;;  %v6652_v46 = vld [vmem:[%s9266_s23 + $0x30] sm:$0xff] }
0x16f6   :  { %v3739_v47 = vmul.f32 0.03125, %v3735_v4 }
0x16f7   :  { %v3742_v2 = vadd.f32 1e-05, %v3740_v62  ;;  %v6653_v62 = vld [vmem:[%s9266_s23 + $0x38] sm:$0xff] }
0x16f8   :  { %v3741_v6 = vadd.f32 1e-05, %v3739_v47  ;;  %v8236_v4 = vpack.c.bf16 %v6653_v62, %v6652_v46 }
0x16f9   :  { %8563 = vrsqrt.f32 %v3742_v2 }
0x16fa   :  { %8565 = vrsqrt.f32 %v3741_v6  ;;  %8237 = vmatprep.subr.bf16.mxu0 %v8236_v4 }
0x16fb   :  { %8239 = vmatpush3.bf16.msra.mxu0 %v8236_v4  ;;  %v8657_v4 = vld [vmem:[%s9275_s27 + $0x8] sm:$0xff] }
0x1703   :  { %v8564_v20 = vpop.eup %8563 }
0x1704   :  { %v8566_v53 = vpop.eup %8565  ;;  %v3746_v10 = vmul.f32 %v8564_v20, %v3730_v61 }
0x1705   :  { %v3745_v49 = vmul.f32 %v8566_v53, %v3729_v0 }
0x1706   :  { %v3752_v52 = vmul.f32 %v3750_v9, %v3746_v10  ;;  %v8655_v10 = vld [vmem:[%s9275_s27] sm:$0xff] }
0x1707   :  { %v3751_v12 = vmul.f32 %v3750_v9, %v3745_v49 }
0x1708   :  { %v3758_v14 = vadd.f32 %v3756_v58, %v3752_v52 }
0x1709   :  { %v3757_v16 = vadd.f32 %v3756_v58, %v3751_v12  ;;  %v3895_v58 = vrot.slane %v8655_v10, %v9370_v38 }
0x170a   :  { %v6647_v17 = vmul.f32 -1.442695, %v3758_v14 }
0x170b   :  { %v6646_v21 = vmul.f32 -1.442695, %v3757_v16 }
0x170c   :  { %8567 = vpow2.f32 %v6647_v17 }
0x170d   :  { %8569 = vpow2.f32 %v6646_v21 }
0x1716   :  { %v8568_v15 = vpop.eup %8567 }
0x1717   :  { %v8570_v29 = vpop.eup %8569  ;;  %v3766_v18 = vadd.f32 1.0, %v8568_v15 }
0x1718   :  { %v3765_v27 = vadd.f32 1.0, %v8570_v29 }
0x1719   :  { %8571 = vrcp.f32 %v3766_v18  ;;  %v6658_v18 = vld [vmem:[%s9289_s1 + $0x40] sm:$0xff] }
0x171a   :  { %8573 = vrcp.f32 %v3765_v27  ;;  %v6659_v27 = vld [vmem:[%s9289_s1 + $0x48] sm:$0xff] }
0x1723   :  { %v8572_v22 = vpop.eup %8571 }
0x1724   :  { %v8574_v36 = vpop.eup %8573  ;;  %v3772_v33 = vmul.f32 %v8572_v22, %v3758_v14  ;;  %v8240_v22 = vpack.c.bf16 %v6659_v27, %v6658_v18 }
0x1725   :  { %v3771_v23 = vmul.f32 %v8574_v36, %v3757_v16  ;;  %v3901_v16 = vrot.slane %v8655_v10, %v9544_v31  ;;  %v6660_v36 = vld [vmem:[%s9289_s1 + $0x50] sm:$0xff] }
0x1726   :  { %8241 = vmatprep.subr.bf16.mxu1 %v8240_v22 }
0x1727   :  { %7494 = vmatprep.mubr.msk.f32.mxu1 %vm1948_vm8, %v3771_v23  ;;  %v6661_v23 = vld [vmem:[%s9289_s1 + $0x58] sm:$0xff] }
0x1728   :  { %7495 = vmatmul.mubr.msk.f32.vlgmr.msra.gmra.mrb[88].mxu1 %vm1948_vm8, %v3772_v33  ;;  %v8244_v33 = vpack.c.bf16 %v6661_v23, %v6660_v36  ;;  %v4146_v36 = vld [vmem:[%s6404_s30 + $0x8] sm:$0xff] }
0x1729   :  { %8243 = vmatpush3.bf16.msra.mxu1 %v8240_v22 }
0x172a   :  { %8245 = vmatprep.subr.bf16.mxu1 %v8244_v33 }
0x172d   :  { %8247 = vmatpush3.bf16.msra.mxu1 %v8244_v33  ;;  %v4147_v33 = vld [vmem:[%s6404_s30 + $0x10] sm:$0xff] }
0x17fb   :  { %v7496_v40 = vpop.f32.mrb[88].mxu1 }
0x17fc   :  { %v3859_v42 = vadd.f32 %v7496_v40, %v9550_v48  ;;  %v3849_v45 = vpop.f32.mrb[89].mxu1  ;;  %v6663_v40 = vld [vmem:[%s9289_s1 + $0x68] sm:$0xff] }
0x17fd   :  { %v3858_v59 = vadd.f32 %v3849_v45, %v9552_v51  ;;  %v6664_v45 = vld [vmem:[%s9289_s1 + $0x70] sm:$0xff] }
0x17fe   :  { %v9661_v11 = vadd.f32 %v3863_v35, %v3859_v42 }
0x17ff   :  { %v9663_v60 = vadd.f32 %v3863_v35, %v3858_v59  ;;  %v6662_v35 = vld [vmem:[%s9289_s1 + $0x60] sm:$0xff]  ;;  %v6665_v59 = vld [vmem:[%s9289_s1 + $0x78] sm:$0xff] }
0x1800   :  { %v3869_v41 = vsel %vm2061_vm9, %v9661_v11, 0.0  ;;  %v8248_v42 = vpack.c.bf16 %v6663_v40, %v6662_v35  ;;  %v4148_v35 = vld [vmem:[%s6404_s30 + $0x18] sm:$0xff] }
0x1801   :  { %3870 = vadd.xlane.f32.xlu1 %v3869_v41  ;;  %v3866_v61 = vsel %vm1948_vm8, %v9663_v60, 0.0  ;;  %v8252_v41 = vpack.c.bf16 %v6665_v59, %v6664_v45  ;;  %v8260_v40 = vpack.c.bf16 %v4148_v35, %v4147_v33  ;;  %v6679_v33 = vld [vmem:[%s9266_s23 + $0x48] sm:$0xff] }
0x1802   :  { %3867 = vadd.xlane.f32.xlu0 %v3866_v61  ;;  %8249 = vmatprep.subr.bf16.mxu1 %v8248_v42  ;;  %v8656_v61 = vld [vmem:[%s9302_s5] sm:$0x3] }
0x1803   :  { %8251 = vmatpush3.bf16.msra.mxu1 %v8248_v42 }
0x1804   :  { %8253 = vmatprep.subr.bf16.mxu1 %v8252_v41 }
0x1807   :  { %8255 = vmatpush3.bf16.msra.mxu1 %v8252_v41 }
0x188e   :  { %v3871_v0 = vpop.xlane.xlu1 %3870 }
0x188f   :  { %v3873_v48 = vmul.f32 0.03125, %v3871_v0  ;;  %v3868_v55 = vpop.xlane.xlu0 %3867  ;;  %v3912_v0 = vrot.slane %v8656_v61, %v9087_v13 }
0x1890   :  { %v3872_v51 = vmul.f32 0.03125, %v3868_v55 }
0x1891   :  { %v3875_v56 = vsub.f32 %v9661_v11, %v3873_v48 }
0x1892   :  { %v3874_v1 = vsub.f32 %v9663_v60, %v3872_v51 }
0x1893   :  { %v3877_v30 = vmul.f32 %v3875_v56, %v3875_v56 }
0x1894   :  { %v3876_v25 = vmul.f32 %v3874_v1, %v3874_v1 }
0x1895   :  { %v3881_v39 = vsel %vm2061_vm9, %v3877_v30, 0.0 }
0x1896   :  { %3882 = vadd.xlane.f32.xlu1 %v3881_v39  ;;  %v3878_v8 = vsel %vm1948_vm8, %v3876_v25, 0.0 }
0x1897   :  { %3879 = vadd.xlane.f32.xlu0 %v3878_v8 }
0x1923   :  { %v3883_v47 = vpop.xlane.xlu1 %3882 }
0x1924   :  { %v3885_v2 = vmul.f32 0.03125, %v3883_v47  ;;  %v3880_v6 = vpop.xlane.xlu0 %3879  ;;  %v4020_v47 = vrot.slane %v8657_v4, %v9347_v44 }
0x1925   :  { %v3884_v9 = vmul.f32 0.03125, %v3880_v6 }
0x1926   :  { %v3887_v20 = vadd.f32 1e-05, %v3885_v2 }
0x1927   :  { %v3886_v53 = vadd.f32 1e-05, %v3884_v9 }
0x1928   :  { %8575 = vrsqrt.f32 %v3887_v20 }
0x1929   :  { %8577 = vrsqrt.f32 %v3886_v53 }
0x1932   :  { %v8576_v49 = vpop.eup %8575 }
0x1933   :  { %v8578_v52 = vpop.eup %8577  ;;  %v3891_v12 = vmul.f32 %v8576_v49, %v3875_v56 }
0x1934   :  { %v3890_v14 = vmul.f32 %v8578_v52, %v3874_v1 }
0x1935   :  { %v3897_v17 = vmul.f32 %v3895_v58, %v3891_v12 }
0x1936   :  { %v3896_v21 = vmul.f32 %v3895_v58, %v3890_v14 }
0x1937   :  { %v3903_v29 = vadd.f32 %v3901_v16, %v3897_v17 }
0x1938   :  { %v3902_v15 = vadd.f32 %v3901_v16, %v3896_v21 }
0x193a   :  { %7505 = vmatprep.mubr.msk.f32.mxu0 %vm1948_vm8, %v3902_v15 }
0x193b   :  { %7506 = vmatmul.mubr.msk.f32.vlgmr.msra.gmra.mrb[70].mxu0 %vm1948_vm8, %v3903_v29 }
0x1a0e   :  { %v7507_v48 = vpop.f32.mrb[70].mxu0 }
0x1a0f   :  { %v3991_v55 = vadd.f32 %v7507_v48, %v3912_v0  ;;  %v3985_v51 = vpop.f32.mrb[71].mxu0  ;;  %v4135_v48 = vrot.slane %v8657_v4, %v9084_v5 }
0x1a10   :  { %v3986_v56 = vadd.f32 %v3985_v51, %v3912_v0 }
0x1a11   :  { %v6657_v1 = vmul.f32 -1.442695, %v3991_v55 }
0x1a12   :  { %v6656_v30 = vmul.f32 -1.442695, %v3986_v56 }
0x1a13   :  { %8579 = vpow2.f32 %v6657_v1 }
0x1a14   :  { %8581 = vpow2.f32 %v6656_v30  ;;  %v4141_v30 = vrot.slane %v8657_v4, %v9087_v13 }
0x1a1d   :  { %v8580_v25 = vpop.eup %8579 }
0x1a1e   :  { %v8582_v39 = vpop.eup %8581  ;;  %v4001_v8 = vadd.f32 1.0, %v8580_v25 }
0x1a1f   :  { %v4000_v26 = vadd.f32 1.0, %v8582_v39 }
0x1a20   :  { %8583 = vrcp.f32 %v4001_v8 }
0x1a21   :  { %8585 = vrcp.f32 %v4000_v26 }
0x1a2a   :  { %v8584_v57 = vpop.eup %8583 }
0x1a2b   :  { %v8586_v63 = vpop.eup %8585  ;;  %v4007_v62 = vmul.f32 %v8584_v57, %v3991_v55  ;;  %v4238_v57 = vld [vmem:[%s6405_s8] sm:$0xff] }
0x1a2c   :  { %v4006_v46 = vmul.f32 %v8586_v63, %v3986_v56  ;;  %v4239_v63 = vld [vmem:[%s6405_s8 + $0x8] sm:$0xff] }
0x1a2e   :  { %7524 = vmatprep.mubr.msk.f32.mxu1 %vm138_vm0, %v4006_v46  ;;  %v8264_v46 = vpack.c.bf16 %v4239_v63, %v4238_v57 }
0x1a2f   :  { %7525 = vmatmul.mubr.msk.f32.vlgmr.msra.gmra.mrb[90].mxu1 %vm138_vm0, %v4007_v62  ;;  %v6668_v62 = vld [vmem:[%s6410_s15] ss:$0 sm:$0xff] }
0x1b02   :  { %v7526_v2 = vpop.f32.mrb[90].mxu1 }
0x1b03   :  { %v4099_v6 = vadd.f32 %v7526_v2, %v4020_v47  ;;  %v4093_v9 = vpop.f32.mrb[91].mxu1 }
0x1b04   :  { %v4094_v20 = vadd.f32 %v4093_v9, %v4020_v47 }
0x1b05   :  { %v4103_v53 = vmul.f32 0.5, %v4099_v6 }
0x1b06   :  { %v4102_v10 = vmul.f32 0.5, %v4094_v20 }
0x1b07   :  { %v4105_v58 = vadd.f32 %v4103_v53, %v9661_v11  ;;  %v4326_v53 = vrot.slane %v9655_v28, %v9087_v13 }
0x1b08   :  { %v4104_v49 = vadd.f32 %v4102_v10, %v9663_v60  ;;  %v4145_v60 = vld [vmem:[%s6404_s30] sm:$0xff] }
0x1b09   :  { %v4109_v52 = vsel %vm2061_vm9, %v4105_v58, 0.0  ;;  %v8256_v23 = vpack.c.bf16 %v4146_v36, %v4145_v60 }
0x1b0a   :  { %4110 = vadd.xlane.f32.xlu1 %v4109_v52  ;;  %v4106_v12 = vsel %vm1948_vm8, %v4104_v49, 0.0 }
0x1b0b   :  { %4107 = vadd.xlane.f32.xlu0 %v4106_v12  ;;  %8257 = vmatprep.subr.bf16.mxu0 %v8256_v23 }
0x1b0c   :  { %8259 = vmatpush3.bf16.msra.mxu0 %v8256_v23  ;;  %v6678_v23 = vld [vmem:[%s9266_s23 + $0x40] sm:$0xff] }
0x1b0d   :  { %8261 = vmatprep.subr.bf16.mxu0 %v8260_v40  ;;  %v8268_v35 = vpack.c.bf16 %v6679_v33, %v6678_v23 }
0x1b10   :  { %8263 = vmatpush3.bf16.msra.mxu0 %v8260_v40  ;;  %v6680_v40 = vld [vmem:[%s9266_s23 + $0x50] sm:$0xff] }
0x1b11   :  { %8265 = vmatprep.subr.bf16.mxu0 %v8264_v46 }
0x1b97   :  { %v4111_v14 = vpop.xlane.xlu1 %4110 }
0x1b98   :  { %v4113_v16 = vmul.f32 0.03125, %v4111_v14  ;;  %v4108_v17 = vpop.xlane.xlu0 %4107 }
0x1b99   :  { %v4112_v21 = vmul.f32 0.03125, %v4108_v17 }
0x1b9a   :  { %v4115_v15 = vsub.f32 %v4105_v58, %v4113_v16 }
0x1b9b   :  { %v4114_v29 = vsub.f32 %v4104_v49, %v4112_v21 }
0x1b9c   :  { %v4117_v18 = vmul.f32 %v4115_v15, %v4115_v15 }
0x1b9d   :  { %v4116_v27 = vmul.f32 %v4114_v29, %v4114_v29 }
0x1b9e   :  { %v4121_v22 = vsel %vm2061_vm9, %v4117_v18, 0.0 }
0x1b9f   :  { %4122 = vadd.xlane.f32.xlu1 %v4121_v22  ;;  %v4118_v11 = vsel %vm1948_vm8, %v4116_v27, 0.0 }
0x1ba0   :  { %4119 = vadd.xlane.f32.xlu0 %v4118_v11 }
0x1c2c   :  { %v4123_v42 = vpop.xlane.xlu1 %4122 }
0x1c2d   :  { %v4125_v45 = vmul.f32 0.03125, %v4123_v42  ;;  %v4120_v59 = vpop.xlane.xlu0 %4119  ;;  %v6681_v42 = vld [vmem:[%s9266_s23 + $0x58] sm:$0xff] }
0x1c2e   :  { %v4124_v41 = vmul.f32 0.03125, %v4120_v59 }
0x1c2f   :  { %v4127_v61 = vadd.f32 1e-05, %v4125_v45  ;;  %v8272_v45 = vpack.c.bf16 %v6681_v42, %v6680_v40  ;;  %v9757_v42 = vld [vmem:[%s9275_s27 + $0x20] sm:$0xff] }
0x1c30   :  { %v4126_v0 = vadd.f32 1e-05, %v4124_v41 }
0x1c31   :  { %8587 = vrsqrt.f32 %v4127_v61 }
0x1c32   :  { %8589 = vrsqrt.f32 %v4126_v0 }
0x1c3b   :  { %v8588_v55 = vpop.eup %8587 }
0x1c3c   :  { %v8590_v51 = vpop.eup %8589  ;;  %v4131_v56 = vmul.f32 %v8588_v55, %v4115_v15 }
0x1c3d   :  { %v4130_v1 = vmul.f32 %v8590_v51, %v4114_v29  ;;  %v9736_v51 = vld [vmem:[%s9275_s27 + $0x18] sm:$0xff] }
0x1c3e   :  { %v4137_v25 = vmul.f32 %v4135_v48, %v4131_v56  ;;  %v4366_v56 = vrot.slane %v9736_v51, %v9084_v5 }
0x1c3f   :  { %v4136_v39 = vmul.f32 %v4135_v48, %v4130_v1 }
0x1c40   :  { %v4143_v26 = vadd.f32 %v4141_v30, %v4137_v25 }
0x1c41   :  { %v4142_v8 = vadd.f32 %v4141_v30, %v4136_v39 }
0x1c43   :  { %7535 = vmatprep.mubr.msk.f32.mxu0 %vm1948_vm8, %v4142_v8 }
0x1c44   :  { %7536 = vmatmul.mubr.msk.f32.vlgmr.msra.gmra.mrb[72].mxu0 %vm1948_vm8, %v4143_v26 }
0x1c45   :  { %8267 = vmatpush3.bf16.msra.mxu0 %v8264_v46 }
0x1c46   :  { %8269 = vmatprep.subr.bf16.mxu0 %v8268_v35 }
0x1d17   :  { %v7537_v4 = vpop.f32.mrb[72].mxu0 }
0x1d18   :  { %v4233_v47 = vadd.f32 %v7537_v4, %v6668_v62  ;;  %v4227_v2 = vpop.f32.mrb[73].mxu0  ;;  %v6687_v4 = vld [vmem:[%s9289_s1 + $0x88] sm:$0xff] }
0x1d19   :  { %v4228_v6 = vadd.f32 %v6668_v62, %v4227_v2  ;;  %v6686_v62 = vld [vmem:[%s9289_s1 + $0x80] sm:$0xff]  ;;  %v6688_v2 = vld [vmem:[%s9289_s1 + $0x90] sm:$0xff] }
0x1d1a   :  { %v4237_v20 = vmax.f32 %v4233_v47, 0.0  ;;  %v8276_v47 = vpack.c.bf16 %v6687_v4, %v6686_v62 }
0x1d1b   :  { %v4236_v9 = vmax.f32 %v4228_v6, 0.0  ;;  %v6689_v6 = vld [vmem:[%s9289_s1 + $0x98] sm:$0xff] }
0x1d1c   :  { %8277 = vmatprep.subr.bf16.mxu1 %v8276_v47 }
0x1d1d   :  { %7542 = vmatprep.mubr.msk.f32.mxu0 %vm485_vm1, %v4236_v9  ;;  %8279 = vmatpush3.bf16.msra.mxu1 %v8276_v47  ;;  %v8280_v9 = vpack.c.bf16 %v6689_v6, %v6688_v2  ;;  %v6696_v47 = vld [vmem:[%s9333_s9 + $0x80] sm:$0xff]  ;;  %v6697_v2 = vld [vmem:[%s9333_s9 + $0x88] sm:$0xff] }
0x1d1e   :  { %7543 = vmatmul.mubr.msk.f32.vlgmr.msra.gmra.mrb[74].mxu0 %vm485_vm1, %v4237_v20  ;;  %v6690_v20 = vld [vmem:[%s9289_s1 + $0xa0] sm:$0xff]  ;;  %v8292_v6 = vpack.c.bf16 %v6697_v2, %v6696_v47 }
0x1d1f   :  { %8271 = vmatpush3.bf16.msra.mxu0 %v8268_v35  ;;  %8281 = vmatprep.subr.bf16.mxu1 %v8280_v9 }
0x1d20   :  { %8273 = vmatprep.subr.bf16.mxu0 %v8272_v45 }
0x1d21   :  { %8283 = vmatpush3.bf16.msra.mxu1 %v8280_v9  ;;  %v6708_v9 = vld [vmem:[%s9333_s9 + $0xc0] sm:$0xff] }
0x1d23   :  { %8275 = vmatpush3.bf16.msra.mxu0 %v8272_v45  ;;  %v4491_v45 = vrot.slane %v9757_v42, %v9309_v24 }
0x1d24   :  { %8293 = vmatprep.subr.bf16.mxu0 %v8292_v6 }
0x1df1   :  { %v7544_v10 = vpop.f32.mrb[74].mxu0 }
0x1df2   :  { %v4322_v58 = vadd.f32 %v7544_v10, %v4143_v26  ;;  %v4312_v49 = vpop.f32.mrb[75].mxu0 }
0x1df3   :  { %v4321_v52 = vadd.f32 %v4312_v49, %v4142_v8  ;;  %v4372_v8 = vrot.slane %v9736_v51, %v9087_v13  ;;  %v6693_v49 = vld [vmem:[%s9289_s1 + $0xb8] sm:$0xff] }
0x1df4   :  { %v9719_v12 = vadd.f32 %v4326_v53, %v4322_v58  ;;  %v6692_v58 = vld [vmem:[%s9289_s1 + $0xb0] sm:$0xff] }
0x1df5   :  { %v9721_v14 = vadd.f32 %v4326_v53, %v4321_v52  ;;  %v6691_v53 = vld [vmem:[%s9289_s1 + $0xa8] sm:$0xff]  ;;  %v8288_v52 = vpack.c.bf16 %v6693_v49, %v6692_v58  ;;  %v6699_v58 = vld [vmem:[%s9333_s9 + $0x98] sm:$0xff]  ;;  %v6710_v49 = vld [vmem:[%s9333_s9 + $0xd0] sm:$0xff] }
0x1df6   :  { %v4340_v16 = vsel %vm2061_vm9, %v9719_v12, 0.0  ;;  %v8284_v10 = vpack.c.bf16 %v6691_v53, %v6690_v20  ;;  %v6709_v20 = vld [vmem:[%s9333_s9 + $0xc8] sm:$0xff] }
0x1df7   :  { %4341 = vadd.xlane.f32.xlu1 %v4340_v16  ;;  %v4337_v17 = vsel %vm1948_vm8, %v9721_v14, 0.0  ;;  %v6676_v16 = vld [vmem:[%s9302_s5 + $0x2] sm:$0x3]  ;;  %v8308_v53 = vpack.c.bf16 %v6709_v20, %v6708_v9 }
0x1df8   :  { %4338 = vadd.xlane.f32.xlu0 %v4337_v17  ;;  %8285 = vmatprep.subr.bf16.mxu1 %v8284_v10  ;;  %v4383_v17 = vrot.slane %v6676_v16, %v9084_v5  ;;  %v6711_v16 = vld [vmem:[%s9333_s9 + $0xd8] sm:$0xff] }
0x1df9   :  { %8287 = vmatpush3.bf16.msra.mxu1 %v8284_v10  ;;  %v6698_v10 = vld [vmem:[%s9333_s9 + $0x90] sm:$0xff] }
0x1dfa   :  { %8289 = vmatprep.subr.bf16.mxu1 %v8288_v52 }
0x1dfd   :  { %8291 = vmatpush3.bf16.msra.mxu1 %v8288_v52  ;;  %v8296_v52 = vpack.c.bf16 %v6699_v58, %v6698_v10  ;;  %v8661_v10 = vld [vmem:[%s9496_s21 + $0x30] sm:$0xff]  ;;  %v8663_v58 = vld [vmem:[%s9379_s13 + $0x20] sm:$0xff] }
0x1dfe   :  { %8309 = vmatprep.subr.bf16.mxu1 %v8308_v53 }
0x1e84   :  { %v4342_v21 = vpop.xlane.xlu1 %4341 }
0x1e85   :  { %v4344_v28 = vmul.f32 0.03125, %v4342_v21  ;;  %v4339_v15 = vpop.xlane.xlu0 %4338 }
0x1e86   :  { %v4343_v29 = vmul.f32 0.03125, %v4339_v15 }
0x1e87   :  { %v4346_v18 = vsub.f32 %v9719_v12, %v4344_v28 }
0x1e88   :  { %v4345_v27 = vsub.f32 %v9721_v14, %v4343_v29 }
0x1e89   :  { %v4348_v22 = vmul.f32 %v4346_v18, %v4346_v18 }
0x1e8a   :  { %v4347_v11 = vmul.f32 %v4345_v27, %v4345_v27 }
0x1e8b   :  { %v4352_v60 = vsel %vm2061_vm9, %v4348_v22, 0.0 }
0x1e8c   :  { %4353 = vadd.xlane.f32.xlu1 %v4352_v60  ;;  %v4349_v36 = vsel %vm1948_vm8, %v4347_v11, 0.0 }
0x1e8d   :  { %4350 = vadd.xlane.f32.xlu0 %v4349_v36 }
0x1f19   :  { %v4354_v59 = vpop.xlane.xlu1 %4353 }
0x1f1a   :  { %v4356_v41 = vmul.f32 0.03125, %v4354_v59  ;;  %v4351_v61 = vpop.xlane.xlu0 %4350 }
0x1f1b   :  { %v4355_v0 = vmul.f32 0.03125, %v4351_v61 }
0x1f1c   :  { %v4358_v48 = vadd.f32 1e-05, %v4356_v41 }
0x1f1d   :  { %v4357_v55 = vadd.f32 1e-05, %v4355_v0 }
0x1f1e   :  { %8591 = vrsqrt.f32 %v4358_v48 }
0x1f1f   :  { %8593 = vrsqrt.f32 %v4357_v55 }
0x1f28   :  { %v8592_v1 = vpop.eup %8591 }
0x1f29   :  { %v8594_v30 = vpop.eup %8593  ;;  %v4362_v25 = vmul.f32 %v8592_v1, %v4346_v18 }
0x1f2a   :  { %v4361_v39 = vmul.f32 %v8594_v30, %v4345_v27 }
0x1f2b   :  { %v4368_v26 = vmul.f32 %v4366_v56, %v4362_v25 }
0x1f2c   :  { %v4367_v57 = vmul.f32 %v4366_v56, %v4361_v39 }
0x1f2d   :  { %v4374_v46 = vadd.f32 %v4372_v8, %v4368_v26 }
0x1f2e   :  { %v4373_v63 = vadd.f32 %v4372_v8, %v4367_v57 }
0x1f30   :  { %7553 = vmatprep.mubr.msk.f32.mxu0 %vm1948_vm8, %v4373_v63 }
0x1f31   :  { %7554 = vmatmul.mubr.msk.f32.vlgmr.msra.gmra.mrb[76].mxu0 %vm1948_vm8, %v4374_v46 }
0x1f32   :  { %8295 = vmatpush3.bf16.msra.mxu0 %v8292_v6  ;;  %v8658_v6 = vld [vmem:[%s9379_s13] sm:$0xff] }
0x1f33   :  { %8297 = vmatprep.subr.bf16.mxu0 %v8296_v52 }
0x1f36   :  { %8299 = vmatpush3.bf16.msra.mxu0 %v8296_v52 }
0x2004   :  { %v7555_v21 = vpop.f32.mrb[76].mxu0 }
0x2005   :  { %v4462_v28 = vadd.f32 %v7555_v21, %v4383_v17  ;;  %v4456_v15 = vpop.f32.mrb[77].mxu0  ;;  %v6702_v21 = vld [vmem:[%s9333_s9 + $0xa0] sm:$0xff] }
0x2006   :  { %v4457_v29 = vadd.f32 %v4456_v15, %v4383_v17  ;;  %v8312_v17 = vpack.c.bf16 %v6711_v16, %v6710_v49  ;;  %v8665_v49 = vld [vmem:[%s9379_s13 + $0x30] sm:$0xff] }
0x2007   :  { %v6685_v18 = vmul.f32 -1.442695, %v4462_v28 }
0x2008   :  { %v6684_v27 = vmul.f32 -1.442695, %v4457_v29 }
0x2009   :  { %8595 = vpow2.f32 %v6685_v18 }
0x200a   :  { %8597 = vpow2.f32 %v6684_v27 }
0x2013   :  { %v8596_v22 = vpop.eup %8595 }
0x2014   :  { %v8598_v11 = vpop.eup %8597  ;;  %v4472_v60 = vadd.f32 1.0, %v8596_v22 }
0x2015   :  { %v4471_v36 = vadd.f32 1.0, %v8598_v11 }
0x2016   :  { %8599 = vrcp.f32 %v4472_v60 }
0x2017   :  { %8601 = vrcp.f32 %v4471_v36  ;;  %v4606_v36 = vrot.slane %v9736_v51, %v9309_v24 }
0x2020   :  { %v8600_v23 = vpop.eup %8599 }
0x2021   :  { %v8602_v33 = vpop.eup %8601  ;;  %v4478_v40 = vmul.f32 %v8600_v23, %v4462_v28  ;;  %v6703_v28 = vld [vmem:[%s9333_s9 + $0xa8] sm:$0xff] }
0x2022   :  { %v4477_v35 = vmul.f32 %v8602_v33, %v4457_v29  ;;  %v8300_v15 = vpack.c.bf16 %v6703_v28, %v6702_v21 }
0x2024   :  { %7572 = vmatprep.mubr.msk.f32.mxu1 %vm138_vm0, %v4477_v35  ;;  %8301 = vmatprep.subr.bf16.mxu0 %v8300_v15 }
0x2025   :  { %7573 = vmatmul.mubr.msk.f32.vlgmr.msra.gmra.mrb[92].mxu1 %vm138_vm0, %v4478_v40 }
0x2026   :  { %8311 = vmatpush3.bf16.msra.mxu1 %v8308_v53  ;;  %v8659_v53 = vld [vmem:[%s9379_s13 + $0x8] sm:$0xff] }
0x2027   :  { %8313 = vmatprep.subr.bf16.mxu1 %v8312_v17 }
0x202a   :  { %8315 = vmatpush3.bf16.msra.mxu1 %v8312_v17 }
0x202b   :  { %8320 = vmatprep.subr.bf16.mxu1 %v8687_v34 }
0x20f8   :  { %v7574_v59 = vpop.f32.mrb[92].mxu1 }
0x20f9   :  { %v4570_v41 = vadd.f32 %v7574_v59, %v4491_v45  ;;  %v4564_v61 = vpop.f32.mrb[93].mxu1 }
0x20fa   :  { %v4565_v0 = vadd.f32 %v4564_v61, %v4491_v45  ;;  %v4612_v45 = vrot.slane %v9736_v51, %v9347_v44  ;;  %v6704_v61 = vld [vmem:[%s9333_s9 + $0xb0] sm:$0xff] }
0x20fb   :  { %v4574_v48 = vmul.f32 0.5, %v4570_v41 }
0x20fc   :  { %v4573_v55 = vmul.f32 0.5, %v4565_v0  ;;  %v6705_v0 = vld [vmem:[%s9333_s9 + $0xb8] sm:$0xff] }
0x20fd   :  { %v9762_v56 = vadd.f32 %v4574_v48, %v9719_v12 }
0x20fe   :  { %v9765_v1 = vadd.f32 %v4573_v55, %v9721_v14 }
0x20ff   :  { %v4580_v30 = vsel %vm2061_vm9, %v9762_v56, 0.0 }
0x2100   :  { %4581 = vadd.xlane.f32.xlu1 %v4580_v30  ;;  %v4577_v25 = vsel %vm1948_vm8, %v9765_v1, 0.0  ;;  %v8304_v30 = vpack.c.bf16 %v6705_v0, %v6704_v61 }
0x2101   :  { %4578 = vadd.xlane.f32.xlu0 %v4577_v25  ;;  %v4623_v25 = vrot.slane %v9757_v42, %v9367_v32 }
0x218d   :  { %v4582_v39 = vpop.xlane.xlu1 %4581 }
0x218e   :  { %v4584_v8 = vmul.f32 0.03125, %v4582_v39  ;;  %v4579_v26 = vpop.xlane.xlu0 %4578  ;;  %v4797_v39 = vrot.slane %v9757_v42, %v9370_v38 }
0x218f   :  { %v4583_v12 = vmul.f32 0.03125, %v4579_v26 }
0x2190   :  { %v4586_v57 = vsub.f32 %v9762_v56, %v4584_v8 }
0x2191   :  { %v4585_v14 = vsub.f32 %v9765_v1, %v4583_v12 }
0x2192   :  { %v4588_v63 = vmul.f32 %v4586_v57, %v4586_v57 }
0x2193   :  { %v4587_v46 = vmul.f32 %v4585_v14, %v4585_v14 }
0x2194   :  { %v4592_v62 = vsel %vm2061_vm9, %v4588_v63, 0.0 }
0x2195   :  { %4593 = vadd.xlane.f32.xlu1 %v4592_v62  ;;  %v4589_v4 = vsel %vm1948_vm8, %v4587_v46, 0.0  ;;  %v4713_v62 = vrot.slane %v9757_v42, %v9384_v3 }
0x2196   :  { %4590 = vadd.xlane.f32.xlu0 %v4589_v4 }
0x2222   :  { %v4594_v29 = vpop.xlane.xlu1 %4593 }
0x2223   :  { %v4596_v18 = vmul.f32 0.03125, %v4594_v29  ;;  %v4591_v27 = vpop.xlane.xlu0 %4590 }
0x2224   :  { %v4595_v22 = vmul.f32 0.03125, %v4591_v27 }
0x2225   :  { %v4598_v11 = vadd.f32 1e-05, %v4596_v18  ;;  %v8667_v18 = vld [vmem:[%s9441_s17 + $0x8] sm:$0xff] }
0x2226   :  { %v4597_v60 = vadd.f32 1e-05, %v4595_v22 }
0x2227   :  { %8603 = vrsqrt.f32 %v4598_v11 }
0x2228   :  { %8605 = vrsqrt.f32 %v4597_v60 }
0x2231   :  { %v8604_v23 = vpop.eup %8603 }
0x2232   :  { %v8606_v33 = vpop.eup %8605  ;;  %v4602_v35 = vmul.f32 %v8604_v23, %v4586_v57  ;;  %v8668_v23 = vld [vmem:[%s9441_s17 + $0x10] sm:$0xff] }
0x2233   :  { %v4601_v40 = vmul.f32 %v8606_v33, %v4585_v14 }
0x2234   :  { %v4608_v59 = vmul.f32 %v4606_v36, %v4602_v35  ;;  %v8669_v35 = vld [vmem:[%s9441_s17 + $0x18] sm:$0xff] }
0x2235   :  { %v4607_v41 = vmul.f32 %v4606_v36, %v4601_v40 }
0x2236   :  { %v4614_v55 = vadd.f32 %v4612_v45, %v4608_v59 }
0x2237   :  { %v4613_v48 = vadd.f32 %v4612_v45, %v4607_v41 }
0x2239   :  { %7583 = vmatprep.mubr.msk.f32.mxu0 %vm1948_vm8, %v4613_v48  ;;  %7605 = vmatprep.mubr.msk.f32.mxu1 %vm1948_vm8, %v4613_v48 }
0x223a   :  { %7584 = vmatmul.mubr.msk.f32.vlgmr.msra.gmra.mrb[78].mxu0 %vm1948_vm8, %v4614_v55  ;;  %7606 = vmatmul.mubr.msk.f32.vlgmr.msra.gmra.mrb[94].mxu1 %vm1948_vm8, %v4614_v55 }
0x223b   :  { %8303 = vmatpush3.bf16.msra.mxu0 %v8300_v15  ;;  %7594 = vmatprep.mubr.msk.f32.mxu0 %vm1948_vm8, %v4613_v48  ;;  %v8666_v15 = vld [vmem:[%s9441_s17] sm:$0xff] }
0x223c   :  { %8305 = vmatprep.subr.bf16.mxu0 %v8304_v30  ;;  %7637 = vmatprep.mubr.msk.f32.mxu1 %vm8703_vm10, %v8686_v54  ;;  %v8670_v48 = vld [vmem:[%s9441_s17 + $0x20] sm:$0xff] }
0x223f   :  { %8307 = vmatpush3.bf16.msra.mxu0 %v8304_v30  ;;  %v8671_v30 = vld [vmem:[%s9441_s17 + $0x28] sm:$0xff] }
0x2240   :  { %8316 = vmatprep.subr.bf16.mxu0 %v8687_v34 }
0x2242   :  { %7595 = vmatmul.mubr.msk.f32.vlgmr.msra.gmra.mrb[80].mxu0 %vm1948_vm8, %v4614_v55 }
0x2243   :  { %7612 = vmatprep.mubr.msk.f32.mxu0 %vm8703_vm10, %v8686_v54 }
0x230d   :  { %v7585_v8 = vpop.f32.mrb[78].mxu0  ;;  %v7607_v26 = vpop.f32.mrb[94].mxu1 }
0x230e   :  { %v9807_v12 = vadd.f32 %v7585_v8, %v4623_v25  ;;  %v4870_v57 = vadd.f32 %v7607_v26, %v4797_v39  ;;  %v4696_v14 = vpop.f32.mrb[79].mxu0  ;;  %v4864_v63 = vpop.f32.mrb[95].mxu1 }
0x230f   :  { %v4865_v34 = vadd.f32 %v4864_v63, %v4797_v39  ;;  %v4697_v52 = vadd.f32 %v4696_v14, %v4623_v25 }
0x2311   :  { %v8321_v46 = vpack.c.bf16 %v4870_v57, %v4865_v34  ;;  %v5093_v16 = vmul.f32 0.35355338, %v4697_v52  ;;  %v8672_v57 = vld [vmem:[%s9441_s17 + $0x30] sm:$0xff]  ;;  %v5094_v34 = vmul.f32 0.35355338, %v9807_v12 }
0x2313   :  { %8323 = vmatpush3.bf16.msk.msra.mxu1 %vm9138_vm7, %v8321_v46 }
0x2314   :  { %8343 = vmatprep.subr.bf16.mxu1 %v9500_v7 }
0x2315   :  { %v7596_v4 = vpop.f32.mrb[80].mxu0 }
0x2316   :  { %v4786_v47 = vadd.f32 %v7596_v4, %v4713_v62  ;;  %v4780_v2 = vpop.f32.mrb[81].mxu0  ;;  %7638 = vmatmul.mubr.msk.f32.vlgmr.msra.gmra.mrb[96].mxu1 %vm2593_vm11, %v8658_v6 }
0x2317   :  { %v4781_v9 = vadd.f32 %v4780_v2, %v4713_v62  ;;  %7640 = vmatprep.mubr.msk.f32.mxu1 %vm8703_vm10, %v8686_v54  ;;  %8345 = vmatpush3.bf16.msra.mxu1 %v9500_v7  ;;  %v8660_v7 = vld [vmem:[%s9379_s13 + $0x10] sm:$0xff]  ;;  %v8673_v62 = vld [vmem:[%s9507_s26 + $0x8] sm:$0x3f]  ;;  %v8674_v2 = vld [vmem:[%s9507_s26] sm:$0xff] }
0x2318   :  { %8347 = vmatprep.subr.bf16.mxu1 %v9515_v19 }
0x2319   :  { %v8317_v20 = vpack.c.bf16 %v4786_v47, %v4781_v9 }
0x231a   :  { %7641 = vmatmul.mubr.msk.f32.gmra.mrb[98].mxu1 %vm2593_vm11, %v8659_v53 }
0x231b   :  { %8319 = vmatpush3.bf16.msk.msra.mxu0 %vm9138_vm7, %v8317_v20  ;;  %7643 = vmatprep.mubr.msk.f32.mxu1 %vm8703_vm10, %v8686_v54 }
0x231c   :  { %8349 = vmatpush3.bf16.msra.mxu1 %v9515_v19  ;;  %v8662_v19 = vld [vmem:[%s9379_s13 + $0x18] sm:$0xff] }
0x231d   :  { %8351 = vmatprep.subr.bf16.mxu1 %v9519_v43 }
0x231e   :  { %7613 = vmatmul.mubr.msk.f32.vlgmr.msra.gmra.mrb[82].mxu0 %vm2593_vm11, %v8658_v6  ;;  %7644 = vmatmul.mubr.msk.f32.gmra.mrb[100].mxu1 %vm2593_vm11, %v8660_v7 }
0x231f   :  { %7615 = vmatprep.mubr.msk.f32.mxu0 %vm8703_vm10, %v8686_v54  ;;  %7646 = vmatprep.mubr.msk.f32.mxu1 %vm8703_vm10, %v8686_v54 }
0x2320   :  { %8353 = vmatpush3.bf16.msra.mxu1 %v9519_v43  ;;  %v8664_v43 = vld [vmem:[%s9379_s13 + $0x28] sm:$0xff] }
0x2321   :  { %7687 = vmatprep.subr.mxu1 %v8661_v10 }
0x2322   :  { %7616 = vmatmul.mubr.msk.f32.gmra.mrb[84].mxu0 %vm2593_vm11, %v8659_v53  ;;  %7647 = vmatmul.mubr.msk.f32.gmra.mrb[102].mxu1 %vm2593_vm11, %v8662_v19 }
0x2323   :  { %7618 = vmatprep.mubr.msk.f32.mxu0 %vm8703_vm10, %v8686_v54  ;;  %7649 = vmatprep.mubr.msk.f32.mxu1 %vm8703_vm10, %v8686_v54 }
0x2324   :  { %7688 = vmatpush3.msra.mxu1 %v8661_v10 }
0x2326   :  { %7619 = vmatmul.mubr.msk.f32.gmra.mrb[86].mxu0 %vm2593_vm11, %v8660_v7  ;;  %7650 = vmatmul.mubr.msk.f32.gmra.mrb[104].mxu1 %vm2593_vm11, %v8663_v58 }
0x2327   :  { %7621 = vmatprep.mubr.msk.f32.mxu0 %vm8703_vm10, %v8686_v54  ;;  %7652 = vmatprep.mubr.msk.f32.mxu1 %vm8703_vm10, %v8686_v54 }
0x232a   :  { %7622 = vmatmul.mubr.msk.f32.gmra.mrb[88].mxu0 %vm2593_vm11, %v8662_v19  ;;  %7653 = vmatmul.mubr.msk.f32.gmra.mrb[106].mxu1 %vm2593_vm11, %v8664_v43 }
0x232b   :  { %7624 = vmatprep.mubr.msk.f32.mxu0 %vm8703_vm10, %v8686_v54  ;;  %7655 = vmatprep.mubr.msk.f32.mxu1 %vm8703_vm10, %v8686_v54 }
0x232e   :  { %7625 = vmatmul.mubr.msk.f32.gmra.mrb[90].mxu0 %vm2593_vm11, %v8663_v58  ;;  %7656 = vmatmul.mubr.msk.f32.gmra.mrb[108].mxu1 %vm2593_vm11, %v8665_v49 }
0x232f   :  { %7627 = vmatprep.mubr.msk.f32.mxu0 %vm8703_vm10, %v8686_v54 }
0x2332   :  { %7628 = vmatmul.mubr.msk.f32.gmra.mrb[92].mxu0 %vm2593_vm11, %v8664_v43 }
0x2333   :  { %7630 = vmatprep.mubr.msk.f32.mxu0 %vm8703_vm10, %v8686_v54 }
0x2336   :  { %7631 = vmatmul.mubr.msk.f32.gmra.mrb[94].mxu0 %vm2593_vm11, %v8665_v49 }
0x2337   :  { %7672 = vmatprep.mubr.msk.f32.mxu0 %vm1948_vm8, %v5093_v16 }
0x23e9   :  { %v5052_v20 = vpop.f32.mrb[96].mxu1 }
0x23ea   :  { %v5086_v53 = vmul.f32 %v8666_v15, %v5052_v20  ;;  %v7639_v7 = vpop.f32.mrb[97].mxu1 }
0x23ed   :  { %v5057_v10 = vpop.f32.mrb[98].mxu1 }
0x23ee   :  { %v5087_v19 = vmul.f32 %v8667_v18, %v5057_v10  ;;  %v7642_v12 = vpop.f32.mrb[99].mxu1 }
0x23f0   :  { %v8354_v43 = vpack.c.bf16 %v5087_v19, %v5086_v53 }
0x23f1   :  { %v4942_v17 = vpop.f32.mrb[82].mxu0  ;;  %v5062_v58 = vpop.f32.mrb[100].mxu1 }
0x23f2   :  { %v7614_v21 = vpop.f32.mrb[83].mxu0  ;;  %v4976_v29 = vmul.f32 %v8666_v15, %v4942_v17  ;;  %v5088_v49 = vmul.f32 %v8668_v23, %v5062_v58  ;;  %v7645_v52 = vpop.f32.mrb[101].mxu1 }
0x23f5   :  { %v4947_v28 = vpop.f32.mrb[84].mxu0  ;;  %v5067_v16 = vpop.f32.mrb[102].mxu1 }
0x23f6   :  { %v4977_v27 = vmul.f32 %v8667_v18, %v4947_v28  ;;  %v7617_v22 = vpop.f32.mrb[85].mxu0  ;;  %v5089_v17 = vmul.f32 %v8669_v35, %v5067_v16  ;;  %v7648_v21 = vpop.f32.mrb[103].mxu1 }
0x23f7   :  { %v6750_v21 = vld [vmem:[%s9565_s2 + $0x48] sm:$0xff] }
0x23f8   :  { %v8324_v11 = vpack.c.bf16 %v4977_v27, %v4976_v29  ;;  %v8358_v29 = vpack.c.bf16 %v5089_v17, %v5088_v49  ;;  %v6749_v17 = vld [vmem:[%s9565_s2 + $0x40] sm:$0xff] }
0x23f9   :  { %v4952_v60 = vpop.f32.mrb[86].mxu0  ;;  %v5072_v28 = vpop.f32.mrb[104].mxu1 }
0x23fa   :  { %v7620_v36 = vpop.f32.mrb[87].mxu0  ;;  %8326 = vmatprep.subr.msk.bf16.mxu0 %vm9453_vm12, %v8324_v11  ;;  %v4978_v33 = vmul.f32 %v8668_v23, %v4952_v60  ;;  %v5090_v27 = vmul.f32 %v8670_v48, %v5072_v28  ;;  %v7651_v22 = vpop.f32.mrb[105].mxu1  ;;  %v6755_v28 = vld [vmem:[%s9565_s2 + $0x60] sm:$0xff] }
0x23fb   :  { %8329 = vmatpush3.bf16.xpose.msk.msra.mxu0 %vm9453_vm12, %v8324_v11 }
0x23fd   :  { %v4957_v54 = vpop.f32.mrb[88].mxu0  ;;  %v5077_v11 = vpop.f32.mrb[106].mxu1 }
0x23fe   :  { %v4979_v40 = vmul.f32 %v8669_v35, %v4957_v54  ;;  %v7623_v45 = vpop.f32.mrb[89].mxu0  ;;  %v5091_v15 = vmul.f32 %v8671_v30, %v5077_v11  ;;  %v7654_v60 = vpop.f32.mrb[107].mxu1  ;;  %v6751_v11 = vld [vmem:[%s9565_s2 + $0x50] sm:$0xff] }
0x23ff   :  { %v6757_v60 = vld [vmem:[%s9565_s2 + $0x70] sm:$0xff] }
0x2400   :  { %v8330_v59 = vpack.c.bf16 %v4979_v40, %v4978_v33  ;;  %v8362_v36 = vpack.c.bf16 %v5091_v15, %v5090_v27  ;;  %v6756_v27 = vld [vmem:[%s9565_s2 + $0x68] sm:$0xff]  ;;  %v6752_v15 = vld [vmem:[%s9565_s2 + $0x58] sm:$0xff] }
0x2401   :  { %v4962_v41 = vpop.f32.mrb[90].mxu0  ;;  %v5082_v18 = vpop.f32.mrb[108].mxu1  ;;  %v8382_v22 = vpack.c.bf16 %v6756_v27, %v6755_v28  ;;  %v6763_v28 = vld [vmem:[%s9627_s18 + $0x4] sm:$0x7] }
0x2402   :  { %v7626_v61 = vpop.f32.mrb[91].mxu0  ;;  %8332 = vmatprep.subr.msk.bf16.mxu0 %vm9453_vm12, %v8330_v59  ;;  %v4980_v55 = vmul.f32 %v8670_v48, %v4962_v41  ;;  %v5092_v54 = vmul.f32 %v8672_v57, %v5082_v18  ;;  %v7657_v33 = vpop.f32.mrb[109].mxu1  ;;  %v6743_v48 = vld [vmem:[%s9333_s9 + $0xe0] sm:$0xff]  ;;  %v8378_v18 = vpack.c.bf16 %v6752_v15, %v6751_v11  ;;  %v5859_v27 = vrot.slane %v6763_v28, %v9087_v13 }
0x2403   :  { %8335 = vmatpush3.bf16.xpose.msk.msra.mxu0 %vm9453_vm12, %v8330_v59  ;;  %v5942_v50 = vrot.slane %v6763_v28, %v9309_v24 }
0x2405   :  { %v4967_v0 = vpop.f32.mrb[92].mxu0 }
0x2406   :  { %v4981_v25 = vmul.f32 %v8671_v30, %v4967_v0  ;;  %v7629_v39 = vpop.f32.mrb[93].mxu0  ;;  %v6745_v30 = vld [vmem:[%s9333_s9 + $0xf0] sm:$0xff] }
0x2407   :  { %v6746_v39 = vld [vmem:[%s9333_s9 + $0xf8] sm:$0xff] }
0x2408   :  { %v8336_v8 = vpack.c.bf16 %v4981_v25, %v4980_v55  ;;  %v6744_v55 = vld [vmem:[%s9333_s9 + $0xe8] sm:$0xff] }
0x2409   :  { %v4972_v26 = vpop.f32.mrb[94].mxu0  ;;  %v8366_v25 = vpack.c.bf16 %v6744_v55, %v6743_v48 }
0x240a   :  { %8338 = vmatprep.subr.msk.bf16.mxu0 %vm9453_vm12, %v8336_v8  ;;  %v4982_v14 = vmul.f32 %v8672_v57, %v4972_v26  ;;  %v7632_v63 = vpop.f32.mrb[95].mxu0 }
0x240b   :  { %8341 = vmatpush3.bf16.xpose.msk.msra.mxu0 %vm9453_vm12, %v8336_v8  ;;  %v8370_v8 = vpack.c.bf16 %v6746_v39, %v6745_v30  ;;  %8367 = vmatprep.subr.bf16.mxu1 %v8366_v25  ;;  %v5504_v30 = vrot.slane %v9736_v51, %v9384_v3 }
0x240c   :  { %7670 = vmatprep.subr.msk.mxu0 %vm1948_vm8, %v4982_v14 }
0x2413   :  { %7671 = vmatpush3.xpose.msk.msra.mxu0 %vm1948_vm8, %v4982_v14 }
0x2414   :  { %8355 = vmatprep.subr.bf16.mxu0 %v8354_v43 }
0x2416   :  { %7673 = vmatmul.mubr.msk.f32.vlgmr.msra.gmra.mrb[96].mxu0 %vm1948_vm8, %v5094_v34 }
0x2417   :  { %8357 = vmatpush3.bf16.msra.mxu0 %v8354_v43 }
0x2418   :  { %8359 = vmatprep.subr.bf16.mxu0 %v8358_v29 }
0x241b   :  { %8361 = vmatpush3.bf16.msra.mxu0 %v8358_v29  ;;  %v8374_v29 = vpack.c.bf16 %v6750_v21, %v6749_v17  ;;  %v8679_v17 = vld [vmem:[%s9586_s7 + $0x20] sm:$0xff]  ;;  %v8680_v21 = vld [vmem:[%s9586_s7 + $0x28] sm:$0x3f] }
0x241c   :  { %8363 = vmatprep.subr.bf16.mxu0 %v8362_v36 }
0x241f   :  { %8365 = vmatpush3.bf16.msra.mxu0 %v8362_v36  ;;  %v6758_v36 = vld [vmem:[%s9565_s2 + $0x78] sm:$0xff] }
0x2420   :  { %7704 = vmatprep.subr.mxu0 %v5092_v54 }
0x2423   :  { %7705 = vmatpush3.msra.mxu0 %v5092_v54  ;;  %v8386_v54 = vpack.c.bf16 %v6758_v36, %v6757_v60 }
0x2424   :  { %8383 = vmatprep.subr.bf16.mxu0 %v8382_v22 }
0x24e9   :  { %v7674_v46 = vpop.f32.mrb[96].mxu0 }
0x24ea   :  { %v5194_v4 = vadd.f32 %v8673_v62, %v7674_v46  ;;  %v5188_v47 = vpop.f32.mrb[97].mxu0 }
0x24eb   :  { %v5189_v6 = vadd.f32 %v8674_v2, %v5188_v47  ;;  %v5466_v47 = vrot.slane %v9757_v42, %v9544_v31 }
0x24ec   :  { %v5200_v9 = vsel %vm2943_vm13, %v5194_v4, -inf }
0x24ed   :  { %5201 = vmax.xlane.f32.xlu1 %v5200_v9  ;;  %v5197_v37 = vsel %vm2939_vm14, %v5189_v6, -inf }
0x24ee   :  { %5198 = vmax.xlane.f32.xlu0 %v5197_v37 }
0x257a   :  { %v5202_v23 = vpop.xlane.xlu1 %5201 }
0x257b   :  { %v5204_v35 = vsub.f32 %v5194_v4, %v5202_v23  ;;  %v5199_v40 = vpop.xlane.xlu0 %5198 }
0x257c   :  { %v5203_v45 = vsub.f32 %v5189_v6, %v5199_v40 }
0x257d   :  { %v5207_v59 = vmul.f32 1.442695, %v5204_v35 }
0x257e   :  { %v5205_v41 = vmul.f32 1.442695, %v5203_v45 }
0x2580   :  { %8607 = vpow2.f32 %v5205_v41  ;;  %v5498_v41 = vrot.slane %v9736_v51, %v9367_v32 }
0x2581   :  { %8609 = vpow2.f32 %v5207_v59 }
0x258a   :  { %v8608_v61 = vpop.eup %8607 }
0x258b   :  { %v8610_v0 = vpop.eup %8609  ;;  %7689 = vmatprep.mubr.msk.f32.mxu1 %vm2939_vm14, %v8608_v61 }
0x258c   :  { %7690 = vmatmul.mubr.msk.f32.vlgmr.msra.gmra.mrb[110].mxu1 %vm2939_vm14, %v8610_v0 }
0x258d   :  { %8369 = vmatpush3.bf16.msra.mxu1 %v8366_v25 }
0x258e   :  { %8371 = vmatprep.subr.bf16.mxu1 %v8370_v8 }
0x2591   :  { %8373 = vmatpush3.bf16.msra.mxu1 %v8370_v8 }
0x2592   :  { %8375 = vmatprep.subr.bf16.mxu1 %v8374_v29 }
0x265f   :  { %v7691_v26 = vpop.f32.mrb[110].mxu1 }
0x2660   :  { %8611 = vrcp.f32 %v7691_v26  ;;  %v5281_v57 = vpop.f32.mrb[111].mxu1 }
0x2661   :  { %8613 = vrcp.f32 %v5281_v57  ;;  %v8675_v57 = vld [vmem:[%s9586_s7] sm:$0xff] }
0x266a   :  { %v8612_v14 = vpop.eup %8611 }
0x266b   :  { %v8614_v63 = vpop.eup %8613  ;;  %v5293_v46 = vmul.f32 %v8612_v14, %v8610_v0  ;;  %v8676_v14 = vld [vmem:[%s9586_s7 + $0x10] sm:$0xff] }
0x266c   :  { %v5292_v34 = vmul.f32 %v8614_v63, %v8608_v61  ;;  %v9942_v63 = vld [vmem:[%s9595_s12 + $0x8] sm:$0x1f] }
0x266d   :  { %v5605_v3 = vrot.slane %v9942_v63, %v9347_v44 }
0x266e   :  { %7706 = vmatprep.mubr.msk.f32.mxu0 %vm2939_vm14, %v5292_v34 }
0x266f   :  { %7707 = vmatmul.mubr.msk.f32.vlgmr.msra.gmra.mrb[98].mxu0 %vm2939_vm14, %v5293_v46 }
0x2670   :  { %8385 = vmatpush3.bf16.msra.mxu0 %v8382_v22 }
0x2671   :  { %8387 = vmatprep.subr.bf16.mxu0 %v8386_v54 }
0x2674   :  { %8389 = vmatpush3.bf16.msra.mxu0 %v8386_v54 }
0x2742   :  { %v7708_v62 = vpop.f32.mrb[98].mxu0 }
0x2743   :  { %v5366_v4 = vpop.f32.mrb[99].mxu0 }
0x2744   :  { %7717 = vmatprep.mubr.msk.f32.mxu1 %vm1948_vm8, %v5366_v4 }
0x2745   :  { %7718 = vmatmul.mubr.msk.f32.vlgmr.msra.gmra.mrb[112].mxu1 %vm1948_vm8, %v7708_v62 }
0x2746   :  { %8377 = vmatpush3.bf16.msra.mxu1 %v8374_v29  ;;  %v5778_v29 = vrot.slane %v6763_v28, %v9084_v5 }
0x2747   :  { %8379 = vmatprep.subr.bf16.mxu1 %v8378_v18 }
0x274a   :  { %8381 = vmatpush3.bf16.msra.mxu1 %v8378_v18 }
0x2818   :  { %v7719_v2 = vpop.f32.mrb[112].mxu1 }
0x2819   :  { %v5462_v6 = vadd.f32 %v7719_v2, %v9762_v56  ;;  %v5452_v9 = vpop.f32.mrb[113].mxu1 }
0x281a   :  { %v5461_v37 = vadd.f32 %v5452_v9, %v9765_v1 }
0x281b   :  { %v9909_v20 = vadd.f32 %v5466_v47, %v5462_v6 }
0x281c   :  { %v9911_v53 = vadd.f32 %v5466_v47, %v5461_v37 }
0x281d   :  { %v5472_v7 = vsel %vm2061_vm9, %v9909_v20, 0.0 }
0x281e   :  { %5473 = vadd.xlane.f32.xlu1 %v5472_v7  ;;  %v5469_v10 = vsel %vm1948_vm8, %v9911_v53, 0.0 }
0x281f   :  { %5470 = vadd.xlane.f32.xlu0 %v5469_v10 }
0x28ab   :  { %v5474_v42 = vpop.xlane.xlu1 %5473 }
0x28ac   :  { %v5476_v56 = vmul.f32 0.03125, %v5474_v42  ;;  %v5471_v19 = vpop.xlane.xlu0 %5470  ;;  %v5515_v42 = vrot.slane %v9942_v63, %v9309_v24 }
0x28ad   :  { %v5475_v1 = vmul.f32 0.03125, %v5471_v19 }
0x28ae   :  { %v5478_v12 = vsub.f32 %v9909_v20, %v5476_v56 }
0x28af   :  { %v5477_v58 = vsub.f32 %v9911_v53, %v5475_v1 }
0x28b0   :  { %v5480_v43 = vmul.f32 %v5478_v12, %v5478_v12 }
0x28b1   :  { %v5479_v49 = vmul.f32 %v5477_v58, %v5477_v58 }
0x28b2   :  { %v5484_v52 = vsel %vm2061_vm9, %v5480_v43, 0.0 }
0x28b3   :  { %5485 = vadd.xlane.f32.xlu1 %v5484_v52  ;;  %v5481_v16 = vsel %vm1948_vm8, %v5479_v49, 0.0  ;;  %v8677_v52 = vld [vmem:[%s9586_s7 + $0x8] sm:$0x3f] }
0x28b4   :  { %5482 = vadd.xlane.f32.xlu0 %v5481_v16  ;;  %v8678_v16 = vld [vmem:[%s9586_s7 + $0x18] sm:$0x3f] }
0x2940   :  { %v5486_v33 = vpop.xlane.xlu1 %5485 }
0x2941   :  { %v5488_v23 = vmul.f32 0.03125, %v5486_v33  ;;  %v5483_v35 = vpop.xlane.xlu0 %5482 }
0x2942   :  { %v5487_v40 = vmul.f32 0.03125, %v5483_v35 }
0x2943   :  { %v5490_v45 = vadd.f32 1e-05, %v5488_v23 }
0x2944   :  { %v5489_v59 = vadd.f32 1e-05, %v5487_v40 }
0x2945   :  { %8615 = vrsqrt.f32 %v5490_v45 }
0x2946   :  { %8617 = vrsqrt.f32 %v5489_v59 }
0x294f   :  { %v8616_v61 = vpop.eup %8615 }
0x2950   :  { %v8618_v0 = vpop.eup %8617  ;;  %v5494_v48 = vmul.f32 %v8616_v61, %v5478_v12 }
0x2951   :  { %v5493_v55 = vmul.f32 %v8618_v0, %v5477_v58 }
0x2952   :  { %v5500_v25 = vmul.f32 %v5498_v41, %v5494_v48 }
0x2953   :  { %v5499_v39 = vmul.f32 %v5498_v41, %v5493_v55  ;;  %v5950_v41 = vrot.slane %v9942_v63, %v9367_v32 }
0x2954   :  { %v5506_v26 = vadd.f32 %v5504_v30, %v5500_v25 }
0x2955   :  { %v5505_v8 = vadd.f32 %v5504_v30, %v5499_v39 }
0x2957   :  { %7728 = vmatprep.mubr.msk.f32.mxu1 %vm1948_vm8, %v5505_v8  ;;  %7739 = vmatprep.mubr.msk.f32.mxu0 %vm1948_vm8, %v5505_v8 }
0x2958   :  { %7729 = vmatmul.mubr.msk.f32.vlgmr.msra.gmra.mrb[114].mxu1 %vm1948_vm8, %v5506_v26  ;;  %7740 = vmatmul.mubr.msk.f32.vlgmr.msra.gmra.mrb[100].mxu0 %vm1948_vm8, %v5506_v26 }
0x2959   :  { %7746 = vmatprep.mubr.msk.f32.mxu1 %vm2593_vm11, %v8675_v57  ;;  %7753 = vmatprep.mubr.msk.f32.mxu0 %vm2593_vm11, %v8676_v14 }
0x2a2b   :  { %v7730_v51 = vpop.f32.mrb[114].mxu1  ;;  %v7741_v34 = vpop.f32.mrb[100].mxu0 }
0x2a2c   :  { %v5678_v46 = vadd.f32 %v7741_v34, %v5605_v3  ;;  %v5588_v62 = vpop.f32.mrb[115].mxu1  ;;  %v5672_v4 = vpop.f32.mrb[101].mxu0  ;;  %v5594_v56 = vadd.f32 %v7730_v51, %v5515_v42 }
0x2a2d   :  { %v5673_v47 = vadd.f32 %v5672_v4, %v5605_v3  ;;  %v5589_v1 = vadd.f32 %v5588_v62, %v5515_v42  ;;  %v6775_v62 = vld [vmem:[%s9642_s24 + $0x20] sm:$0xff]  ;;  %v6776_v4 = vld [vmem:[%s9642_s24 + $0x28] sm:$0xff] }
0x2a2e   :  { %v6762_v2 = vmul.f32 -1.442695, %v5678_v46 }
0x2a2f   :  { %v6761_v6 = vmul.f32 -1.442695, %v5673_v47  ;;  %v6777_v47 = vld [vmem:[%s9642_s24 + $0x30] sm:$0xff] }
0x2a30   :  { %8619 = vpow2.f32 %v6762_v2  ;;  %v8408_v2 = vpack.c.bf16 %v6776_v4, %v6775_v62 }
0x2a31   :  { %8621 = vpow2.f32 %v6761_v6  ;;  %v6778_v6 = vld [vmem:[%s9642_s24 + $0x38] sm:$0xff] }
0x2a3a   :  { %v8620_v9 = vpop.eup %8619 }
0x2a3b   :  { %v8622_v37 = vpop.eup %8621  ;;  %v5688_v7 = vadd.f32 1.0, %v8620_v9  ;;  %v8412_v9 = vpack.c.bf16 %v6778_v6, %v6777_v47 }
0x2a3c   :  { %v5687_v10 = vadd.f32 1.0, %v8622_v37 }
0x2a3d   :  { %8623 = vrcp.f32 %v5688_v7 }
0x2a3e   :  { %8625 = vrcp.f32 %v5687_v10 }
0x2a47   :  { %v8624_v19 = vpop.eup %8623 }
0x2a48   :  { %v8626_v12 = vpop.eup %8625  ;;  %v5694_v58 = vmul.f32 %v8624_v19, %v5594_v56 }
0x2a49   :  { %v5693_v43 = vmul.f32 %v8626_v12, %v5589_v1  ;;  %v5982_v1 = vrot.slane %v9942_v63, %v9084_v5 }
0x2a4b   :  { %v8390_v49 = vpack.c.bf16 %v5694_v58, %v5693_v43 }
0x2a4d   :  { %8392 = vmatprep.subr.msk.bf16.mxu1 %vm9138_vm7, %v8390_v49  ;;  %8398 = vmatprep.subr.msk.bf16.mxu0 %vm9138_vm7, %v8390_v49 }
0x2a4e   :  { %8395 = vmatpush3.bf16.msk.msra.mxu1 %vm9138_vm7, %v8390_v49  ;;  %8401 = vmatpush3.bf16.msk.msra.mxu0 %vm9138_vm7, %v8390_v49 }
0x2a4f   :  { %8404 = vmatprep.subr.msk.bf16.mxu1 %vm9138_vm7, %v8390_v49  ;;  %8409 = vmatprep.subr.bf16.mxu0 %v8408_v2 }
0x2a51   :  { %7747 = vmatmul.mubr.msk.f32.vlgmr.msra.gmra.mrb[116].mxu1 %vm2593_vm11, %v8677_v52  ;;  %7754 = vmatmul.mubr.msk.f32.vlgmr.msra.gmra.mrb[102].mxu0 %vm2593_vm11, %v8678_v16 }
0x2a52   :  { %8407 = vmatpush3.bf16.msk.msra.mxu1 %vm9138_vm7, %v8390_v49  ;;  %7760 = vmatprep.mubr.msk.f32.mxu1 %vm2593_vm11, %v8679_v17  ;;  %v5988_v49 = vrot.slane %v9942_v63, %v9087_v13 }
0x2a53   :  { %8411 = vmatpush3.bf16.msra.mxu0 %v8408_v2 }
0x2a54   :  { %8413 = vmatprep.subr.bf16.mxu0 %v8412_v9 }
0x2a55   :  { %7761 = vmatmul.mubr.msk.f32.vlgmr.msra.gmra.mrb[118].mxu1 %vm2593_vm11, %v8680_v21 }
0x2a57   :  { %8415 = vmatpush3.bf16.msra.mxu0 %v8412_v9  ;;  %v8681_v9 = vld [vmem:[%s9275_s27 + $0x18] sm:$0xff] }
0x2b24   :  { %v7748_v22 = vpop.f32.mrb[116].mxu1  ;;  %v7755_v11 = vpop.f32.mrb[102].mxu0 }
0x2b25   :  { %v5780_v15 = vmul.f32 %v7748_v22, %v5778_v29  ;;  %v5861_v60 = vmul.f32 %v7755_v11, %v5859_v27  ;;  %v5766_v18 = vpop.f32.mrb[117].mxu1  ;;  %v5847_v36 = vpop.f32.mrb[103].mxu0 }
0x2b26   :  { %v5779_v54 = vmul.f32 %v5778_v29, %v5766_v18  ;;  %v5860_v33 = vmul.f32 %v5859_v27, %v5847_v36 }
0x2b27   :  { %v5863_v23 = vadd.f32 %v5861_v60, %v5780_v15 }
0x2b28   :  { %v5862_v35 = vadd.f32 %v5860_v33, %v5779_v54  ;;  %v7762_v40 = vpop.f32.mrb[118].mxu1  ;;  %v6675_v54 = vld [vmem:[%s9275_s27 + $0x28] sm:$0x3] }
0x2b29   :  { %v5944_v45 = vmul.f32 %v7762_v40, %v5942_v50  ;;  %v5930_v59 = vpop.f32.mrb[119].mxu1  ;;  %v6096_v33 = vrot.slane %v6675_v54, %v9084_v5 }
0x2b2a   :  { %v5943_v61 = vmul.f32 %v5942_v50, %v5930_v59 }
0x2b2b   :  { %v5946_v0 = vadd.f32 %v5944_v45, %v5863_v23 }
0x2b2c   :  { %v5945_v48 = vadd.f32 %v5943_v61, %v5862_v35 }
0x2b2d   :  { %v5952_v55 = vadd.f32 %v5950_v41, %v5946_v0 }
0x2b2e   :  { %v5951_v30 = vadd.f32 %v5950_v41, %v5945_v48 }
0x2b2f   :  { %v5956_v25 = vsel %vm2061_vm9, %v5952_v55, 0.0 }
0x2b30   :  { %5957 = vadd.xlane.f32.xlu1 %v5956_v25  ;;  %v5953_v24 = vsel %vm1948_vm8, %v5951_v30, 0.0 }
0x2b31   :  { %5954 = vadd.xlane.f32.xlu0 %v5953_v24 }
0x2bbd   :  { %v5958_v39 = vpop.xlane.xlu1 %5957 }
0x2bbe   :  { %v5960_v8 = vmul.f32 0.03125, %v5958_v39  ;;  %v5955_v26 = vpop.xlane.xlu0 %5954 }
0x2bbf   :  { %v5959_v57 = vmul.f32 0.03125, %v5955_v26 }
0x2bc0   :  { %v5962_v32 = vsub.f32 %v5952_v55, %v5960_v8 }
0x2bc1   :  { %v5961_v14 = vsub.f32 %v5951_v30, %v5959_v57  ;;  %v6781_v57 = vld [vmem:[%s9266_s23 + $0x60] sm:$0xff] }
0x2bc2   :  { %v5964_v3 = vmul.f32 %v5962_v32, %v5962_v32 }
0x2bc3   :  { %v5963_v51 = vmul.f32 %v5961_v14, %v5961_v14 }
0x2bc4   :  { %v5968_v34 = vsel %vm2061_vm9, %v5964_v3, 0.0  ;;  %v6783_v3 = vld [vmem:[%s9266_s23 + $0x70] sm:$0xff] }
0x2bc5   :  { %5969 = vadd.xlane.f32.xlu1 %v5968_v34  ;;  %v5965_v46 = vsel %vm1948_vm8, %v5963_v51, 0.0  ;;  %v6784_v51 = vld [vmem:[%s9266_s23 + $0x78] sm:$0xff] }
0x2bc6   :  { %5966 = vadd.xlane.f32.xlu0 %v5965_v46  ;;  %v8420_v34 = vpack.c.bf16 %v6784_v51, %v6783_v3 }
0x2c52   :  { %v5970_v37 = vpop.xlane.xlu1 %5969 }
0x2c53   :  { %v5972_v7 = vmul.f32 0.03125, %v5970_v37  ;;  %v5967_v10 = vpop.xlane.xlu0 %5966  ;;  %v6128_v37 = vrot.slane %v8681_v9, %v9370_v38  ;;  %v6789_v38 = vld [vmem:[%s9289_s1 + $0xc0] sm:$0xff] }
0x2c54   :  { %v5971_v42 = vmul.f32 0.03125, %v5967_v10 }
0x2c55   :  { %v5974_v56 = vadd.f32 1e-05, %v5972_v7 }
0x2c56   :  { %v5973_v19 = vadd.f32 1e-05, %v5971_v42 }
0x2c57   :  { %8627 = vrsqrt.f32 %v5974_v56 }
0x2c58   :  { %8629 = vrsqrt.f32 %v5973_v19  ;;  %v6134_v19 = vrot.slane %v8681_v9, %v9544_v31  ;;  %v6792_v31 = vld [vmem:[%s9289_s1 + $0xd8] sm:$0xff] }
0x2c61   :  { %v8628_v12 = vpop.eup %8627 }
0x2c62   :  { %v8630_v58 = vpop.eup %8629  ;;  %v5978_v43 = vmul.f32 %v8628_v12, %v5962_v32  ;;  %v6782_v32 = vld [vmem:[%s9266_s23 + $0x68] sm:$0xff]  ;;  %s8716_s23 = smov 29  }
0x2c63   :  { %v5977_v52 = vmul.f32 %v8630_v58, %v5961_v14  ;;  %v8416_v14 = vpack.c.bf16 %v6782_v32, %v6781_v57 }
0x2c64   :  { %v5984_v16 = vmul.f32 %v5982_v1, %v5978_v43 }
0x2c65   :  { %v5983_v17 = vmul.f32 %v5982_v1, %v5977_v52  ;;  %8417 = vmatprep.subr.bf16.mxu1 %v8416_v14 }
0x2c66   :  { %v5990_v21 = vadd.f32 %v5988_v49, %v5984_v16  ;;  %8419 = vmatpush3.bf16.msra.mxu1 %v8416_v14  ;;  %v6791_v16 = vld [vmem:[%s9289_s1 + $0xd0] sm:$0xff] }
0x2c67   :  { %v5989_v28 = vadd.f32 %v5988_v49, %v5983_v17  ;;  %8421 = vmatprep.subr.bf16.mxu1 %v8420_v34  ;;  %v6790_v49 = vld [vmem:[%s9289_s1 + $0xc8] sm:$0xff]  ;;  %v8428_v17 = vpack.c.bf16 %v6792_v31, %v6791_v16 }
0x2c68   :  { %v6774_v29 = vmul.f32 -1.442695, %v5990_v21  ;;  %v8424_v52 = vpack.c.bf16 %v6790_v49, %v6789_v38 }
0x2c69   :  { %v6773_v27 = vmul.f32 -1.442695, %v5989_v28 }
0x2c6a   :  { %8631 = vpow2.f32 %v6774_v29  ;;  %8423 = vmatpush3.bf16.msra.mxu1 %v8420_v34  ;;  %8425 = vmatprep.subr.bf16.mxu0 %v8424_v52 }
0x2c6b   :  { %8633 = vpow2.f32 %v6773_v27  ;;  %v6795_v27 = vld [vmem:[%s9289_s1 + $0xf0] sm:$0xff] }
0x2c74   :  { %v8632_v22 = vpop.eup %8631 }
0x2c75   :  { %v8634_v11 = vpop.eup %8633  ;;  %v5998_v15 = vadd.f32 1.0, %v8632_v22  ;;  %v6796_v22 = vld [vmem:[%s9289_s1 + $0xf8] sm:$0xff] }
0x2c76   :  { %v5997_v60 = vadd.f32 1.0, %v8634_v11  ;;  %v8436_v11 = vpack.c.bf16 %v6796_v22, %v6795_v27 }
0x2c77   :  { %8635 = vrcp.f32 %v5998_v15  ;;  %v8682_v15 = vld [vmem:[%s9302_s5 + $0x2] sm:$0x3]  ;;  %s6411_s5 = sld [smem:[%s10040_s0 + %s8716_s23]]  }
0x2c78   :  { %8637 = vrcp.f32 %v5997_v60  ;;  %v6145_v60 = vrot.slane %v8682_v15, %v9087_v13 }
0x2c81   :  { %v8636_v18 = vpop.eup %8635 }
0x2c82   :  { %v8638_v36 = vpop.eup %8637  ;;  %v6004_v63 = vmul.f32 %v8636_v18, %v5990_v21  ;;  %v6793_v21 = vld [vmem:[%s9289_s1 + $0xe0] sm:$0xff] }
0x2c83   :  { %v6003_v50 = vmul.f32 %v8638_v36, %v5989_v28  ;;  %v6794_v28 = vld [vmem:[%s9289_s1 + $0xe8] sm:$0xff] }
0x2c84   :  { %v8432_v29 = vpack.c.bf16 %v6794_v28, %v6793_v21 }
0x2c85   :  { %7771 = vmatprep.mubr.msk.f32.mxu0 %vm1948_vm8, %v6003_v50 }
0x2c86   :  { %7772 = vmatmul.mubr.msk.f32.vlgmr.msra.gmra.mrb[104].mxu0 %vm1948_vm8, %v6004_v63 }
0x2c87   :  { %8427 = vmatpush3.bf16.msra.mxu0 %v8424_v52 }
0x2c88   :  { %8429 = vmatprep.subr.bf16.mxu0 %v8428_v17 }
0x2c8b   :  { %8431 = vmatpush3.bf16.msra.mxu0 %v8428_v17 }
0x2c8c   :  { %8433 = vmatprep.subr.bf16.mxu0 %v8432_v29 }
0x2c8f   :  { %8435 = vmatpush3.bf16.msra.mxu0 %v8432_v29 }
0x2c90   :  { %8437 = vmatprep.subr.bf16.mxu0 %v8436_v11 }
0x2c93   :  { %8439 = vmatpush3.bf16.msra.mxu0 %v8436_v11 }
0x2d59   :  { %v7773_v23 = vpop.f32.mrb[104].mxu0 }
0x2d5a   :  { %v6092_v35 = vadd.f32 %v7773_v23, %v9909_v20  ;;  %v6082_v40 = vpop.f32.mrb[105].mxu0 }
0x2d5b   :  { %v6091_v45 = vadd.f32 %v6082_v40, %v9911_v53 }
0x2d5c   :  { %v9992_v59 = vadd.f32 %v6096_v33, %v6092_v35 }
0x2d5d   :  { %v9994_v41 = vadd.f32 %v6096_v33, %v6091_v45 }
0x2d5e   :  { %v6102_v61 = vsel %vm2061_vm9, %v9992_v59, 0.0 }
0x2d5f   :  { %6103 = vadd.xlane.f32.xlu1 %v6102_v61  ;;  %v6099_v0 = vsel %vm1948_vm8, %v9994_v41, 0.0 }
0x2d60   :  { %6100 = vadd.xlane.f32.xlu0 %v6099_v0 }
0x2dec   :  { %v6104_v48 = vpop.xlane.xlu1 %6103 }
0x2ded   :  { %v6106_v20 = vmul.f32 0.03125, %v6104_v48  ;;  %v6101_v55 = vpop.xlane.xlu0 %6100 }
0x2dee   :  { %v6105_v53 = vmul.f32 0.03125, %v6101_v55  ;;  %v8683_v55 = vld [vmem:[%s9275_s27 + $0x20] sm:$0xff] }
0x2def   :  { %v6108_v30 = vsub.f32 %v9992_v59, %v6106_v20 }
0x2df0   :  { %v6107_v25 = vsub.f32 %v9994_v41, %v6105_v53  ;;  %v6253_v53 = vrot.slane %v8683_v55, %v9347_v44 }
0x2df1   :  { %v6110_v24 = vmul.f32 %v6108_v30, %v6108_v30 }
0x2df2   :  { %v6109_v39 = vmul.f32 %v6107_v25, %v6107_v25 }
0x2df3   :  { %v6114_v8 = vsel %vm2061_vm9, %v6110_v24, 0.0 }
0x2df4   :  { %6115 = vadd.xlane.f32.xlu1 %v6114_v8  ;;  %v6111_v26 = vsel %vm1948_vm8, %v6109_v39, 0.0 }
0x2df5   :  { %6112 = vadd.xlane.f32.xlu0 %v6111_v26 }
0x2e81   :  { %v6116_v46 = vpop.xlane.xlu1 %6115 }
0x2e82   :  { %v6118_v62 = vmul.f32 0.03125, %v6116_v46  ;;  %v6113_v4 = vpop.xlane.xlu0 %6112 }
0x2e83   :  { %v6117_v47 = vmul.f32 0.03125, %v6113_v4 }
0x2e84   :  { %v6120_v2 = vadd.f32 1e-05, %v6118_v62 }
0x2e85   :  { %v6119_v6 = vadd.f32 1e-05, %v6117_v47 }
0x2e86   :  { %8639 = vrsqrt.f32 %v6120_v2 }
0x2e87   :  { %8641 = vrsqrt.f32 %v6119_v6 }
0x2e90   :  { %v8640_v7 = vpop.eup %8639 }
0x2e91   :  { %v8642_v10 = vpop.eup %8641  ;;  %v6124_v42 = vmul.f32 %v8640_v7, %v6108_v30 }
0x2e92   :  { %v6123_v56 = vmul.f32 %v8642_v10, %v6107_v25 }
0x2e93   :  { %v6130_v1 = vmul.f32 %v6128_v37, %v6124_v42 }
0x2e94   :  { %v6129_v12 = vmul.f32 %v6128_v37, %v6123_v56  ;;  %v6368_v56 = vrot.slane %v8683_v55, %v9084_v5 }
0x2e95   :  { %v6136_v43 = vadd.f32 %v6134_v19, %v6130_v1 }
0x2e96   :  { %v6135_v58 = vadd.f32 %v6134_v19, %v6129_v12  ;;  %v6374_v12 = vrot.slane %v8683_v55, %v9087_v13 }
0x2e98   :  { %7782 = vmatprep.mubr.msk.f32.mxu1 %vm1948_vm8, %v6135_v58 }
0x2e99   :  { %7783 = vmatmul.mubr.msk.f32.vlgmr.msra.gmra.mrb[120].mxu1 %vm1948_vm8, %v6136_v43 }
0x2f6c   :  { %v7784_v18 = vpop.f32.mrb[120].mxu1 }
0x2f6d   :  { %v6224_v36 = vadd.f32 %v7784_v18, %v6145_v60  ;;  %v6218_v50 = vpop.f32.mrb[121].mxu1 }
0x2f6e   :  { %v6219_v63 = vadd.f32 %v6218_v50, %v6145_v60 }
0x2f6f   :  { %v6788_v54 = vmul.f32 -1.442695, %v6224_v36 }
0x2f70   :  { %v6787_v33 = vmul.f32 -1.442695, %v6219_v63 }
0x2f71   :  { %8643 = vpow2.f32 %v6788_v54 }
0x2f72   :  { %8645 = vpow2.f32 %v6787_v33 }
0x2f7b   :  { %v8644_v23 = vpop.eup %8643 }
0x2f7c   :  { %v8646_v35 = vpop.eup %8645  ;;  %v6234_v40 = vadd.f32 1.0, %v8644_v23 }
0x2f7d   :  { %v6233_v45 = vadd.f32 1.0, %v8646_v35 }
0x2f7e   :  { %8647 = vrcp.f32 %v6234_v40 }
0x2f7f   :  { %8649 = vrcp.f32 %v6233_v45 }
0x2f88   :  { %v8648_v61 = vpop.eup %8647 }
0x2f89   :  { %v8650_v0 = vpop.eup %8649  ;;  %v6240_v20 = vmul.f32 %v8648_v61, %v6224_v36 }
0x2f8a   :  { %v6239_v48 = vmul.f32 %v8650_v0, %v6219_v63 }
0x2f8c   :  { %7801 = vmatprep.mubr.msk.f32.mxu0 %vm138_vm0, %v6239_v48 }
0x2f8d   :  { %7802 = vmatmul.mubr.msk.f32.vlgmr.msra.gmra.mrb[106].mxu0 %vm138_vm0, %v6240_v20 }
0x3060   :  { %v7803_v30 = vpop.f32.mrb[106].mxu0 }
0x3061   :  { %v6332_v25 = vadd.f32 %v7803_v30, %v6253_v53  ;;  %v6326_v24 = vpop.f32.mrb[107].mxu0 }
0x3062   :  { %v6327_v39 = vadd.f32 %v6326_v24, %v6253_v53 }
0x3063   :  { %v6336_v8 = vmul.f32 0.5, %v6332_v25 }
0x3064   :  { %v6335_v26 = vmul.f32 0.5, %v6327_v39 }
0x3065   :  { %v6338_v57 = vadd.f32 %v6336_v8, %v9992_v59 }
0x3066   :  { %v6337_v32 = vadd.f32 %v6335_v26, %v9994_v41 }
0x3067   :  { %v6342_v14 = vsel %vm2061_vm9, %v6338_v57, 0.0 }
0x3068   :  { %6343 = vadd.xlane.f32.xlu1 %v6342_v14  ;;  %v6339_v3 = vsel %vm1948_vm8, %v6337_v32, 0.0 }
0x3069   :  { %6340 = vadd.xlane.f32.xlu0 %v6339_v3 }
0x30f5   :  { %v6344_v51 = vpop.xlane.xlu1 %6343 }
0x30f6   :  { %v6346_v34 = vmul.f32 0.03125, %v6344_v51  ;;  %v6341_v46 = vpop.xlane.xlu0 %6340 }
0x30f7   :  { %v6345_v44 = vmul.f32 0.03125, %v6341_v46 }
0x30f8   :  { %v6348_v62 = vsub.f32 %v6338_v57, %v6346_v34 }
0x30f9   :  { %v6347_v4 = vsub.f32 %v6337_v32, %v6345_v44 }
0x30fa   :  { %v6350_v47 = vmul.f32 %v6348_v62, %v6348_v62 }
0x30fb   :  { %v6349_v2 = vmul.f32 %v6347_v4, %v6347_v4 }
0x30fc   :  { %v6354_v6 = vsel %vm2061_vm9, %v6350_v47, 0.0 }
0x30fd   :  { %6355 = vadd.xlane.f32.xlu1 %v6354_v6  ;;  %v6351_v59 = vsel %vm1948_vm8, %v6349_v2, 0.0 }
0x30fe   :  { %6352 = vadd.xlane.f32.xlu0 %v6351_v59 }
0x318a   :  { %v6356_v41 = vpop.xlane.xlu1 %6355 }
0x318b   :  { %v6358_v9 = vmul.f32 0.03125, %v6356_v41  ;;  %v6353_v37 = vpop.xlane.xlu0 %6352 }
0x318c   :  { %v6357_v7 = vmul.f32 0.03125, %v6353_v37 }
0x318d   :  { %v6360_v10 = vadd.f32 1e-05, %v6358_v9 }
0x318e   :  { %v6359_v42 = vadd.f32 1e-05, %v6357_v7 }
0x318f   :  { %8651 = vrsqrt.f32 %v6360_v10 }
0x3190   :  { %8653 = vrsqrt.f32 %v6359_v42 }
0x3199   :  { %v8652_v19 = vpop.eup %8651 }
0x319a   :  { %v8654_v1 = vpop.eup %8653  ;;  %v6364_v58 = vmul.f32 %v8652_v19, %v6348_v62 }
0x319b   :  { %v6363_v43 = vmul.f32 %v8654_v1, %v6347_v4 }
0x319c   :  { %v6370_v38 = vmul.f32 %v6368_v56, %v6364_v58 }
0x319d   :  { %v6369_v49 = vmul.f32 %v6368_v56, %v6363_v43 }
0x319e   :  { %v6376_v52 = vadd.f32 %v6374_v12, %v6370_v38 }
0x319f   :  { %v6375_v16 = vadd.f32 %v6374_v12, %v6369_v49 }
0x31a0   :  { %6378 = vst.msk [vmem:[%s6411_s5 + $0x8] sm:$0x3f] %vm2061_vm9, %v6376_v52 }
0x31a1   :  { %6377 = vst.msk [vmem:[%s6411_s5] sm:$0xff] %vm1948_vm8, %v6375_v16 }

</bundles_post_ra>
